<compile_context>
chip_gen: v6e
topology: v6e:2x2x1
jax: 0.10.0
libtpu: 0.0.40
codegen_flags: <defaults>
</compile_context>

<pallas_src>
import jax
import jax.numpy as jnp
from jax.experimental import pallas as pl
from jax.experimental.pallas import tpu as pltpu

_VMEM = pl.BlockSpec(memory_space=pltpu.MemorySpace.VMEM)


# ----------------------------------------------------------------------------
# Pallas kernels
# ----------------------------------------------------------------------------
def _gru_bidir_kernel(x_ref, len_ref,
                      w_i_f_ref, w_h_f_ref, b_f_ref,
                      w_i_b_ref, w_h_b_ref, b_b_ref,
                      out_ref):
    """One bidirectional GRU layer, time-major.

    x_ref:   (T, N, E_in)  activations (N padded to a multiple of 8)
    len_ref: (N, 1) int32  sentence lengths
    w_i_*:   (3, E_in, H)  per-gate input->hidden weights [r, z, n]
    w_h_*:   (3, H, H)     per-gate hidden->hidden weights [r, z, n]
    b_*:     (4, 1, H)     [b_ir + b_hr, b_iz + b_hz, b_in, b_hn]
    out_ref: (T, N, 2H)    forward half in [..., :H], backward in [..., H:]
    """
    T, N, E = x_ref.shape
    H = w_h_f_ref.shape[-1]
    lens = len_ref[...]                                     # (N, 1) int32

    # ---- hoisted input projections: large MXU matmuls, once per layer ----
    x2 = x_ref[...].reshape(T * N, E)                       # clean merge (N % 8 == 0)

    def input_gates(w_i_ref, b_ref):
        return [
            (jnp.dot(x2, w_i_ref[g], preferred_element_type=jnp.float32)
             + b_ref[g]).reshape(T, N, H)
            for g in range(3)                               # r, z, n
        ]

    gi_f = input_gates(w_i_f_ref, b_f_ref)
    gi_b = input_gates(w_i_b_ref, b_b_ref)

    # Hoist weight/bias loads (and the b_hn broadcast) out of the recurrence.
    w_hf = [w_h_f_ref[g] for g in range(3)]
    w_hb = [w_h_b_ref[g] for g in range(3)]
    b_hn_f = jnp.broadcast_to(b_f_ref[3], (N, H))
    b_hn_b = jnp.broadcast_to(b_b_ref[3], (N, H))

    def cell(g_r, g_z, g_n, h, w_h, b_hn):
        r = jax.nn.sigmoid(g_r + jnp.dot(h, w_h[0], preferred_element_type=jnp.float32))
        z = jax.nn.sigmoid(g_z + jnp.dot(h, w_h[1], preferred_element_type=jnp.float32))
        n = jnp.tanh(g_n + r * (jnp.dot(h, w_h[2], preferred_element_type=jnp.float32) + b_hn))
        return (1.0 - z) * n + z * h

    hf = jnp.zeros((N, H), jnp.float32)
    hb = jnp.zeros((N, H), jnp.float32)
    outs_f = [None] * T
    outs_b = [None] * T

    # Fused, fully unrolled recurrence: forward step t and backward step
    # T-1-t in the same iteration (independent -> scheduler interleaves them).
    # TODO(synk): for large T switch to lax.fori_loop(..., unroll=k) with the
    # hidden states as the carry instead of full Python unrolling.
    for t in range(T):
        tb = T - 1 - t
        mask_f = t < lens                                   # (N, 1) bool
        mask_b = tb < lens
        hf_new = cell(gi_f[0][t], gi_f[1][t], gi_f[2][t], hf, w_hf, b_hn_f)
        hb_new = cell(gi_b[0][tb], gi_b[1][tb], gi_b[2][tb], hb, w_hb, b_hn_b)
        hf = jnp.where(mask_f, hf_new, hf)                  # freeze past length
        hb = jnp.where(mask_b, hb_new, hb)
        outs_f[t] = jnp.where(mask_f, hf, 0.0)              # padded outputs are 0
        outs_b[tb] = jnp.where(mask_b, hb, 0.0)

    out_f = jnp.stack(outs_f, axis=0)                       # (T, N, H)
    out_b = jnp.stack(outs_b, axis=0)                       # (T, N, H)
    out_ref[...] = jnp.concatenate([out_f, out_b], axis=-1)  # single dense store


def _word_attn_kernel(h_ref, len_ref, w_att_ref, b_att_ref, ctx_ref,
                      sent_ref, alpha_ref):
    """Word attention + masked softmax + weighted sum, time-major.

    h_ref:     (T, N, D)  bidirectional GRU outputs (D = 2H)
    len_ref:   (1, N) int32
    ctx_ref:   (1, A)     word context vector (row form)
    sent_ref:  (N, D)     sentence embeddings
    alpha_ref: (T, N)     attention weights (transposed to (N, T) in wrapper)
    """
    T, N, D = h_ref.shape
    A = w_att_ref.shape[1]
    h = h_ref[...]
    att = jnp.tanh(
        jnp.dot(h.reshape(T * N, D), w_att_ref[...],
                preferred_element_type=jnp.float32) + b_att_ref[...])
    # context projection as broadcast-mul + lane reduction (no 1-lane matmul)
    score = jnp.sum(att.reshape(T, N, A) * ctx_ref[...], axis=-1)   # (T, N)

    lens = len_ref[...]                                     # (1, N)
    t_idx = jax.lax.broadcasted_iota(jnp.int32, (T, N), 0)
    mask = t_idx < lens
    # exp(x - max) then per-sentence normalization == masked softmax (the
    # global max in the torch code cancels under the normalization).
    m = jnp.max(jnp.where(mask, score, -jnp.inf), axis=0, keepdims=True)
    e = jnp.where(mask, jnp.exp(score - m), 0.0)
    alphas = e / jnp.sum(e, axis=0, keepdims=True)          # (T, N)

    alpha_ref[...] = alphas
    sent_ref[...] = jnp.sum(alphas[:, :, None] * h, axis=0)


# ----------------------------------------------------------------------------
# Wrappers
# ----------------------------------------------------------------------------
def _pack_gru_dir(wih, whh, bih, bhh):
    """Split (in, 3H) / (H, 3H) weights into per-gate stacks; fold biases."""
    H = whh.shape[0]
    w_i = jnp.stack([wih[:, 0:H], wih[:, H:2 * H], wih[:, 2 * H:3 * H]], axis=0)
    w_h = jnp.stack([whh[:, 0:H], whh[:, H:2 * H], whh[:, 2 * H:3 * H]], axis=0)
    b = jnp.stack([bih[:, 0:H] + bhh[:, 0:H],
                   bih[:, H:2 * H] + bhh[:, H:2 * H],
                   bih[:, 2 * H:3 * H],
                   bhh[:, 2 * H:3 * H]], axis=0)            # (4, 1, H)
    return w_i, w_h, b


def _gru_layer(x_tne, lens_col, lp):
    T, N, _ = x_tne.shape
    H = lp["whh_f"].shape[0]
    w_i_f, w_h_f, b_f = _pack_gru_dir(lp["wih_f"], lp["whh_f"], lp["bih_f"], lp["bhh_f"])
    w_i_b, w_h_b, b_b = _pack_gru_dir(lp["wih_b"], lp["whh_b"], lp["bih_b"], lp["bhh_b"])
    return pl.pallas_call(
        _gru_bidir_kernel,
        out_shape=jax.ShapeDtypeStruct((T, N, 2 * H), jnp.float32),
        in_specs=[_VMEM] * 8,
        out_specs=_VMEM,
    )(x_tne, lens_col, w_i_f, w_h_f, b_f, w_i_b, w_h_b, b_b)


def word_attention_forward(params, tokens, lengths):
    # Embedding lookup is glue (gather); dropout is identity at inference.
    x = params["embedding"][tokens].astype(jnp.float32)     # (N, T, E)
    N, T, _ = x.shape

    # Pad the sentence dim to a sublane multiple (8) so all in-kernel reshapes
    # and stores stay on clean vreg boundaries; padded rows get length 1
    # (harmless, sliced off below).
    Np = ((N + 7) // 8) * 8
    pad = Np - N
    x = jnp.pad(x, ((0, pad), (0, 0), (0, 0)))
    lens = jnp.pad(lengths.astype(jnp.int32), (0, pad), constant_values=1)
    lens_col = lens.reshape(Np, 1)
    lens_row = lens.reshape(1, Np)

    x = jnp.transpose(x, (1, 0, 2))                         # time-major, once
    for lp in params["gru_layers"]:
        x = _gru_layer(x, lens_col, lp)                     # (T, Np, 2H)

    D = x.shape[-1]
    ctx_row = params["w_ctx"].reshape(1, -1)                # (A, 1) -> (1, A)
    # TODO(synk): for production batch sizes add a grid over the sentence dim
    # with BlockSpec tiling (dimension_semantics=("parallel",)) and bf16 MXU
    # inputs on v6e/v7x; whole-array VMEM residency is fine at these shapes.
    sentences, alphas_tn = pl.pallas_call(
        _word_attn_kernel,
        out_shape=(jax.ShapeDtypeStruct((Np, D), jnp.float32),
                   jax.ShapeDtypeStruct((T, Np), jnp.float32)),
        in_specs=[_VMEM] * 5,
        out_specs=(_VMEM, _VMEM),
    )(x, lens_row, params["w_att"], params["b_att"], ctx_row)
    return sentences[:N], alphas_tn.T[:N]


# ----------------------------------------------------------------------------
# Deterministic parameter init (shapes from the torch module's __init__)
# ----------------------------------------------------------------------------
def init_params(key, vocab_size, emb_size, rnn_size, rnn_layers, att_size):
    keys = iter(jax.random.split(key, 64))
    u = lambda k, shape, b: jax.random.uniform(k, shape, jnp.float32, -b, b)
    params = {"embedding": jax.random.normal(next(keys), (vocab_size, emb_size), jnp.float32)}

    layers = []
    bound = 1.0 / jnp.sqrt(rnn_size)
    for l in range(rnn_layers):
        in_size = emb_size if l == 0 else 2 * rnn_size
        layers.append({
            "wih_f": u(next(keys), (in_size, 3 * rnn_size), bound),
            "whh_f": u(next(keys), (rnn_size, 3 * rnn_size), bound),
            "bih_f": u(next(keys), (1, 3 * rnn_size), bound),
            "bhh_f": u(next(keys), (1, 3 * rnn_size), bound),
            "wih_b": u(next(keys), (in_size, 3 * rnn_size), bound),
            "whh_b": u(next(keys), (rnn_size, 3 * rnn_size), bound),
            "bih_b": u(next(keys), (1, 3 * rnn_size), bound),
            "bhh_b": u(next(keys), (1, 3 * rnn_size), bound),
        })
    params["gru_layers"] = layers

    b_att = 1.0 / jnp.sqrt(2 * rnn_size)
    params["w_att"] = u(next(keys), (2 * rnn_size, att_size), b_att)
    params["b_att"] = u(next(keys), (1, att_size), b_att)
    b_ctx = 1.0 / jnp.sqrt(att_size)
    params["w_ctx"] = u(next(keys), (att_size, 1), b_ctx)
    return params


# ----------------------------------------------------------------------------
# Pure-JAX reference (same math) for correctness check
# ----------------------------------------------------------------------------
def ref_forward(params, tokens, lengths):
    x = params["embedding"][tokens].astype(jnp.float32)
    N, T, _ = x.shape
    lens = lengths.astype(jnp.int32)

    def run_dir(xin, wih, whh, bih, bhh, reverse):
        H = whh.shape[0]

        def step(h, inp):
            xt, t = inp
            gi = xt @ wih + bih
            gh = h @ whh + bhh
            r = jax.nn.sigmoid(gi[:, :H] + gh[:, :H])
            z = jax.nn.sigmoid(gi[:, H:2 * H] + gh[:, H:2 * H])
            n = jnp.tanh(gi[:, 2 * H:] + r * gh[:, 2 * H:])
            hn = (1.0 - z) * n + z * h
            mask = (t < lens)[:, None]
            h2 = jnp.where(mask, hn, h)
            return h2, jnp.where(mask, h2, 0.0)

        xs = jnp.transpose(xin, (1, 0, 2))
        ts = jnp.arange(T)
        if reverse:
            xs, ts = xs[::-1], ts[::-1]
        _, outs = jax.lax.scan(step, jnp.zeros((N, H), jnp.float32), (xs, ts))
        if reverse:
            outs = outs[::-1]
        return jnp.transpose(outs, (1, 0, 2))

    for lp in params["gru_layers"]:
        f = run_dir(x, lp["wih_f"], lp["whh_f"], lp["bih_f"], lp["bhh_f"], False)
        b = run_dir(x, lp["wih_b"], lp["whh_b"], lp["bih_b"], lp["bhh_b"], True)
        x = jnp.concatenate([f, b], axis=-1)

    att = jnp.tanh(x.reshape(N * T, -1) @ params["w_att"] + params["b_att"])
    score = (att @ params["w_ctx"]).reshape(N, T)
    mask = jnp.arange(T)[None, :] < lens[:, None]
    m = jnp.max(jnp.where(mask, score, -jnp.inf), axis=1, keepdims=True)
    e = jnp.where(mask, jnp.exp(score - m), 0.0)
    alphas = e / jnp.sum(e, axis=1, keepdims=True)
    sent = jnp.sum(alphas[:, :, None] * x, axis=1)
    return sent, alphas


if __name__ == "__main__":
    N, T = 4, 8                 # n_sentences, word_pad_len
    VOCAB, EMB = 50, 32         # embedding table
    H, LAYERS, ATT = 32, 2, 32  # word_rnn_size, word_rnn_layers, word_att_size

    key = jax.random.PRNGKey(0)
    k_par, k_tok = jax.random.split(key)
    params = init_params(k_par, VOCAB, EMB, H, LAYERS, ATT)
    tokens = jax.random.randint(k_tok, (N, T), 0, VOCAB, dtype=jnp.int32)
    lengths = jnp.array([8, 5, 3, 6], dtype=jnp.int32)      # words_per_sentence

    sentences, alphas = word_attention_forward(params, tokens, lengths)
    jax.block_until_ready((sentences, alphas))

    ref_sent, ref_alphas = ref_forward(params, tokens, lengths)
    assert jnp.allclose(sentences, ref_sent, atol=1e-3, rtol=1e-3)
    assert jnp.allclose(alphas, ref_alphas, atol=1e-3, rtol=1e-3)

    # pad_packed_sequence returns width == max(lengths); truncate to match.
    max_len = int(jnp.max(lengths))
    alphas = alphas[:, :max_len]

    assert sentences.shape == (N, 2 * H)
    assert alphas.shape == (N, max_len)
    print("KERNEL_OK")
</pallas_src>

<mosaic_0001>
module attributes {stable_mosaic.version = 11 : i64} {
  func.func @_gru_bidir_kernel(%arg0: memref<8x8x32xf32, #tpu.memory_space<vmem>>, %arg1: memref<8x1xi32, #tpu.memory_space<vmem>>, %arg2: memref<3x32x32xf32, #tpu.memory_space<vmem>>, %arg3: memref<3x32x32xf32, #tpu.memory_space<vmem>>, %arg4: memref<4x1x32xf32, #tpu.memory_space<vmem>>, %arg5: memref<3x32x32xf32, #tpu.memory_space<vmem>>, %arg6: memref<3x32x32xf32, #tpu.memory_space<vmem>>, %arg7: memref<4x1x32xf32, #tpu.memory_space<vmem>>, %arg8: memref<8x8x64xf32, #tpu.memory_space<vmem>>) attributes {dimension_semantics = [], scalar_prefetch = 0 : i64, scratch_operands = 0 : i64, tpu.core_type = #tpu.core_type<tc>} {
    %c0 = arith.constant 0 : index
    %c0_0 = arith.constant 0 : index
    %0 = vector.load %arg1[%c0, %c0_0] : memref<8x1xi32, #tpu.memory_space<vmem>>, vector<8x1xi32>
    %c0_1 = arith.constant 0 : index
    %c0_2 = arith.constant 0 : index
    %c0_3 = arith.constant 0 : index
    %1 = vector.load %arg0[%c0_1, %c0_2, %c0_3] : memref<8x8x32xf32, #tpu.memory_space<vmem>>, vector<8x8x32xf32>
    %2 = vector.shape_cast %1 : vector<8x8x32xf32> to vector<64x32xf32>
    %c0_4 = arith.constant 0 : index
    %c0_5 = arith.constant 0 : index
    %c0_6 = arith.constant 0 : index
    %3 = vector.load %arg2[%c0_4, %c0_5, %c0_6] : memref<3x32x32xf32, #tpu.memory_space<vmem>>, vector<1x32x32xf32>
    %4 = vector.shape_cast %3 : vector<1x32x32xf32> to vector<32x32xf32>
    %cst = arith.constant dense<0.000000e+00> : vector<64x32xf32>
    %5 = tpu.matmul %2, %4, %cst {dimension_numbers = #tpu.dot_dimension_numbers<[1], [0], [0], [1], [0, 0, 1, 1], [], []>} : vector<64x32xf32>, vector<32x32xf32>, vector<64x32xf32> -> vector<64x32xf32>
    %c0_7 = arith.constant 0 : index
    %c0_8 = arith.constant 0 : index
    %c0_9 = arith.constant 0 : index
    %6 = vector.load %arg4[%c0_7, %c0_8, %c0_9] : memref<4x1x32xf32, #tpu.memory_space<vmem>>, vector<1x1x32xf32>
    %7 = vector.shape_cast %6 : vector<1x1x32xf32> to vector<1x32xf32>
    %8 = vector.broadcast %7 : vector<1x32xf32> to vector<64x32xf32>
    %9 = arith.addf %5, %8 : vector<64x32xf32>
    %10 = vector.shape_cast %9 : vector<64x32xf32> to vector<8x8x32xf32>
    %c1 = arith.constant 1 : index
    %c0_10 = arith.constant 0 : index
    %c0_11 = arith.constant 0 : index
    %11 = vector.load %arg2[%c1, %c0_10, %c0_11] : memref<3x32x32xf32, #tpu.memory_space<vmem>>, vector<1x32x32xf32>
    %12 = vector.shape_cast %11 : vector<1x32x32xf32> to vector<32x32xf32>
    %cst_12 = arith.constant dense<0.000000e+00> : vector<64x32xf32>
    %13 = tpu.matmul %2, %12, %cst_12 {dimension_numbers = #tpu.dot_dimension_numbers<[1], [0], [0], [1], [0, 0, 1, 1], [], []>} : vector<64x32xf32>, vector<32x32xf32>, vector<64x32xf32> -> vector<64x32xf32>
    %c1_13 = arith.constant 1 : index
    %c0_14 = arith.constant 0 : index
    %c0_15 = arith.constant 0 : index
    %14 = vector.load %arg4[%c1_13, %c0_14, %c0_15] : memref<4x1x32xf32, #tpu.memory_space<vmem>>, vector<1x1x32xf32>
    %15 = vector.shape_cast %14 : vector<1x1x32xf32> to vector<1x32xf32>
    %16 = vector.broadcast %15 : vector<1x32xf32> to vector<64x32xf32>
    %17 = arith.addf %13, %16 : vector<64x32xf32>
    %18 = vector.shape_cast %17 : vector<64x32xf32> to vector<8x8x32xf32>
    %c2 = arith.constant 2 : index
    %c0_16 = arith.constant 0 : index
    %c0_17 = arith.constant 0 : index
    %19 = vector.load %arg2[%c2, %c0_16, %c0_17] : memref<3x32x32xf32, #tpu.memory_space<vmem>>, vector<1x32x32xf32>
    %20 = vector.shape_cast %19 : vector<1x32x32xf32> to vector<32x32xf32>
    %cst_18 = arith.constant dense<0.000000e+00> : vector<64x32xf32>
    %21 = tpu.matmul %2, %20, %cst_18 {dimension_numbers = #tpu.dot_dimension_numbers<[1], [0], [0], [1], [0, 0, 1, 1], [], []>} : vector<64x32xf32>, vector<32x32xf32>, vector<64x32xf32> -> vector<64x32xf32>
    %c2_19 = arith.constant 2 : index
    %c0_20 = arith.constant 0 : index
    %c0_21 = arith.constant 0 : index
    %22 = vector.load %arg4[%c2_19, %c0_20, %c0_21] : memref<4x1x32xf32, #tpu.memory_space<vmem>>, vector<1x1x32xf32>
    %23 = vector.shape_cast %22 : vector<1x1x32xf32> to vector<1x32xf32>
    %24 = vector.broadcast %23 : vector<1x32xf32> to vector<64x32xf32>
    %25 = arith.addf %21, %24 : vector<64x32xf32>
    %26 = vector.shape_cast %25 : vector<64x32xf32> to vector<8x8x32xf32>
    %c0_22 = arith.constant 0 : index
    %c0_23 = arith.constant 0 : index
    %c0_24 = arith.constant 0 : index
    %27 = vector.load %arg5[%c0_22, %c0_23, %c0_24] : memref<3x32x32xf32, #tpu.memory_space<vmem>>, vector<1x32x32xf32>
    %28 = vector.shape_cast %27 : vector<1x32x32xf32> to vector<32x32xf32>
    %cst_25 = arith.constant dense<0.000000e+00> : vector<64x32xf32>
    %29 = tpu.matmul %2, %28, %cst_25 {dimension_numbers = #tpu.dot_dimension_numbers<[1], [0], [0], [1], [0, 0, 1, 1], [], []>} : vector<64x32xf32>, vector<32x32xf32>, vector<64x32xf32> -> vector<64x32xf32>
    %c0_26 = arith.constant 0 : index
    %c0_27 = arith.constant 0 : index
    %c0_28 = arith.constant 0 : index
    %30 = vector.load %arg7[%c0_26, %c0_27, %c0_28] : memref<4x1x32xf32, #tpu.memory_space<vmem>>, vector<1x1x32xf32>
    %31 = vector.shape_cast %30 : vector<1x1x32xf32> to vector<1x32xf32>
    %32 = vector.broadcast %31 : vector<1x32xf32> to vector<64x32xf32>
    %33 = arith.addf %29, %32 : vector<64x32xf32>
    %34 = vector.shape_cast %33 : vector<64x32xf32> to vector<8x8x32xf32>
    %c1_29 = arith.constant 1 : index
    %c0_30 = arith.constant 0 : index
    %c0_31 = arith.constant 0 : index
    %35 = vector.load %arg5[%c1_29, %c0_30, %c0_31] : memref<3x32x32xf32, #tpu.memory_space<vmem>>, vector<1x32x32xf32>
    %36 = vector.shape_cast %35 : vector<1x32x32xf32> to vector<32x32xf32>
    %cst_32 = arith.constant dense<0.000000e+00> : vector<64x32xf32>
    %37 = tpu.matmul %2, %36, %cst_32 {dimension_numbers = #tpu.dot_dimension_numbers<[1], [0], [0], [1], [0, 0, 1, 1], [], []>} : vector<64x32xf32>, vector<32x32xf32>, vector<64x32xf32> -> vector<64x32xf32>
    %c1_33 = arith.constant 1 : index
    %c0_34 = arith.constant 0 : index
    %c0_35 = arith.constant 0 : index
    %38 = vector.load %arg7[%c1_33, %c0_34, %c0_35] : memref<4x1x32xf32, #tpu.memory_space<vmem>>, vector<1x1x32xf32>
    %39 = vector.shape_cast %38 : vector<1x1x32xf32> to vector<1x32xf32>
    %40 = vector.broadcast %39 : vector<1x32xf32> to vector<64x32xf32>
    %41 = arith.addf %37, %40 : vector<64x32xf32>
    %42 = vector.shape_cast %41 : vector<64x32xf32> to vector<8x8x32xf32>
    %c2_36 = arith.constant 2 : index
    %c0_37 = arith.constant 0 : index
    %c0_38 = arith.constant 0 : index
    %43 = vector.load %arg5[%c2_36, %c0_37, %c0_38] : memref<3x32x32xf32, #tpu.memory_space<vmem>>, vector<1x32x32xf32>
    %44 = vector.shape_cast %43 : vector<1x32x32xf32> to vector<32x32xf32>
    %cst_39 = arith.constant dense<0.000000e+00> : vector<64x32xf32>
    %45 = tpu.matmul %2, %44, %cst_39 {dimension_numbers = #tpu.dot_dimension_numbers<[1], [0], [0], [1], [0, 0, 1, 1], [], []>} : vector<64x32xf32>, vector<32x32xf32>, vector<64x32xf32> -> vector<64x32xf32>
    %c2_40 = arith.constant 2 : index
    %c0_41 = arith.constant 0 : index
    %c0_42 = arith.constant 0 : index
    %46 = vector.load %arg7[%c2_40, %c0_41, %c0_42] : memref<4x1x32xf32, #tpu.memory_space<vmem>>, vector<1x1x32xf32>
    %47 = vector.shape_cast %46 : vector<1x1x32xf32> to vector<1x32xf32>
    %48 = vector.broadcast %47 : vector<1x32xf32> to vector<64x32xf32>
    %49 = arith.addf %45, %48 : vector<64x32xf32>
    %50 = vector.shape_cast %49 : vector<64x32xf32> to vector<8x8x32xf32>
    %c0_43 = arith.constant 0 : index
    %c0_44 = arith.constant 0 : index
    %c0_45 = arith.constant 0 : index
    %51 = vector.load %arg3[%c0_43, %c0_44, %c0_45] : memref<3x32x32xf32, #tpu.memory_space<vmem>>, vector<1x32x32xf32>
    %52 = vector.shape_cast %51 : vector<1x32x32xf32> to vector<32x32xf32>
    %c1_46 = arith.constant 1 : index
    %c0_47 = arith.constant 0 : index
    %c0_48 = arith.constant 0 : index
    %53 = vector.load %arg3[%c1_46, %c0_47, %c0_48] : memref<3x32x32xf32, #tpu.memory_space<vmem>>, vector<1x32x32xf32>
    %54 = vector.shape_cast %53 : vector<1x32x32xf32> to vector<32x32xf32>
    %c2_49 = arith.constant 2 : index
    %c0_50 = arith.constant 0 : index
    %c0_51 = arith.constant 0 : index
    %55 = vector.load %arg3[%c2_49, %c0_50, %c0_51] : memref<3x32x32xf32, #tpu.memory_space<vmem>>, vector<1x32x32xf32>
    %56 = vector.shape_cast %55 : vector<1x32x32xf32> to vector<32x32xf32>
    %c0_52 = arith.constant 0 : index
    %c0_53 = arith.constant 0 : index
    %c0_54 = arith.constant 0 : index
    %57 = vector.load %arg6[%c0_52, %c0_53, %c0_54] : memref<3x32x32xf32, #tpu.memory_space<vmem>>, vector<1x32x32xf32>
    %58 = vector.shape_cast %57 : vector<1x32x32xf32> to vector<32x32xf32>
    %c1_55 = arith.constant 1 : index
    %c0_56 = arith.constant 0 : index
    %c0_57 = arith.constant 0 : index
    %59 = vector.load %arg6[%c1_55, %c0_56, %c0_57] : memref<3x32x32xf32, #tpu.memory_space<vmem>>, vector<1x32x32xf32>
    %60 = vector.shape_cast %59 : vector<1x32x32xf32> to vector<32x32xf32>
    %c2_58 = arith.constant 2 : index
    %c0_59 = arith.constant 0 : index
    %c0_60 = arith.constant 0 : index
    %61 = vector.load %arg6[%c2_58, %c0_59, %c0_60] : memref<3x32x32xf32, #tpu.memory_space<vmem>>, vector<1x32x32xf32>
    %62 = vector.shape_cast %61 : vector<1x32x32xf32> to vector<32x32xf32>
    %c3 = arith.constant 3 : index
    %c0_61 = arith.constant 0 : index
    %c0_62 = arith.constant 0 : index
    %63 = vector.load %arg4[%c3, %c0_61, %c0_62] : memref<4x1x32xf32, #tpu.memory_space<vmem>>, vector<1x1x32xf32>
    %64 = vector.shape_cast %63 : vector<1x1x32xf32> to vector<1x32xf32>
    %65 = vector.shape_cast %64 : vector<1x32xf32> to vector<1x32xf32>
    %66 = vector.broadcast %65 : vector<1x32xf32> to vector<8x32xf32>
    %c3_63 = arith.constant 3 : index
    %c0_64 = arith.constant 0 : index
    %c0_65 = arith.constant 0 : index
    %67 = vector.load %arg7[%c3_63, %c0_64, %c0_65] : memref<4x1x32xf32, #tpu.memory_space<vmem>>, vector<1x1x32xf32>
    %68 = vector.shape_cast %67 : vector<1x1x32xf32> to vector<1x32xf32>
    %69 = vector.shape_cast %68 : vector<1x32xf32> to vector<1x32xf32>
    %70 = vector.broadcast %69 : vector<1x32xf32> to vector<8x32xf32>
    %cst_66 = arith.constant 0.000000e+00 : f32
    %71 = vector.broadcast %cst_66 : f32 to vector<8x32xf32>
    %cst_67 = arith.constant 0.000000e+00 : f32
    %72 = vector.broadcast %cst_67 : f32 to vector<8x32xf32>
    %c0_i32 = arith.constant 0 : i32
    %73 = vector.broadcast %c0_i32 : i32 to vector<8x1xi32>
    %74 = arith.cmpi sgt, %0, %73 : vector<8x1xi32>
    %c7_i32 = arith.constant 7 : i32
    %75 = vector.broadcast %c7_i32 : i32 to vector<8x1xi32>
    %76 = arith.cmpi sgt, %0, %75 : vector<8x1xi32>
    %77 = vector.extract_strided_slice %10 {offsets = [0, 0, 0], sizes = [1, 8, 32], strides = [1, 1, 1]} : vector<8x8x32xf32> to vector<1x8x32xf32>
    %78 = vector.shape_cast %77 : vector<1x8x32xf32> to vector<8x32xf32>
    %79 = vector.extract_strided_slice %18 {offsets = [0, 0, 0], sizes = [1, 8, 32], strides = [1, 1, 1]} : vector<8x8x32xf32> to vector<1x8x32xf32>
    %80 = vector.shape_cast %79 : vector<1x8x32xf32> to vector<8x32xf32>
    %81 = vector.extract_strided_slice %26 {offsets = [0, 0, 0], sizes = [1, 8, 32], strides = [1, 1, 1]} : vector<8x8x32xf32> to vector<1x8x32xf32>
    %82 = vector.shape_cast %81 : vector<1x8x32xf32> to vector<8x32xf32>
    %cst_68 = arith.constant dense<0.000000e+00> : vector<8x32xf32>
    %83 = tpu.matmul %71, %52, %cst_68 {dimension_numbers = #tpu.dot_dimension_numbers<[1], [0], [0], [1], [0, 0, 1, 1], [], []>} : vector<8x32xf32>, vector<32x32xf32>, vector<8x32xf32> -> vector<8x32xf32>
    %84 = arith.addf %78, %83 : vector<8x32xf32>
    %85 = arith.negf %84 : vector<8x32xf32>
    %86 = math.exp %85 : vector<8x32xf32>
    %cst_69 = arith.constant 1.000000e+00 : f32
    %87 = vector.broadcast %cst_69 : f32 to vector<8x32xf32>
    %88 = arith.addf %87, %86 : vector<8x32xf32>
    %89 = arith.divf %87, %88 : vector<8x32xf32>
    %cst_70 = arith.constant dense<0.000000e+00> : vector<8x32xf32>
    %90 = tpu.matmul %71, %54, %cst_70 {dimension_numbers = #tpu.dot_dimension_numbers<[1], [0], [0], [1], [0, 0, 1, 1], [], []>} : vector<8x32xf32>, vector<32x32xf32>, vector<8x32xf32> -> vector<8x32xf32>
    %91 = arith.addf %80, %90 : vector<8x32xf32>
    %92 = arith.negf %91 : vector<8x32xf32>
    %93 = math.exp %92 : vector<8x32xf32>
    %cst_71 = arith.constant 1.000000e+00 : f32
    %94 = vector.broadcast %cst_71 : f32 to vector<8x32xf32>
    %95 = arith.addf %94, %93 : vector<8x32xf32>
    %96 = arith.divf %94, %95 : vector<8x32xf32>
    %cst_72 = arith.constant dense<0.000000e+00> : vector<8x32xf32>
    %97 = tpu.matmul %71, %56, %cst_72 {dimension_numbers = #tpu.dot_dimension_numbers<[1], [0], [0], [1], [0, 0, 1, 1], [], []>} : vector<8x32xf32>, vector<32x32xf32>, vector<8x32xf32> -> vector<8x32xf32>
    %98 = arith.addf %97, %66 : vector<8x32xf32>
    %99 = arith.mulf %89, %98 : vector<8x32xf32>
    %100 = arith.addf %82, %99 : vector<8x32xf32>
    %101 = math.tanh %100 : vector<8x32xf32>
    %cst_73 = arith.constant 1.000000e+00 : f32
    %102 = vector.broadcast %cst_73 : f32 to vector<8x32xf32>
    %103 = arith.subf %102, %96 : vector<8x32xf32>
    %104 = arith.mulf %103, %101 : vector<8x32xf32>
    %105 = arith.mulf %96, %71 : vector<8x32xf32>
    %106 = arith.addf %104, %105 : vector<8x32xf32>
    %107 = vector.extract_strided_slice %34 {offsets = [7, 0, 0], sizes = [1, 8, 32], strides = [1, 1, 1]} : vector<8x8x32xf32> to vector<1x8x32xf32>
    %108 = vector.shape_cast %107 : vector<1x8x32xf32> to vector<8x32xf32>
    %109 = vector.extract_strided_slice %42 {offsets = [7, 0, 0], sizes = [1, 8, 32], strides = [1, 1, 1]} : vector<8x8x32xf32> to vector<1x8x32xf32>
    %110 = vector.shape_cast %109 : vector<1x8x32xf32> to vector<8x32xf32>
    %111 = vector.extract_strided_slice %50 {offsets = [7, 0, 0], sizes = [1, 8, 32], strides = [1, 1, 1]} : vector<8x8x32xf32> to vector<1x8x32xf32>
    %112 = vector.shape_cast %111 : vector<1x8x32xf32> to vector<8x32xf32>
    %cst_74 = arith.constant dense<0.000000e+00> : vector<8x32xf32>
    %113 = tpu.matmul %72, %58, %cst_74 {dimension_numbers = #tpu.dot_dimension_numbers<[1], [0], [0], [1], [0, 0, 1, 1], [], []>} : vector<8x32xf32>, vector<32x32xf32>, vector<8x32xf32> -> vector<8x32xf32>
    %114 = arith.addf %108, %113 : vector<8x32xf32>
    %115 = arith.negf %114 : vector<8x32xf32>
    %116 = math.exp %115 : vector<8x32xf32>
    %cst_75 = arith.constant 1.000000e+00 : f32
    %117 = vector.broadcast %cst_75 : f32 to vector<8x32xf32>
    %118 = arith.addf %117, %116 : vector<8x32xf32>
    %119 = arith.divf %117, %118 : vector<8x32xf32>
    %cst_76 = arith.constant dense<0.000000e+00> : vector<8x32xf32>
    %120 = tpu.matmul %72, %60, %cst_76 {dimension_numbers = #tpu.dot_dimension_numbers<[1], [0], [0], [1], [0, 0, 1, 1], [], []>} : vector<8x32xf32>, vector<32x32xf32>, vector<8x32xf32> -> vector<8x32xf32>
    %121 = arith.addf %110, %120 : vector<8x32xf32>
    %122 = arith.negf %121 : vector<8x32xf32>
    %123 = math.exp %122 : vector<8x32xf32>
    %cst_77 = arith.constant 1.000000e+00 : f32
    %124 = vector.broadcast %cst_77 : f32 to vector<8x32xf32>
    %125 = arith.addf %124, %123 : vector<8x32xf32>
    %126 = arith.divf %124, %125 : vector<8x32xf32>
    %cst_78 = arith.constant dense<0.000000e+00> : vector<8x32xf32>
    %127 = tpu.matmul %72, %62, %cst_78 {dimension_numbers = #tpu.dot_dimension_numbers<[1], [0], [0], [1], [0, 0, 1, 1], [], []>} : vector<8x32xf32>, vector<32x32xf32>, vector<8x32xf32> -> vector<8x32xf32>
    %128 = arith.addf %127, %70 : vector<8x32xf32>
    %129 = arith.mulf %119, %128 : vector<8x32xf32>
    %130 = arith.addf %112, %129 : vector<8x32xf32>
    %131 = math.tanh %130 : vector<8x32xf32>
    %cst_79 = arith.constant 1.000000e+00 : f32
    %132 = vector.broadcast %cst_79 : f32 to vector<8x32xf32>
    %133 = arith.subf %132, %126 : vector<8x32xf32>
    %134 = arith.mulf %133, %131 : vector<8x32xf32>
    %135 = arith.mulf %126, %72 : vector<8x32xf32>
    %136 = arith.addf %134, %135 : vector<8x32xf32>
    %137 = vector.shape_cast %74 : vector<8x1xi1> to vector<8x1xi1>
    %138 = vector.broadcast %137 : vector<8x1xi1> to vector<8x32xi1>
    %139 = arith.select %138, %106, %71 : vector<8x32xi1>, vector<8x32xf32>
    %140 = vector.shape_cast %76 : vector<8x1xi1> to vector<8x1xi1>
    %141 = vector.broadcast %140 : vector<8x1xi1> to vector<8x32xi1>
    %142 = arith.select %141, %136, %72 : vector<8x32xi1>, vector<8x32xf32>
    %cst_80 = arith.constant 0.000000e+00 : f32
    %143 = vector.shape_cast %74 : vector<8x1xi1> to vector<8x1xi1>
    %144 = vector.broadcast %143 : vector<8x1xi1> to vector<8x32xi1>
    %145 = vector.broadcast %cst_80 : f32 to vector<8x32xf32>
    %146 = arith.select %144, %139, %145 : vector<8x32xi1>, vector<8x32xf32>
    %cst_81 = arith.constant 0.000000e+00 : f32
    %147 = vector.shape_cast %76 : vector<8x1xi1> to vector<8x1xi1>
    %148 = vector.broadcast %147 : vector<8x1xi1> to vector<8x32xi1>
    %149 = vector.broadcast %cst_81 : f32 to vector<8x32xf32>
    %150 = arith.select %148, %142, %149 : vector<8x32xi1>, vector<8x32xf32>
    %c1_i32 = arith.constant 1 : i32
    %151 = vector.broadcast %c1_i32 : i32 to vector<8x1xi32>
    %152 = arith.cmpi sgt, %0, %151 : vector<8x1xi32>
    %c6_i32 = arith.constant 6 : i32
    %153 = vector.broadcast %c6_i32 : i32 to vector<8x1xi32>
    %154 = arith.cmpi sgt, %0, %153 : vector<8x1xi32>
    %155 = vector.extract_strided_slice %10 {offsets = [1, 0, 0], sizes = [1, 8, 32], strides = [1, 1, 1]} : vector<8x8x32xf32> to vector<1x8x32xf32>
    %156 = vector.shape_cast %155 : vector<1x8x32xf32> to vector<8x32xf32>
    %157 = vector.extract_strided_slice %18 {offsets = [1, 0, 0], sizes = [1, 8, 32], strides = [1, 1, 1]} : vector<8x8x32xf32> to vector<1x8x32xf32>
    %158 = vector.shape_cast %157 : vector<1x8x32xf32> to vector<8x32xf32>
    %159 = vector.extract_strided_slice %26 {offsets = [1, 0, 0], sizes = [1, 8, 32], strides = [1, 1, 1]} : vector<8x8x32xf32> to vector<1x8x32xf32>
    %160 = vector.shape_cast %159 : vector<1x8x32xf32> to vector<8x32xf32>
    %cst_82 = arith.constant dense<0.000000e+00> : vector<8x32xf32>
    %161 = tpu.matmul %139, %52, %cst_82 {dimension_numbers = #tpu.dot_dimension_numbers<[1], [0], [0], [1], [0, 0, 1, 1], [], []>} : vector<8x32xf32>, vector<32x32xf32>, vector<8x32xf32> -> vector<8x32xf32>
    %162 = arith.addf %156, %161 : vector<8x32xf32>
    %163 = arith.negf %162 : vector<8x32xf32>
    %164 = math.exp %163 : vector<8x32xf32>
    %cst_83 = arith.constant 1.000000e+00 : f32
    %165 = vector.broadcast %cst_83 : f32 to vector<8x32xf32>
    %166 = arith.addf %165, %164 : vector<8x32xf32>
    %167 = arith.divf %165, %166 : vector<8x32xf32>
    %cst_84 = arith.constant dense<0.000000e+00> : vector<8x32xf32>
    %168 = tpu.matmul %139, %54, %cst_84 {dimension_numbers = #tpu.dot_dimension_numbers<[1], [0], [0], [1], [0, 0, 1, 1], [], []>} : vector<8x32xf32>, vector<32x32xf32>, vector<8x32xf32> -> vector<8x32xf32>
    %169 = arith.addf %158, %168 : vector<8x32xf32>
    %170 = arith.negf %169 : vector<8x32xf32>
    %171 = math.exp %170 : vector<8x32xf32>
    %cst_85 = arith.constant 1.000000e+00 : f32
    %172 = vector.broadcast %cst_85 : f32 to vector<8x32xf32>
    %173 = arith.addf %172, %171 : vector<8x32xf32>
    %174 = arith.divf %172, %173 : vector<8x32xf32>
    %cst_86 = arith.constant dense<0.000000e+00> : vector<8x32xf32>
    %175 = tpu.matmul %139, %56, %cst_86 {dimension_numbers = #tpu.dot_dimension_numbers<[1], [0], [0], [1], [0, 0, 1, 1], [], []>} : vector<8x32xf32>, vector<32x32xf32>, vector<8x32xf32> -> vector<8x32xf32>
    %176 = arith.addf %175, %66 : vector<8x32xf32>
    %177 = arith.mulf %167, %176 : vector<8x32xf32>
    %178 = arith.addf %160, %177 : vector<8x32xf32>
    %179 = math.tanh %178 : vector<8x32xf32>
    %cst_87 = arith.constant 1.000000e+00 : f32
    %180 = vector.broadcast %cst_87 : f32 to vector<8x32xf32>
    %181 = arith.subf %180, %174 : vector<8x32xf32>
    %182 = arith.mulf %181, %179 : vector<8x32xf32>
    %183 = arith.mulf %174, %139 : vector<8x32xf32>
    %184 = arith.addf %182, %183 : vector<8x32xf32>
    %185 = vector.extract_strided_slice %34 {offsets = [6, 0, 0], sizes = [1, 8, 32], strides = [1, 1, 1]} : vector<8x8x32xf32> to vector<1x8x32xf32>
    %186 = vector.shape_cast %185 : vector<1x8x32xf32> to vector<8x32xf32>
    %187 = vector.extract_strided_slice %42 {offsets = [6, 0, 0], sizes = [1, 8, 32], strides = [1, 1, 1]} : vector<8x8x32xf32> to vector<1x8x32xf32>
    %188 = vector.shape_cast %187 : vector<1x8x32xf32> to vector<8x32xf32>
    %189 = vector.extract_strided_slice %50 {offsets = [6, 0, 0], sizes = [1, 8, 32], strides = [1, 1, 1]} : vector<8x8x32xf32> to vector<1x8x32xf32>
    %190 = vector.shape_cast %189 : vector<1x8x32xf32> to vector<8x32xf32>
    %cst_88 = arith.constant dense<0.000000e+00> : vector<8x32xf32>
    %191 = tpu.matmul %142, %58, %cst_88 {dimension_numbers = #tpu.dot_dimension_numbers<[1], [0], [0], [1], [0, 0, 1, 1], [], []>} : vector<8x32xf32>, vector<32x32xf32>, vector<8x32xf32> -> vector<8x32xf32>
    %192 = arith.addf %186, %191 : vector<8x32xf32>
    %193 = arith.negf %192 : vector<8x32xf32>
    %194 = math.exp %193 : vector<8x32xf32>
    %cst_89 = arith.constant 1.000000e+00 : f32
    %195 = vector.broadcast %cst_89 : f32 to vector<8x32xf32>
    %196 = arith.addf %195, %194 : vector<8x32xf32>
    %197 = arith.divf %195, %196 : vector<8x32xf32>
    %cst_90 = arith.constant dense<0.000000e+00> : vector<8x32xf32>
    %198 = tpu.matmul %142, %60, %cst_90 {dimension_numbers = #tpu.dot_dimension_numbers<[1], [0], [0], [1], [0, 0, 1, 1], [], []>} : vector<8x32xf32>, vector<32x32xf32>, vector<8x32xf32> -> vector<8x32xf32>
    %199 = arith.addf %188, %198 : vector<8x32xf32>
    %200 = arith.negf %199 : vector<8x32xf32>
    %201 = math.exp %200 : vector<8x32xf32>
    %cst_91 = arith.constant 1.000000e+00 : f32
    %202 = vector.broadcast %cst_91 : f32 to vector<8x32xf32>
    %203 = arith.addf %202, %201 : vector<8x32xf32>
    %204 = arith.divf %202, %203 : vector<8x32xf32>
    %cst_92 = arith.constant dense<0.000000e+00> : vector<8x32xf32>
    %205 = tpu.matmul %142, %62, %cst_92 {dimension_numbers = #tpu.dot_dimension_numbers<[1], [0], [0], [1], [0, 0, 1, 1], [], []>} : vector<8x32xf32>, vector<32x32xf32>, vector<8x32xf32> -> vector<8x32xf32>
    %206 = arith.addf %205, %70 : vector<8x32xf32>
    %207 = arith.mulf %197, %206 : vector<8x32xf32>
    %208 = arith.addf %190, %207 : vector<8x32xf32>
    %209 = math.tanh %208 : vector<8x32xf32>
    %cst_93 = arith.constant 1.000000e+00 : f32
    %210 = vector.broadcast %cst_93 : f32 to vector<8x32xf32>
    %211 = arith.subf %210, %204 : vector<8x32xf32>
    %212 = arith.mulf %211, %209 : vector<8x32xf32>
    %213 = arith.mulf %204, %142 : vector<8x32xf32>
    %214 = arith.addf %212, %213 : vector<8x32xf32>
    %215 = vector.shape_cast %152 : vector<8x1xi1> to vector<8x1xi1>
    %216 = vector.broadcast %215 : vector<8x1xi1> to vector<8x32xi1>
    %217 = arith.select %216, %184, %139 : vector<8x32xi1>, vector<8x32xf32>
    %218 = vector.shape_cast %154 : vector<8x1xi1> to vector<8x1xi1>
    %219 = vector.broadcast %218 : vector<8x1xi1> to vector<8x32xi1>
    %220 = arith.select %219, %214, %142 : vector<8x32xi1>, vector<8x32xf32>
    %cst_94 = arith.constant 0.000000e+00 : f32
    %221 = vector.shape_cast %152 : vector<8x1xi1> to vector<8x1xi1>
    %222 = vector.broadcast %221 : vector<8x1xi1> to vector<8x32xi1>
    %223 = vector.broadcast %cst_94 : f32 to vector<8x32xf32>
    %224 = arith.select %222, %217, %223 : vector<8x32xi1>, vector<8x32xf32>
    %cst_95 = arith.constant 0.000000e+00 : f32
    %225 = vector.shape_cast %154 : vector<8x1xi1> to vector<8x1xi1>
    %226 = vector.broadcast %225 : vector<8x1xi1> to vector<8x32xi1>
    %227 = vector.broadcast %cst_95 : f32 to vector<8x32xf32>
    %228 = arith.select %226, %220, %227 : vector<8x32xi1>, vector<8x32xf32>
    %c2_i32 = arith.constant 2 : i32
    %229 = vector.broadcast %c2_i32 : i32 to vector<8x1xi32>
    %230 = arith.cmpi sgt, %0, %229 : vector<8x1xi32>
    %c5_i32 = arith.constant 5 : i32
    %231 = vector.broadcast %c5_i32 : i32 to vector<8x1xi32>
    %232 = arith.cmpi sgt, %0, %231 : vector<8x1xi32>
    %233 = vector.extract_strided_slice %10 {offsets = [2, 0, 0], sizes = [1, 8, 32], strides = [1, 1, 1]} : vector<8x8x32xf32> to vector<1x8x32xf32>
    %234 = vector.shape_cast %233 : vector<1x8x32xf32> to vector<8x32xf32>
    %235 = vector.extract_strided_slice %18 {offsets = [2, 0, 0], sizes = [1, 8, 32], strides = [1, 1, 1]} : vector<8x8x32xf32> to vector<1x8x32xf32>
    %236 = vector.shape_cast %235 : vector<1x8x32xf32> to vector<8x32xf32>
    %237 = vector.extract_strided_slice %26 {offsets = [2, 0, 0], sizes = [1, 8, 32], strides = [1, 1, 1]} : vector<8x8x32xf32> to vector<1x8x32xf32>
    %238 = vector.shape_cast %237 : vector<1x8x32xf32> to vector<8x32xf32>
    %cst_96 = arith.constant dense<0.000000e+00> : vector<8x32xf32>
    %239 = tpu.matmul %217, %52, %cst_96 {dimension_numbers = #tpu.dot_dimension_numbers<[1], [0], [0], [1], [0, 0, 1, 1], [], []>} : vector<8x32xf32>, vector<32x32xf32>, vector<8x32xf32> -> vector<8x32xf32>
    %240 = arith.addf %234, %239 : vector<8x32xf32>
    %241 = arith.negf %240 : vector<8x32xf32>
    %242 = math.exp %241 : vector<8x32xf32>
    %cst_97 = arith.constant 1.000000e+00 : f32
    %243 = vector.broadcast %cst_97 : f32 to vector<8x32xf32>
    %244 = arith.addf %243, %242 : vector<8x32xf32>
    %245 = arith.divf %243, %244 : vector<8x32xf32>
    %cst_98 = arith.constant dense<0.000000e+00> : vector<8x32xf32>
    %246 = tpu.matmul %217, %54, %cst_98 {dimension_numbers = #tpu.dot_dimension_numbers<[1], [0], [0], [1], [0, 0, 1, 1], [], []>} : vector<8x32xf32>, vector<32x32xf32>, vector<8x32xf32> -> vector<8x32xf32>
    %247 = arith.addf %236, %246 : vector<8x32xf32>
    %248 = arith.negf %247 : vector<8x32xf32>
    %249 = math.exp %248 : vector<8x32xf32>
    %cst_99 = arith.constant 1.000000e+00 : f32
    %250 = vector.broadcast %cst_99 : f32 to vector<8x32xf32>
    %251 = arith.addf %250, %249 : vector<8x32xf32>
    %252 = arith.divf %250, %251 : vector<8x32xf32>
    %cst_100 = arith.constant dense<0.000000e+00> : vector<8x32xf32>
    %253 = tpu.matmul %217, %56, %cst_100 {dimension_numbers = #tpu.dot_dimension_numbers<[1], [0], [0], [1], [0, 0, 1, 1], [], []>} : vector<8x32xf32>, vector<32x32xf32>, vector<8x32xf32> -> vector<8x32xf32>
    %254 = arith.addf %253, %66 : vector<8x32xf32>
    %255 = arith.mulf %245, %254 : vector<8x32xf32>
    %256 = arith.addf %238, %255 : vector<8x32xf32>
    %257 = math.tanh %256 : vector<8x32xf32>
    %cst_101 = arith.constant 1.000000e+00 : f32
    %258 = vector.broadcast %cst_101 : f32 to vector<8x32xf32>
    %259 = arith.subf %258, %252 : vector<8x32xf32>
    %260 = arith.mulf %259, %257 : vector<8x32xf32>
    %261 = arith.mulf %252, %217 : vector<8x32xf32>
    %262 = arith.addf %260, %261 : vector<8x32xf32>
    %263 = vector.extract_strided_slice %34 {offsets = [5, 0, 0], sizes = [1, 8, 32], strides = [1, 1, 1]} : vector<8x8x32xf32> to vector<1x8x32xf32>
    %264 = vector.shape_cast %263 : vector<1x8x32xf32> to vector<8x32xf32>
    %265 = vector.extract_strided_slice %42 {offsets = [5, 0, 0], sizes = [1, 8, 32], strides = [1, 1, 1]} : vector<8x8x32xf32> to vector<1x8x32xf32>
    %266 = vector.shape_cast %265 : vector<1x8x32xf32> to vector<8x32xf32>
    %267 = vector.extract_strided_slice %50 {offsets = [5, 0, 0], sizes = [1, 8, 32], strides = [1, 1, 1]} : vector<8x8x32xf32> to vector<1x8x32xf32>
    %268 = vector.shape_cast %267 : vector<1x8x32xf32> to vector<8x32xf32>
    %cst_102 = arith.constant dense<0.000000e+00> : vector<8x32xf32>
    %269 = tpu.matmul %220, %58, %cst_102 {dimension_numbers = #tpu.dot_dimension_numbers<[1], [0], [0], [1], [0, 0, 1, 1], [], []>} : vector<8x32xf32>, vector<32x32xf32>, vector<8x32xf32> -> vector<8x32xf32>
    %270 = arith.addf %264, %269 : vector<8x32xf32>
    %271 = arith.negf %270 : vector<8x32xf32>
    %272 = math.exp %271 : vector<8x32xf32>
    %cst_103 = arith.constant 1.000000e+00 : f32
    %273 = vector.broadcast %cst_103 : f32 to vector<8x32xf32>
    %274 = arith.addf %273, %272 : vector<8x32xf32>
    %275 = arith.divf %273, %274 : vector<8x32xf32>
    %cst_104 = arith.constant dense<0.000000e+00> : vector<8x32xf32>
    %276 = tpu.matmul %220, %60, %cst_104 {dimension_numbers = #tpu.dot_dimension_numbers<[1], [0], [0], [1], [0, 0, 1, 1], [], []>} : vector<8x32xf32>, vector<32x32xf32>, vector<8x32xf32> -> vector<8x32xf32>
    %277 = arith.addf %266, %276 : vector<8x32xf32>
    %278 = arith.negf %277 : vector<8x32xf32>
    %279 = math.exp %278 : vector<8x32xf32>
    %cst_105 = arith.constant 1.000000e+00 : f32
    %280 = vector.broadcast %cst_105 : f32 to vector<8x32xf32>
    %281 = arith.addf %280, %279 : vector<8x32xf32>
    %282 = arith.divf %280, %281 : vector<8x32xf32>
    %cst_106 = arith.constant dense<0.000000e+00> : vector<8x32xf32>
    %283 = tpu.matmul %220, %62, %cst_106 {dimension_numbers = #tpu.dot_dimension_numbers<[1], [0], [0], [1], [0, 0, 1, 1], [], []>} : vector<8x32xf32>, vector<32x32xf32>, vector<8x32xf32> -> vector<8x32xf32>
    %284 = arith.addf %283, %70 : vector<8x32xf32>
    %285 = arith.mulf %275, %284 : vector<8x32xf32>
    %286 = arith.addf %268, %285 : vector<8x32xf32>
    %287 = math.tanh %286 : vector<8x32xf32>
    %cst_107 = arith.constant 1.000000e+00 : f32
    %288 = vector.broadcast %cst_107 : f32 to vector<8x32xf32>
    %289 = arith.subf %288, %282 : vector<8x32xf32>
    %290 = arith.mulf %289, %287 : vector<8x32xf32>
    %291 = arith.mulf %282, %220 : vector<8x32xf32>
    %292 = arith.addf %290, %291 : vector<8x32xf32>
    %293 = vector.shape_cast %230 : vector<8x1xi1> to vector<8x1xi1>
    %294 = vector.broadcast %293 : vector<8x1xi1> to vector<8x32xi1>
    %295 = arith.select %294, %262, %217 : vector<8x32xi1>, vector<8x32xf32>
    %296 = vector.shape_cast %232 : vector<8x1xi1> to vector<8x1xi1>
    %297 = vector.broadcast %296 : vector<8x1xi1> to vector<8x32xi1>
    %298 = arith.select %297, %292, %220 : vector<8x32xi1>, vector<8x32xf32>
    %cst_108 = arith.constant 0.000000e+00 : f32
    %299 = vector.shape_cast %230 : vector<8x1xi1> to vector<8x1xi1>
    %300 = vector.broadcast %299 : vector<8x1xi1> to vector<8x32xi1>
    %301 = vector.broadcast %cst_108 : f32 to vector<8x32xf32>
    %302 = arith.select %300, %295, %301 : vector<8x32xi1>, vector<8x32xf32>
    %cst_109 = arith.constant 0.000000e+00 : f32
    %303 = vector.shape_cast %232 : vector<8x1xi1> to vector<8x1xi1>
    %304 = vector.broadcast %303 : vector<8x1xi1> to vector<8x32xi1>
    %305 = vector.broadcast %cst_109 : f32 to vector<8x32xf32>
    %306 = arith.select %304, %298, %305 : vector<8x32xi1>, vector<8x32xf32>
    %c3_i32 = arith.constant 3 : i32
    %307 = vector.broadcast %c3_i32 : i32 to vector<8x1xi32>
    %308 = arith.cmpi sgt, %0, %307 : vector<8x1xi32>
    %c4_i32 = arith.constant 4 : i32
    %309 = vector.broadcast %c4_i32 : i32 to vector<8x1xi32>
    %310 = arith.cmpi sgt, %0, %309 : vector<8x1xi32>
    %311 = vector.extract_strided_slice %10 {offsets = [3, 0, 0], sizes = [1, 8, 32], strides = [1, 1, 1]} : vector<8x8x32xf32> to vector<1x8x32xf32>
    %312 = vector.shape_cast %311 : vector<1x8x32xf32> to vector<8x32xf32>
    %313 = vector.extract_strided_slice %18 {offsets = [3, 0, 0], sizes = [1, 8, 32], strides = [1, 1, 1]} : vector<8x8x32xf32> to vector<1x8x32xf32>
    %314 = vector.shape_cast %313 : vector<1x8x32xf32> to vector<8x32xf32>
    %315 = vector.extract_strided_slice %26 {offsets = [3, 0, 0], sizes = [1, 8, 32], strides = [1, 1, 1]} : vector<8x8x32xf32> to vector<1x8x32xf32>
    %316 = vector.shape_cast %315 : vector<1x8x32xf32> to vector<8x32xf32>
    %cst_110 = arith.constant dense<0.000000e+00> : vector<8x32xf32>
    %317 = tpu.matmul %295, %52, %cst_110 {dimension_numbers = #tpu.dot_dimension_numbers<[1], [0], [0], [1], [0, 0, 1, 1], [], []>} : vector<8x32xf32>, vector<32x32xf32>, vector<8x32xf32> -> vector<8x32xf32>
    %318 = arith.addf %312, %317 : vector<8x32xf32>
    %319 = arith.negf %318 : vector<8x32xf32>
    %320 = math.exp %319 : vector<8x32xf32>
    %cst_111 = arith.constant 1.000000e+00 : f32
    %321 = vector.broadcast %cst_111 : f32 to vector<8x32xf32>
    %322 = arith.addf %321, %320 : vector<8x32xf32>
    %323 = arith.divf %321, %322 : vector<8x32xf32>
    %cst_112 = arith.constant dense<0.000000e+00> : vector<8x32xf32>
    %324 = tpu.matmul %295, %54, %cst_112 {dimension_numbers = #tpu.dot_dimension_numbers<[1], [0], [0], [1], [0, 0, 1, 1], [], []>} : vector<8x32xf32>, vector<32x32xf32>, vector<8x32xf32> -> vector<8x32xf32>
    %325 = arith.addf %314, %324 : vector<8x32xf32>
    %326 = arith.negf %325 : vector<8x32xf32>
    %327 = math.exp %326 : vector<8x32xf32>
    %cst_113 = arith.constant 1.000000e+00 : f32
    %328 = vector.broadcast %cst_113 : f32 to vector<8x32xf32>
    %329 = arith.addf %328, %327 : vector<8x32xf32>
    %330 = arith.divf %328, %329 : vector<8x32xf32>
    %cst_114 = arith.constant dense<0.000000e+00> : vector<8x32xf32>
    %331 = tpu.matmul %295, %56, %cst_114 {dimension_numbers = #tpu.dot_dimension_numbers<[1], [0], [0], [1], [0, 0, 1, 1], [], []>} : vector<8x32xf32>, vector<32x32xf32>, vector<8x32xf32> -> vector<8x32xf32>
    %332 = arith.addf %331, %66 : vector<8x32xf32>
    %333 = arith.mulf %323, %332 : vector<8x32xf32>
    %334 = arith.addf %316, %333 : vector<8x32xf32>
    %335 = math.tanh %334 : vector<8x32xf32>
    %cst_115 = arith.constant 1.000000e+00 : f32
    %336 = vector.broadcast %cst_115 : f32 to vector<8x32xf32>
    %337 = arith.subf %336, %330 : vector<8x32xf32>
    %338 = arith.mulf %337, %335 : vector<8x32xf32>
    %339 = arith.mulf %330, %295 : vector<8x32xf32>
    %340 = arith.addf %338, %339 : vector<8x32xf32>
    %341 = vector.extract_strided_slice %34 {offsets = [4, 0, 0], sizes = [1, 8, 32], strides = [1, 1, 1]} : vector<8x8x32xf32> to vector<1x8x32xf32>
    %342 = vector.shape_cast %341 : vector<1x8x32xf32> to vector<8x32xf32>
    %343 = vector.extract_strided_slice %42 {offsets = [4, 0, 0], sizes = [1, 8, 32], strides = [1, 1, 1]} : vector<8x8x32xf32> to vector<1x8x32xf32>
    %344 = vector.shape_cast %343 : vector<1x8x32xf32> to vector<8x32xf32>
    %345 = vector.extract_strided_slice %50 {offsets = [4, 0, 0], sizes = [1, 8, 32], strides = [1, 1, 1]} : vector<8x8x32xf32> to vector<1x8x32xf32>
    %346 = vector.shape_cast %345 : vector<1x8x32xf32> to vector<8x32xf32>
    %cst_116 = arith.constant dense<0.000000e+00> : vector<8x32xf32>
    %347 = tpu.matmul %298, %58, %cst_116 {dimension_numbers = #tpu.dot_dimension_numbers<[1], [0], [0], [1], [0, 0, 1, 1], [], []>} : vector<8x32xf32>, vector<32x32xf32>, vector<8x32xf32> -> vector<8x32xf32>
    %348 = arith.addf %342, %347 : vector<8x32xf32>
    %349 = arith.negf %348 : vector<8x32xf32>
    %350 = math.exp %349 : vector<8x32xf32>
    %cst_117 = arith.constant 1.000000e+00 : f32
    %351 = vector.broadcast %cst_117 : f32 to vector<8x32xf32>
    %352 = arith.addf %351, %350 : vector<8x32xf32>
    %353 = arith.divf %351, %352 : vector<8x32xf32>
    %cst_118 = arith.constant dense<0.000000e+00> : vector<8x32xf32>
    %354 = tpu.matmul %298, %60, %cst_118 {dimension_numbers = #tpu.dot_dimension_numbers<[1], [0], [0], [1], [0, 0, 1, 1], [], []>} : vector<8x32xf32>, vector<32x32xf32>, vector<8x32xf32> -> vector<8x32xf32>
    %355 = arith.addf %344, %354 : vector<8x32xf32>
    %356 = arith.negf %355 : vector<8x32xf32>
    %357 = math.exp %356 : vector<8x32xf32>
    %cst_119 = arith.constant 1.000000e+00 : f32
    %358 = vector.broadcast %cst_119 : f32 to vector<8x32xf32>
    %359 = arith.addf %358, %357 : vector<8x32xf32>
    %360 = arith.divf %358, %359 : vector<8x32xf32>
    %cst_120 = arith.constant dense<0.000000e+00> : vector<8x32xf32>
    %361 = tpu.matmul %298, %62, %cst_120 {dimension_numbers = #tpu.dot_dimension_numbers<[1], [0], [0], [1], [0, 0, 1, 1], [], []>} : vector<8x32xf32>, vector<32x32xf32>, vector<8x32xf32> -> vector<8x32xf32>
    %362 = arith.addf %361, %70 : vector<8x32xf32>
    %363 = arith.mulf %353, %362 : vector<8x32xf32>
    %364 = arith.addf %346, %363 : vector<8x32xf32>
    %365 = math.tanh %364 : vector<8x32xf32>
    %cst_121 = arith.constant 1.000000e+00 : f32
    %366 = vector.broadcast %cst_121 : f32 to vector<8x32xf32>
    %367 = arith.subf %366, %360 : vector<8x32xf32>
    %368 = arith.mulf %367, %365 : vector<8x32xf32>
    %369 = arith.mulf %360, %298 : vector<8x32xf32>
    %370 = arith.addf %368, %369 : vector<8x32xf32>
    %371 = vector.shape_cast %308 : vector<8x1xi1> to vector<8x1xi1>
    %372 = vector.broadcast %371 : vector<8x1xi1> to vector<8x32xi1>
    %373 = arith.select %372, %340, %295 : vector<8x32xi1>, vector<8x32xf32>
    %374 = vector.shape_cast %310 : vector<8x1xi1> to vector<8x1xi1>
    %375 = vector.broadcast %374 : vector<8x1xi1> to vector<8x32xi1>
    %376 = arith.select %375, %370, %298 : vector<8x32xi1>, vector<8x32xf32>
    %cst_122 = arith.constant 0.000000e+00 : f32
    %377 = vector.shape_cast %308 : vector<8x1xi1> to vector<8x1xi1>
    %378 = vector.broadcast %377 : vector<8x1xi1> to vector<8x32xi1>
    %379 = vector.broadcast %cst_122 : f32 to vector<8x32xf32>
    %380 = arith.select %378, %373, %379 : vector<8x32xi1>, vector<8x32xf32>
    %cst_123 = arith.constant 0.000000e+00 : f32
    %381 = vector.shape_cast %310 : vector<8x1xi1> to vector<8x1xi1>
    %382 = vector.broadcast %381 : vector<8x1xi1> to vector<8x32xi1>
    %383 = vector.broadcast %cst_123 : f32 to vector<8x32xf32>
    %384 = arith.select %382, %376, %383 : vector<8x32xi1>, vector<8x32xf32>
    %c4_i32_124 = arith.constant 4 : i32
    %385 = vector.broadcast %c4_i32_124 : i32 to vector<8x1xi32>
    %386 = arith.cmpi sgt, %0, %385 : vector<8x1xi32>
    %c3_i32_125 = arith.constant 3 : i32
    %387 = vector.broadcast %c3_i32_125 : i32 to vector<8x1xi32>
    %388 = arith.cmpi sgt, %0, %387 : vector<8x1xi32>
    %389 = vector.extract_strided_slice %10 {offsets = [4, 0, 0], sizes = [1, 8, 32], strides = [1, 1, 1]} : vector<8x8x32xf32> to vector<1x8x32xf32>
    %390 = vector.shape_cast %389 : vector<1x8x32xf32> to vector<8x32xf32>
    %391 = vector.extract_strided_slice %18 {offsets = [4, 0, 0], sizes = [1, 8, 32], strides = [1, 1, 1]} : vector<8x8x32xf32> to vector<1x8x32xf32>
    %392 = vector.shape_cast %391 : vector<1x8x32xf32> to vector<8x32xf32>
    %393 = vector.extract_strided_slice %26 {offsets = [4, 0, 0], sizes = [1, 8, 32], strides = [1, 1, 1]} : vector<8x8x32xf32> to vector<1x8x32xf32>
    %394 = vector.shape_cast %393 : vector<1x8x32xf32> to vector<8x32xf32>
    %cst_126 = arith.constant dense<0.000000e+00> : vector<8x32xf32>
    %395 = tpu.matmul %373, %52, %cst_126 {dimension_numbers = #tpu.dot_dimension_numbers<[1], [0], [0], [1], [0, 0, 1, 1], [], []>} : vector<8x32xf32>, vector<32x32xf32>, vector<8x32xf32> -> vector<8x32xf32>
    %396 = arith.addf %390, %395 : vector<8x32xf32>
    %397 = arith.negf %396 : vector<8x32xf32>
    %398 = math.exp %397 : vector<8x32xf32>
    %cst_127 = arith.constant 1.000000e+00 : f32
    %399 = vector.broadcast %cst_127 : f32 to vector<8x32xf32>
    %400 = arith.addf %399, %398 : vector<8x32xf32>
    %401 = arith.divf %399, %400 : vector<8x32xf32>
    %cst_128 = arith.constant dense<0.000000e+00> : vector<8x32xf32>
    %402 = tpu.matmul %373, %54, %cst_128 {dimension_numbers = #tpu.dot_dimension_numbers<[1], [0], [0], [1], [0, 0, 1, 1], [], []>} : vector<8x32xf32>, vector<32x32xf32>, vector<8x32xf32> -> vector<8x32xf32>
    %403 = arith.addf %392, %402 : vector<8x32xf32>
    %404 = arith.negf %403 : vector<8x32xf32>
    %405 = math.exp %404 : vector<8x32xf32>
    %cst_129 = arith.constant 1.000000e+00 : f32
    %406 = vector.broadcast %cst_129 : f32 to vector<8x32xf32>
    %407 = arith.addf %406, %405 : vector<8x32xf32>
    %408 = arith.divf %406, %407 : vector<8x32xf32>
    %cst_130 = arith.constant dense<0.000000e+00> : vector<8x32xf32>
    %409 = tpu.matmul %373, %56, %cst_130 {dimension_numbers = #tpu.dot_dimension_numbers<[1], [0], [0], [1], [0, 0, 1, 1], [], []>} : vector<8x32xf32>, vector<32x32xf32>, vector<8x32xf32> -> vector<8x32xf32>
    %410 = arith.addf %409, %66 : vector<8x32xf32>
    %411 = arith.mulf %401, %410 : vector<8x32xf32>
    %412 = arith.addf %394, %411 : vector<8x32xf32>
    %413 = math.tanh %412 : vector<8x32xf32>
    %cst_131 = arith.constant 1.000000e+00 : f32
    %414 = vector.broadcast %cst_131 : f32 to vector<8x32xf32>
    %415 = arith.subf %414, %408 : vector<8x32xf32>
    %416 = arith.mulf %415, %413 : vector<8x32xf32>
    %417 = arith.mulf %408, %373 : vector<8x32xf32>
    %418 = arith.addf %416, %417 : vector<8x32xf32>
    %419 = vector.extract_strided_slice %34 {offsets = [3, 0, 0], sizes = [1, 8, 32], strides = [1, 1, 1]} : vector<8x8x32xf32> to vector<1x8x32xf32>
    %420 = vector.shape_cast %419 : vector<1x8x32xf32> to vector<8x32xf32>
    %421 = vector.extract_strided_slice %42 {offsets = [3, 0, 0], sizes = [1, 8, 32], strides = [1, 1, 1]} : vector<8x8x32xf32> to vector<1x8x32xf32>
    %422 = vector.shape_cast %421 : vector<1x8x32xf32> to vector<8x32xf32>
    %423 = vector.extract_strided_slice %50 {offsets = [3, 0, 0], sizes = [1, 8, 32], strides = [1, 1, 1]} : vector<8x8x32xf32> to vector<1x8x32xf32>
    %424 = vector.shape_cast %423 : vector<1x8x32xf32> to vector<8x32xf32>
    %cst_132 = arith.constant dense<0.000000e+00> : vector<8x32xf32>
    %425 = tpu.matmul %376, %58, %cst_132 {dimension_numbers = #tpu.dot_dimension_numbers<[1], [0], [0], [1], [0, 0, 1, 1], [], []>} : vector<8x32xf32>, vector<32x32xf32>, vector<8x32xf32> -> vector<8x32xf32>
    %426 = arith.addf %420, %425 : vector<8x32xf32>
    %427 = arith.negf %426 : vector<8x32xf32>
    %428 = math.exp %427 : vector<8x32xf32>
    %cst_133 = arith.constant 1.000000e+00 : f32
    %429 = vector.broadcast %cst_133 : f32 to vector<8x32xf32>
    %430 = arith.addf %429, %428 : vector<8x32xf32>
    %431 = arith.divf %429, %430 : vector<8x32xf32>
    %cst_134 = arith.constant dense<0.000000e+00> : vector<8x32xf32>
    %432 = tpu.matmul %376, %60, %cst_134 {dimension_numbers = #tpu.dot_dimension_numbers<[1], [0], [0], [1], [0, 0, 1, 1], [], []>} : vector<8x32xf32>, vector<32x32xf32>, vector<8x32xf32> -> vector<8x32xf32>
    %433 = arith.addf %422, %432 : vector<8x32xf32>
    %434 = arith.negf %433 : vector<8x32xf32>
    %435 = math.exp %434 : vector<8x32xf32>
    %cst_135 = arith.constant 1.000000e+00 : f32
    %436 = vector.broadcast %cst_135 : f32 to vector<8x32xf32>
    %437 = arith.addf %436, %435 : vector<8x32xf32>
    %438 = arith.divf %436, %437 : vector<8x32xf32>
    %cst_136 = arith.constant dense<0.000000e+00> : vector<8x32xf32>
    %439 = tpu.matmul %376, %62, %cst_136 {dimension_numbers = #tpu.dot_dimension_numbers<[1], [0], [0], [1], [0, 0, 1, 1], [], []>} : vector<8x32xf32>, vector<32x32xf32>, vector<8x32xf32> -> vector<8x32xf32>
    %440 = arith.addf %439, %70 : vector<8x32xf32>
    %441 = arith.mulf %431, %440 : vector<8x32xf32>
    %442 = arith.addf %424, %441 : vector<8x32xf32>
    %443 = math.tanh %442 : vector<8x32xf32>
    %cst_137 = arith.constant 1.000000e+00 : f32
    %444 = vector.broadcast %cst_137 : f32 to vector<8x32xf32>
    %445 = arith.subf %444, %438 : vector<8x32xf32>
    %446 = arith.mulf %445, %443 : vector<8x32xf32>
    %447 = arith.mulf %438, %376 : vector<8x32xf32>
    %448 = arith.addf %446, %447 : vector<8x32xf32>
    %449 = vector.shape_cast %386 : vector<8x1xi1> to vector<8x1xi1>
    %450 = vector.broadcast %449 : vector<8x1xi1> to vector<8x32xi1>
    %451 = arith.select %450, %418, %373 : vector<8x32xi1>, vector<8x32xf32>
    %452 = vector.shape_cast %388 : vector<8x1xi1> to vector<8x1xi1>
    %453 = vector.broadcast %452 : vector<8x1xi1> to vector<8x32xi1>
    %454 = arith.select %453, %448, %376 : vector<8x32xi1>, vector<8x32xf32>
    %cst_138 = arith.constant 0.000000e+00 : f32
    %455 = vector.shape_cast %386 : vector<8x1xi1> to vector<8x1xi1>
    %456 = vector.broadcast %455 : vector<8x1xi1> to vector<8x32xi1>
    %457 = vector.broadcast %cst_138 : f32 to vector<8x32xf32>
    %458 = arith.select %456, %451, %457 : vector<8x32xi1>, vector<8x32xf32>
    %cst_139 = arith.constant 0.000000e+00 : f32
    %459 = vector.shape_cast %388 : vector<8x1xi1> to vector<8x1xi1>
    %460 = vector.broadcast %459 : vector<8x1xi1> to vector<8x32xi1>
    %461 = vector.broadcast %cst_139 : f32 to vector<8x32xf32>
    %462 = arith.select %460, %454, %461 : vector<8x32xi1>, vector<8x32xf32>
    %c5_i32_140 = arith.constant 5 : i32
    %463 = vector.broadcast %c5_i32_140 : i32 to vector<8x1xi32>
    %464 = arith.cmpi sgt, %0, %463 : vector<8x1xi32>
    %c2_i32_141 = arith.constant 2 : i32
    %465 = vector.broadcast %c2_i32_141 : i32 to vector<8x1xi32>
    %466 = arith.cmpi sgt, %0, %465 : vector<8x1xi32>
    %467 = vector.extract_strided_slice %10 {offsets = [5, 0, 0], sizes = [1, 8, 32], strides = [1, 1, 1]} : vector<8x8x32xf32> to vector<1x8x32xf32>
    %468 = vector.shape_cast %467 : vector<1x8x32xf32> to vector<8x32xf32>
    %469 = vector.extract_strided_slice %18 {offsets = [5, 0, 0], sizes = [1, 8, 32], strides = [1, 1, 1]} : vector<8x8x32xf32> to vector<1x8x32xf32>
    %470 = vector.shape_cast %469 : vector<1x8x32xf32> to vector<8x32xf32>
    %471 = vector.extract_strided_slice %26 {offsets = [5, 0, 0], sizes = [1, 8, 32], strides = [1, 1, 1]} : vector<8x8x32xf32> to vector<1x8x32xf32>
    %472 = vector.shape_cast %471 : vector<1x8x32xf32> to vector<8x32xf32>
    %cst_142 = arith.constant dense<0.000000e+00> : vector<8x32xf32>
    %473 = tpu.matmul %451, %52, %cst_142 {dimension_numbers = #tpu.dot_dimension_numbers<[1], [0], [0], [1], [0, 0, 1, 1], [], []>} : vector<8x32xf32>, vector<32x32xf32>, vector<8x32xf32> -> vector<8x32xf32>
    %474 = arith.addf %468, %473 : vector<8x32xf32>
    %475 = arith.negf %474 : vector<8x32xf32>
    %476 = math.exp %475 : vector<8x32xf32>
    %cst_143 = arith.constant 1.000000e+00 : f32
    %477 = vector.broadcast %cst_143 : f32 to vector<8x32xf32>
    %478 = arith.addf %477, %476 : vector<8x32xf32>
    %479 = arith.divf %477, %478 : vector<8x32xf32>
    %cst_144 = arith.constant dense<0.000000e+00> : vector<8x32xf32>
    %480 = tpu.matmul %451, %54, %cst_144 {dimension_numbers = #tpu.dot_dimension_numbers<[1], [0], [0], [1], [0, 0, 1, 1], [], []>} : vector<8x32xf32>, vector<32x32xf32>, vector<8x32xf32> -> vector<8x32xf32>
    %481 = arith.addf %470, %480 : vector<8x32xf32>
    %482 = arith.negf %481 : vector<8x32xf32>
    %483 = math.exp %482 : vector<8x32xf32>
    %cst_145 = arith.constant 1.000000e+00 : f32
    %484 = vector.broadcast %cst_145 : f32 to vector<8x32xf32>
    %485 = arith.addf %484, %483 : vector<8x32xf32>
    %486 = arith.divf %484, %485 : vector<8x32xf32>
    %cst_146 = arith.constant dense<0.000000e+00> : vector<8x32xf32>
    %487 = tpu.matmul %451, %56, %cst_146 {dimension_numbers = #tpu.dot_dimension_numbers<[1], [0], [0], [1], [0, 0, 1, 1], [], []>} : vector<8x32xf32>, vector<32x32xf32>, vector<8x32xf32> -> vector<8x32xf32>
    %488 = arith.addf %487, %66 : vector<8x32xf32>
    %489 = arith.mulf %479, %488 : vector<8x32xf32>
    %490 = arith.addf %472, %489 : vector<8x32xf32>
    %491 = math.tanh %490 : vector<8x32xf32>
    %cst_147 = arith.constant 1.000000e+00 : f32
    %492 = vector.broadcast %cst_147 : f32 to vector<8x32xf32>
    %493 = arith.subf %492, %486 : vector<8x32xf32>
    %494 = arith.mulf %493, %491 : vector<8x32xf32>
    %495 = arith.mulf %486, %451 : vector<8x32xf32>
    %496 = arith.addf %494, %495 : vector<8x32xf32>
    %497 = vector.extract_strided_slice %34 {offsets = [2, 0, 0], sizes = [1, 8, 32], strides = [1, 1, 1]} : vector<8x8x32xf32> to vector<1x8x32xf32>
    %498 = vector.shape_cast %497 : vector<1x8x32xf32> to vector<8x32xf32>
    %499 = vector.extract_strided_slice %42 {offsets = [2, 0, 0], sizes = [1, 8, 32], strides = [1, 1, 1]} : vector<8x8x32xf32> to vector<1x8x32xf32>
    %500 = vector.shape_cast %499 : vector<1x8x32xf32> to vector<8x32xf32>
    %501 = vector.extract_strided_slice %50 {offsets = [2, 0, 0], sizes = [1, 8, 32], strides = [1, 1, 1]} : vector<8x8x32xf32> to vector<1x8x32xf32>
    %502 = vector.shape_cast %501 : vector<1x8x32xf32> to vector<8x32xf32>
    %cst_148 = arith.constant dense<0.000000e+00> : vector<8x32xf32>
    %503 = tpu.matmul %454, %58, %cst_148 {dimension_numbers = #tpu.dot_dimension_numbers<[1], [0], [0], [1], [0, 0, 1, 1], [], []>} : vector<8x32xf32>, vector<32x32xf32>, vector<8x32xf32> -> vector<8x32xf32>
    %504 = arith.addf %498, %503 : vector<8x32xf32>
    %505 = arith.negf %504 : vector<8x32xf32>
    %506 = math.exp %505 : vector<8x32xf32>
    %cst_149 = arith.constant 1.000000e+00 : f32
    %507 = vector.broadcast %cst_149 : f32 to vector<8x32xf32>
    %508 = arith.addf %507, %506 : vector<8x32xf32>
    %509 = arith.divf %507, %508 : vector<8x32xf32>
    %cst_150 = arith.constant dense<0.000000e+00> : vector<8x32xf32>
    %510 = tpu.matmul %454, %60, %cst_150 {dimension_numbers = #tpu.dot_dimension_numbers<[1], [0], [0], [1], [0, 0, 1, 1], [], []>} : vector<8x32xf32>, vector<32x32xf32>, vector<8x32xf32> -> vector<8x32xf32>
    %511 = arith.addf %500, %510 : vector<8x32xf32>
    %512 = arith.negf %511 : vector<8x32xf32>
    %513 = math.exp %512 : vector<8x32xf32>
    %cst_151 = arith.constant 1.000000e+00 : f32
    %514 = vector.broadcast %cst_151 : f32 to vector<8x32xf32>
    %515 = arith.addf %514, %513 : vector<8x32xf32>
    %516 = arith.divf %514, %515 : vector<8x32xf32>
    %cst_152 = arith.constant dense<0.000000e+00> : vector<8x32xf32>
    %517 = tpu.matmul %454, %62, %cst_152 {dimension_numbers = #tpu.dot_dimension_numbers<[1], [0], [0], [1], [0, 0, 1, 1], [], []>} : vector<8x32xf32>, vector<32x32xf32>, vector<8x32xf32> -> vector<8x32xf32>
    %518 = arith.addf %517, %70 : vector<8x32xf32>
    %519 = arith.mulf %509, %518 : vector<8x32xf32>
    %520 = arith.addf %502, %519 : vector<8x32xf32>
    %521 = math.tanh %520 : vector<8x32xf32>
    %cst_153 = arith.constant 1.000000e+00 : f32
    %522 = vector.broadcast %cst_153 : f32 to vector<8x32xf32>
    %523 = arith.subf %522, %516 : vector<8x32xf32>
    %524 = arith.mulf %523, %521 : vector<8x32xf32>
    %525 = arith.mulf %516, %454 : vector<8x32xf32>
    %526 = arith.addf %524, %525 : vector<8x32xf32>
    %527 = vector.shape_cast %464 : vector<8x1xi1> to vector<8x1xi1>
    %528 = vector.broadcast %527 : vector<8x1xi1> to vector<8x32xi1>
    %529 = arith.select %528, %496, %451 : vector<8x32xi1>, vector<8x32xf32>
    %530 = vector.shape_cast %466 : vector<8x1xi1> to vector<8x1xi1>
    %531 = vector.broadcast %530 : vector<8x1xi1> to vector<8x32xi1>
    %532 = arith.select %531, %526, %454 : vector<8x32xi1>, vector<8x32xf32>
    %cst_154 = arith.constant 0.000000e+00 : f32
    %533 = vector.shape_cast %464 : vector<8x1xi1> to vector<8x1xi1>
    %534 = vector.broadcast %533 : vector<8x1xi1> to vector<8x32xi1>
    %535 = vector.broadcast %cst_154 : f32 to vector<8x32xf32>
    %536 = arith.select %534, %529, %535 : vector<8x32xi1>, vector<8x32xf32>
    %cst_155 = arith.constant 0.000000e+00 : f32
    %537 = vector.shape_cast %466 : vector<8x1xi1> to vector<8x1xi1>
    %538 = vector.broadcast %537 : vector<8x1xi1> to vector<8x32xi1>
    %539 = vector.broadcast %cst_155 : f32 to vector<8x32xf32>
    %540 = arith.select %538, %532, %539 : vector<8x32xi1>, vector<8x32xf32>
    %c6_i32_156 = arith.constant 6 : i32
    %541 = vector.broadcast %c6_i32_156 : i32 to vector<8x1xi32>
    %542 = arith.cmpi sgt, %0, %541 : vector<8x1xi32>
    %c1_i32_157 = arith.constant 1 : i32
    %543 = vector.broadcast %c1_i32_157 : i32 to vector<8x1xi32>
    %544 = arith.cmpi sgt, %0, %543 : vector<8x1xi32>
    %545 = vector.extract_strided_slice %10 {offsets = [6, 0, 0], sizes = [1, 8, 32], strides = [1, 1, 1]} : vector<8x8x32xf32> to vector<1x8x32xf32>
    %546 = vector.shape_cast %545 : vector<1x8x32xf32> to vector<8x32xf32>
    %547 = vector.extract_strided_slice %18 {offsets = [6, 0, 0], sizes = [1, 8, 32], strides = [1, 1, 1]} : vector<8x8x32xf32> to vector<1x8x32xf32>
    %548 = vector.shape_cast %547 : vector<1x8x32xf32> to vector<8x32xf32>
    %549 = vector.extract_strided_slice %26 {offsets = [6, 0, 0], sizes = [1, 8, 32], strides = [1, 1, 1]} : vector<8x8x32xf32> to vector<1x8x32xf32>
    %550 = vector.shape_cast %549 : vector<1x8x32xf32> to vector<8x32xf32>
    %cst_158 = arith.constant dense<0.000000e+00> : vector<8x32xf32>
    %551 = tpu.matmul %529, %52, %cst_158 {dimension_numbers = #tpu.dot_dimension_numbers<[1], [0], [0], [1], [0, 0, 1, 1], [], []>} : vector<8x32xf32>, vector<32x32xf32>, vector<8x32xf32> -> vector<8x32xf32>
    %552 = arith.addf %546, %551 : vector<8x32xf32>
    %553 = arith.negf %552 : vector<8x32xf32>
    %554 = math.exp %553 : vector<8x32xf32>
    %cst_159 = arith.constant 1.000000e+00 : f32
    %555 = vector.broadcast %cst_159 : f32 to vector<8x32xf32>
    %556 = arith.addf %555, %554 : vector<8x32xf32>
    %557 = arith.divf %555, %556 : vector<8x32xf32>
    %cst_160 = arith.constant dense<0.000000e+00> : vector<8x32xf32>
    %558 = tpu.matmul %529, %54, %cst_160 {dimension_numbers = #tpu.dot_dimension_numbers<[1], [0], [0], [1], [0, 0, 1, 1], [], []>} : vector<8x32xf32>, vector<32x32xf32>, vector<8x32xf32> -> vector<8x32xf32>
    %559 = arith.addf %548, %558 : vector<8x32xf32>
    %560 = arith.negf %559 : vector<8x32xf32>
    %561 = math.exp %560 : vector<8x32xf32>
    %cst_161 = arith.constant 1.000000e+00 : f32
    %562 = vector.broadcast %cst_161 : f32 to vector<8x32xf32>
    %563 = arith.addf %562, %561 : vector<8x32xf32>
    %564 = arith.divf %562, %563 : vector<8x32xf32>
    %cst_162 = arith.constant dense<0.000000e+00> : vector<8x32xf32>
    %565 = tpu.matmul %529, %56, %cst_162 {dimension_numbers = #tpu.dot_dimension_numbers<[1], [0], [0], [1], [0, 0, 1, 1], [], []>} : vector<8x32xf32>, vector<32x32xf32>, vector<8x32xf32> -> vector<8x32xf32>
    %566 = arith.addf %565, %66 : vector<8x32xf32>
    %567 = arith.mulf %557, %566 : vector<8x32xf32>
    %568 = arith.addf %550, %567 : vector<8x32xf32>
    %569 = math.tanh %568 : vector<8x32xf32>
    %cst_163 = arith.constant 1.000000e+00 : f32
    %570 = vector.broadcast %cst_163 : f32 to vector<8x32xf32>
    %571 = arith.subf %570, %564 : vector<8x32xf32>
    %572 = arith.mulf %571, %569 : vector<8x32xf32>
    %573 = arith.mulf %564, %529 : vector<8x32xf32>
    %574 = arith.addf %572, %573 : vector<8x32xf32>
    %575 = vector.extract_strided_slice %34 {offsets = [1, 0, 0], sizes = [1, 8, 32], strides = [1, 1, 1]} : vector<8x8x32xf32> to vector<1x8x32xf32>
    %576 = vector.shape_cast %575 : vector<1x8x32xf32> to vector<8x32xf32>
    %577 = vector.extract_strided_slice %42 {offsets = [1, 0, 0], sizes = [1, 8, 32], strides = [1, 1, 1]} : vector<8x8x32xf32> to vector<1x8x32xf32>
    %578 = vector.shape_cast %577 : vector<1x8x32xf32> to vector<8x32xf32>
    %579 = vector.extract_strided_slice %50 {offsets = [1, 0, 0], sizes = [1, 8, 32], strides = [1, 1, 1]} : vector<8x8x32xf32> to vector<1x8x32xf32>
    %580 = vector.shape_cast %579 : vector<1x8x32xf32> to vector<8x32xf32>
    %cst_164 = arith.constant dense<0.000000e+00> : vector<8x32xf32>
    %581 = tpu.matmul %532, %58, %cst_164 {dimension_numbers = #tpu.dot_dimension_numbers<[1], [0], [0], [1], [0, 0, 1, 1], [], []>} : vector<8x32xf32>, vector<32x32xf32>, vector<8x32xf32> -> vector<8x32xf32>
    %582 = arith.addf %576, %581 : vector<8x32xf32>
    %583 = arith.negf %582 : vector<8x32xf32>
    %584 = math.exp %583 : vector<8x32xf32>
    %cst_165 = arith.constant 1.000000e+00 : f32
    %585 = vector.broadcast %cst_165 : f32 to vector<8x32xf32>
    %586 = arith.addf %585, %584 : vector<8x32xf32>
    %587 = arith.divf %585, %586 : vector<8x32xf32>
    %cst_166 = arith.constant dense<0.000000e+00> : vector<8x32xf32>
    %588 = tpu.matmul %532, %60, %cst_166 {dimension_numbers = #tpu.dot_dimension_numbers<[1], [0], [0], [1], [0, 0, 1, 1], [], []>} : vector<8x32xf32>, vector<32x32xf32>, vector<8x32xf32> -> vector<8x32xf32>
    %589 = arith.addf %578, %588 : vector<8x32xf32>
    %590 = arith.negf %589 : vector<8x32xf32>
    %591 = math.exp %590 : vector<8x32xf32>
    %cst_167 = arith.constant 1.000000e+00 : f32
    %592 = vector.broadcast %cst_167 : f32 to vector<8x32xf32>
    %593 = arith.addf %592, %591 : vector<8x32xf32>
    %594 = arith.divf %592, %593 : vector<8x32xf32>
    %cst_168 = arith.constant dense<0.000000e+00> : vector<8x32xf32>
    %595 = tpu.matmul %532, %62, %cst_168 {dimension_numbers = #tpu.dot_dimension_numbers<[1], [0], [0], [1], [0, 0, 1, 1], [], []>} : vector<8x32xf32>, vector<32x32xf32>, vector<8x32xf32> -> vector<8x32xf32>
    %596 = arith.addf %595, %70 : vector<8x32xf32>
    %597 = arith.mulf %587, %596 : vector<8x32xf32>
    %598 = arith.addf %580, %597 : vector<8x32xf32>
    %599 = math.tanh %598 : vector<8x32xf32>
    %cst_169 = arith.constant 1.000000e+00 : f32
    %600 = vector.broadcast %cst_169 : f32 to vector<8x32xf32>
    %601 = arith.subf %600, %594 : vector<8x32xf32>
    %602 = arith.mulf %601, %599 : vector<8x32xf32>
    %603 = arith.mulf %594, %532 : vector<8x32xf32>
    %604 = arith.addf %602, %603 : vector<8x32xf32>
    %605 = vector.shape_cast %542 : vector<8x1xi1> to vector<8x1xi1>
    %606 = vector.broadcast %605 : vector<8x1xi1> to vector<8x32xi1>
    %607 = arith.select %606, %574, %529 : vector<8x32xi1>, vector<8x32xf32>
    %608 = vector.shape_cast %544 : vector<8x1xi1> to vector<8x1xi1>
    %609 = vector.broadcast %608 : vector<8x1xi1> to vector<8x32xi1>
    %610 = arith.select %609, %604, %532 : vector<8x32xi1>, vector<8x32xf32>
    %cst_170 = arith.constant 0.000000e+00 : f32
    %611 = vector.shape_cast %542 : vector<8x1xi1> to vector<8x1xi1>
    %612 = vector.broadcast %611 : vector<8x1xi1> to vector<8x32xi1>
    %613 = vector.broadcast %cst_170 : f32 to vector<8x32xf32>
    %614 = arith.select %612, %607, %613 : vector<8x32xi1>, vector<8x32xf32>
    %cst_171 = arith.constant 0.000000e+00 : f32
    %615 = vector.shape_cast %544 : vector<8x1xi1> to vector<8x1xi1>
    %616 = vector.broadcast %615 : vector<8x1xi1> to vector<8x32xi1>
    %617 = vector.broadcast %cst_171 : f32 to vector<8x32xf32>
    %618 = arith.select %616, %610, %617 : vector<8x32xi1>, vector<8x32xf32>
    %c7_i32_172 = arith.constant 7 : i32
    %619 = vector.broadcast %c7_i32_172 : i32 to vector<8x1xi32>
    %620 = arith.cmpi sgt, %0, %619 : vector<8x1xi32>
    %c0_i32_173 = arith.constant 0 : i32
    %621 = vector.broadcast %c0_i32_173 : i32 to vector<8x1xi32>
    %622 = arith.cmpi sgt, %0, %621 : vector<8x1xi32>
    %623 = vector.extract_strided_slice %10 {offsets = [7, 0, 0], sizes = [1, 8, 32], strides = [1, 1, 1]} : vector<8x8x32xf32> to vector<1x8x32xf32>
    %624 = vector.shape_cast %623 : vector<1x8x32xf32> to vector<8x32xf32>
    %625 = vector.extract_strided_slice %18 {offsets = [7, 0, 0], sizes = [1, 8, 32], strides = [1, 1, 1]} : vector<8x8x32xf32> to vector<1x8x32xf32>
    %626 = vector.shape_cast %625 : vector<1x8x32xf32> to vector<8x32xf32>
    %627 = vector.extract_strided_slice %26 {offsets = [7, 0, 0], sizes = [1, 8, 32], strides = [1, 1, 1]} : vector<8x8x32xf32> to vector<1x8x32xf32>
    %628 = vector.shape_cast %627 : vector<1x8x32xf32> to vector<8x32xf32>
    %cst_174 = arith.constant dense<0.000000e+00> : vector<8x32xf32>
    %629 = tpu.matmul %607, %52, %cst_174 {dimension_numbers = #tpu.dot_dimension_numbers<[1], [0], [0], [1], [0, 0, 1, 1], [], []>} : vector<8x32xf32>, vector<32x32xf32>, vector<8x32xf32> -> vector<8x32xf32>
    %630 = arith.addf %624, %629 : vector<8x32xf32>
    %631 = arith.negf %630 : vector<8x32xf32>
    %632 = math.exp %631 : vector<8x32xf32>
    %cst_175 = arith.constant 1.000000e+00 : f32
    %633 = vector.broadcast %cst_175 : f32 to vector<8x32xf32>
    %634 = arith.addf %633, %632 : vector<8x32xf32>
    %635 = arith.divf %633, %634 : vector<8x32xf32>
    %cst_176 = arith.constant dense<0.000000e+00> : vector<8x32xf32>
    %636 = tpu.matmul %607, %54, %cst_176 {dimension_numbers = #tpu.dot_dimension_numbers<[1], [0], [0], [1], [0, 0, 1, 1], [], []>} : vector<8x32xf32>, vector<32x32xf32>, vector<8x32xf32> -> vector<8x32xf32>
    %637 = arith.addf %626, %636 : vector<8x32xf32>
    %638 = arith.negf %637 : vector<8x32xf32>
    %639 = math.exp %638 : vector<8x32xf32>
    %cst_177 = arith.constant 1.000000e+00 : f32
    %640 = vector.broadcast %cst_177 : f32 to vector<8x32xf32>
    %641 = arith.addf %640, %639 : vector<8x32xf32>
    %642 = arith.divf %640, %641 : vector<8x32xf32>
    %cst_178 = arith.constant dense<0.000000e+00> : vector<8x32xf32>
    %643 = tpu.matmul %607, %56, %cst_178 {dimension_numbers = #tpu.dot_dimension_numbers<[1], [0], [0], [1], [0, 0, 1, 1], [], []>} : vector<8x32xf32>, vector<32x32xf32>, vector<8x32xf32> -> vector<8x32xf32>
    %644 = arith.addf %643, %66 : vector<8x32xf32>
    %645 = arith.mulf %635, %644 : vector<8x32xf32>
    %646 = arith.addf %628, %645 : vector<8x32xf32>
    %647 = math.tanh %646 : vector<8x32xf32>
    %cst_179 = arith.constant 1.000000e+00 : f32
    %648 = vector.broadcast %cst_179 : f32 to vector<8x32xf32>
    %649 = arith.subf %648, %642 : vector<8x32xf32>
    %650 = arith.mulf %649, %647 : vector<8x32xf32>
    %651 = arith.mulf %642, %607 : vector<8x32xf32>
    %652 = arith.addf %650, %651 : vector<8x32xf32>
    %653 = vector.extract_strided_slice %34 {offsets = [0, 0, 0], sizes = [1, 8, 32], strides = [1, 1, 1]} : vector<8x8x32xf32> to vector<1x8x32xf32>
    %654 = vector.shape_cast %653 : vector<1x8x32xf32> to vector<8x32xf32>
    %655 = vector.extract_strided_slice %42 {offsets = [0, 0, 0], sizes = [1, 8, 32], strides = [1, 1, 1]} : vector<8x8x32xf32> to vector<1x8x32xf32>
    %656 = vector.shape_cast %655 : vector<1x8x32xf32> to vector<8x32xf32>
    %657 = vector.extract_strided_slice %50 {offsets = [0, 0, 0], sizes = [1, 8, 32], strides = [1, 1, 1]} : vector<8x8x32xf32> to vector<1x8x32xf32>
    %658 = vector.shape_cast %657 : vector<1x8x32xf32> to vector<8x32xf32>
    %cst_180 = arith.constant dense<0.000000e+00> : vector<8x32xf32>
    %659 = tpu.matmul %610, %58, %cst_180 {dimension_numbers = #tpu.dot_dimension_numbers<[1], [0], [0], [1], [0, 0, 1, 1], [], []>} : vector<8x32xf32>, vector<32x32xf32>, vector<8x32xf32> -> vector<8x32xf32>
    %660 = arith.addf %654, %659 : vector<8x32xf32>
    %661 = arith.negf %660 : vector<8x32xf32>
    %662 = math.exp %661 : vector<8x32xf32>
    %cst_181 = arith.constant 1.000000e+00 : f32
    %663 = vector.broadcast %cst_181 : f32 to vector<8x32xf32>
    %664 = arith.addf %663, %662 : vector<8x32xf32>
    %665 = arith.divf %663, %664 : vector<8x32xf32>
    %cst_182 = arith.constant dense<0.000000e+00> : vector<8x32xf32>
    %666 = tpu.matmul %610, %60, %cst_182 {dimension_numbers = #tpu.dot_dimension_numbers<[1], [0], [0], [1], [0, 0, 1, 1], [], []>} : vector<8x32xf32>, vector<32x32xf32>, vector<8x32xf32> -> vector<8x32xf32>
    %667 = arith.addf %656, %666 : vector<8x32xf32>
    %668 = arith.negf %667 : vector<8x32xf32>
    %669 = math.exp %668 : vector<8x32xf32>
    %cst_183 = arith.constant 1.000000e+00 : f32
    %670 = vector.broadcast %cst_183 : f32 to vector<8x32xf32>
    %671 = arith.addf %670, %669 : vector<8x32xf32>
    %672 = arith.divf %670, %671 : vector<8x32xf32>
    %cst_184 = arith.constant dense<0.000000e+00> : vector<8x32xf32>
    %673 = tpu.matmul %610, %62, %cst_184 {dimension_numbers = #tpu.dot_dimension_numbers<[1], [0], [0], [1], [0, 0, 1, 1], [], []>} : vector<8x32xf32>, vector<32x32xf32>, vector<8x32xf32> -> vector<8x32xf32>
    %674 = arith.addf %673, %70 : vector<8x32xf32>
    %675 = arith.mulf %665, %674 : vector<8x32xf32>
    %676 = arith.addf %658, %675 : vector<8x32xf32>
    %677 = math.tanh %676 : vector<8x32xf32>
    %cst_185 = arith.constant 1.000000e+00 : f32
    %678 = vector.broadcast %cst_185 : f32 to vector<8x32xf32>
    %679 = arith.subf %678, %672 : vector<8x32xf32>
    %680 = arith.mulf %679, %677 : vector<8x32xf32>
    %681 = arith.mulf %672, %610 : vector<8x32xf32>
    %682 = arith.addf %680, %681 : vector<8x32xf32>
    %683 = vector.shape_cast %620 : vector<8x1xi1> to vector<8x1xi1>
    %684 = vector.broadcast %683 : vector<8x1xi1> to vector<8x32xi1>
    %685 = arith.select %684, %652, %607 : vector<8x32xi1>, vector<8x32xf32>
    %686 = vector.shape_cast %622 : vector<8x1xi1> to vector<8x1xi1>
    %687 = vector.broadcast %686 : vector<8x1xi1> to vector<8x32xi1>
    %688 = arith.select %687, %682, %610 : vector<8x32xi1>, vector<8x32xf32>
    %cst_186 = arith.constant 0.000000e+00 : f32
    %689 = vector.shape_cast %620 : vector<8x1xi1> to vector<8x1xi1>
    %690 = vector.broadcast %689 : vector<8x1xi1> to vector<8x32xi1>
    %691 = vector.broadcast %cst_186 : f32 to vector<8x32xf32>
    %692 = arith.select %690, %685, %691 : vector<8x32xi1>, vector<8x32xf32>
    %cst_187 = arith.constant 0.000000e+00 : f32
    %693 = vector.shape_cast %622 : vector<8x1xi1> to vector<8x1xi1>
    %694 = vector.broadcast %693 : vector<8x1xi1> to vector<8x32xi1>
    %695 = vector.broadcast %cst_187 : f32 to vector<8x32xf32>
    %696 = arith.select %694, %688, %695 : vector<8x32xi1>, vector<8x32xf32>
    %697 = vector.shape_cast %146 : vector<8x32xf32> to vector<1x8x32xf32>
    %698 = vector.shape_cast %224 : vector<8x32xf32> to vector<1x8x32xf32>
    %699 = vector.shape_cast %302 : vector<8x32xf32> to vector<1x8x32xf32>
    %700 = vector.shape_cast %380 : vector<8x32xf32> to vector<1x8x32xf32>
    %701 = vector.shape_cast %458 : vector<8x32xf32> to vector<1x8x32xf32>
    %702 = vector.shape_cast %536 : vector<8x32xf32> to vector<1x8x32xf32>
    %703 = vector.shape_cast %614 : vector<8x32xf32> to vector<1x8x32xf32>
    %704 = vector.shape_cast %692 : vector<8x32xf32> to vector<1x8x32xf32>
    %705 = tpu.concatenate %697, %698, %699, %700, %701, %702, %703, %704 in 0 : vector<1x8x32xf32>, vector<1x8x32xf32>, vector<1x8x32xf32>, vector<1x8x32xf32>, vector<1x8x32xf32>, vector<1x8x32xf32>, vector<1x8x32xf32>, vector<1x8x32xf32> -> vector<8x8x32xf32>
    %706 = vector.shape_cast %696 : vector<8x32xf32> to vector<1x8x32xf32>
    %707 = vector.shape_cast %618 : vector<8x32xf32> to vector<1x8x32xf32>
    %708 = vector.shape_cast %540 : vector<8x32xf32> to vector<1x8x32xf32>
    %709 = vector.shape_cast %462 : vector<8x32xf32> to vector<1x8x32xf32>
    %710 = vector.shape_cast %384 : vector<8x32xf32> to vector<1x8x32xf32>
    %711 = vector.shape_cast %306 : vector<8x32xf32> to vector<1x8x32xf32>
    %712 = vector.shape_cast %228 : vector<8x32xf32> to vector<1x8x32xf32>
    %713 = vector.shape_cast %150 : vector<8x32xf32> to vector<1x8x32xf32>
    %714 = tpu.concatenate %706, %707, %708, %709, %710, %711, %712, %713 in 0 : vector<1x8x32xf32>, vector<1x8x32xf32>, vector<1x8x32xf32>, vector<1x8x32xf32>, vector<1x8x32xf32>, vector<1x8x32xf32>, vector<1x8x32xf32>, vector<1x8x32xf32> -> vector<8x8x32xf32>
    %715 = tpu.concatenate %705, %714 in 2 : vector<8x8x32xf32>, vector<8x8x32xf32> -> vector<8x8x64xf32>
    %c0_188 = arith.constant 0 : index
    %c0_189 = arith.constant 0 : index
    %c0_190 = arith.constant 0 : index
    %716 = vector.load %arg8[%c0_188, %c0_189, %c0_190] : memref<8x8x64xf32, #tpu.memory_space<vmem>>, vector<8x8x64xf32>
    tpu.vector_store %arg8[%c0_188, %c0_189, %c0_190], %715 {strides = array<i32>} : memref<8x8x64xf32, #tpu.memory_space<vmem>>, vector<8x8x64xf32>,
    return
  }
}

</mosaic_0001>

<bundles_post_ra>
// kernel: tpu_custom_call.1
= control target key start
LH: loop header
LB: loop body
LE: loop exit
PB: predicated region body
PF: predicated region fallthrough
CT: control target
= control target key end

     0   :  { %13 = vsyncpa [#allocation3], 0  ;;  %s7504_s0 = inlined_call_operand.hbm [shape: f32[8,8,32], index: 0, kind: input, shape index: {}]   ;;  %s7505_s1 = inlined_call_operand.vmem [shape: s32[8,1], index: 1, kind: input, shape index: {}]   ;;  %s7506_s2 = inlined_call_operand.hbm [shape: f32[3,32,32], index: 2, kind: input, shape index: {}]   ;;  %s7507_s3 = inlined_call_operand.hbm [shape: f32[3,32,32], index: 3, kind: input, shape index: {}]   ;;  %s7508_s4 = inlined_call_operand.vmem [shape: f32[4,1,32], index: 4, kind: input, shape index: {}]   ;;  %s7509_s5 = inlined_call_operand.hbm [shape: f32[3,32,32], index: 5, kind: input, shape index: {}]   ;;  %s7510_s6 = inlined_call_operand.hbm [shape: f32[3,32,32], index: 6, kind: input, shape index: {}]   ;;  %s7511_s7 = inlined_call_operand.vmem [shape: f32[4,1,32], index: 7, kind: input, shape index: {}]   ;;  %s7512_s8 = inlined_call_operand.hbm [shape: f32[8,8,64], index: 8, kind: output, shape index: {}]  }
   0x1   :  { %14 = vsyncpa [#allocation6], 0 }
   0x2   :  { %15 = vsyncpa [#allocation9], 0 }
   0x3   :  { %16 = vsyncpa [#allocation4], 0  ;;  %s6190_s27 = smov [#allocation5]   ;;  %s6191_s29 = smov [#allocation8]  }
   0x4   :  { %s36_s28 = sshll.u32 %s6190_s27, 4  ;;  %s62_s30 = sshll.u32 %s6191_s29, 4  ;;  %s37_s28 = int_to_ptr.vmem [resolvable:$true] %s36_s28  ;;  %s63_s30 = int_to_ptr.vmem [resolvable:$true] %s62_s30 }
   0x5   :  { %s6070_s9 = scalar_lea.vmem %s37_s28, 1536  ;;  %p6075_p1 = scmp.lt.s32.totalorder %s37_s28, %s37_s28 }
   0x6   :  { %p6071_p0 = scmp.ne.s32.totalorder %s37_s28, %s6070_s9  ;;  %p6076_p2 = scmp.lt.s32.totalorder %s6070_s9, %s6070_s9 }
   0x8   :  { %p6077_p3 = por %p6076_p2, %p6075_p1 }
   0xa   :  { %p6078_p4 = pnand %p6077_p3, %p6071_p0 }
   0xc   :  { %6081 = shalt.err (!%p6078_p4)
}
   0xd   :  { %s6192_s10 = smov 128   ;;  %s6193_s11 = smov 8  }
   0xe   :  { %42 = dma.hbm_to_vmem [thread:$0]  %s7506_s2, 1536, %s37_s28, [#allocation6], %s6192_s10, %s6192_s10, %s6193_s11  }
   0xf   :  { %s6090_s14 = scalar_lea.vmem %s63_s30, 1536  ;;  %p6095_p6 = scmp.lt.s32.totalorder %s63_s30, %s63_s30 }
  0x10   :  { %p6091_p5 = scmp.ne.s32.totalorder %s63_s30, %s6090_s14  ;;  %p6096_p7 = scmp.lt.s32.totalorder %s6090_s14, %s6090_s14 }
  0x12   :  { %p6097_p8 = por %p6096_p7, %p6095_p6 }
  0x14   :  { %p6098_p9 = pnand %p6097_p8, %p6091_p5 }
  0x16   :  { %6101 = shalt.err (!%p6098_p9)
}
  0x17   :  { %68 = dma.hbm_to_vmem [thread:$0]  %s7509_s5, 1536, %s63_s30, [#allocation9], %s6192_s10, %s6192_s10, %s6193_s11  }
  0x18   :  { %s6194_s17 = smov [#allocation2]   ;;  %s6195_s19 = smov [#allocation7]  }
  0x19   :  { %s22_s18 = sshll.u32 %s6194_s17, 4  ;;  %s48_s20 = sshll.u32 %s6195_s19, 4  ;;  %s23_s18 = int_to_ptr.vmem [resolvable:$true] %s22_s18  ;;  %s49_s20 = int_to_ptr.vmem [resolvable:$true] %s48_s20 }
  0x1a   :  { %s6110_s2 = scalar_lea.vmem %s23_s18, 1024  ;;  %p6115_p11 = scmp.lt.s32.totalorder %s23_s18, %s23_s18 }
  0x1b   :  { %p6111_p10 = scmp.ne.s32.totalorder %s23_s18, %s6110_s2  ;;  %p6116_p12 = scmp.lt.s32.totalorder %s6110_s2, %s6110_s2 }
  0x1d   :  { %p6117_p13 = por %p6116_p12, %p6115_p11 }
  0x1f   :  { %p6118_p0 = pnand %p6117_p13, %p6111_p10 }
  0x21   :  { %6121 = shalt.err (!%p6118_p0)
}
  0x22   :  { %28 = dma.hbm_to_vmem [thread:$0]  %s7504_s0, 1024, %s23_s18, [#allocation3], %s6192_s10, %s6192_s10, %s6193_s11  }
  0x23   :  { %s6130_s5 = scalar_lea.vmem %s49_s20, 1536  ;;  %p6135_p2 = scmp.lt.s32.totalorder %s49_s20, %s49_s20 }
  0x24   :  { %p6131_p1 = scmp.ne.s32.totalorder %s49_s20, %s6130_s5  ;;  %p6136_p3 = scmp.lt.s32.totalorder %s6130_s5, %s6130_s5 }
  0x26   :  { %p6137_p4 = por %p6136_p3, %p6135_p2 }
  0x28   :  { %p6138_p5 = pnand %p6137_p4, %p6131_p1 }
  0x2a   :  { %6141 = shalt.err (!%p6138_p5)
}
  0x2b   :  { %54 = dma.hbm_to_vmem [thread:$0]  %s7507_s3, 1536, %s49_s20, [#allocation6], %s6192_s10, %s6192_s10, %s6193_s11  }
  0x2c   :  { %s6196_s25 = smov [#allocation10]  }
  0x2d   :  { %s74_s26 = sshll.u32 %s6196_s25, 4  ;;  %s75_s26 = int_to_ptr.vmem [resolvable:$true] %s74_s26 }
  0x2e   :  { %s6150_s27 = scalar_lea.vmem %s75_s26, 1536  ;;  %p6155_p7 = scmp.lt.s32.totalorder %s75_s26, %s75_s26 }
  0x2f   :  { %p6151_p6 = scmp.ne.s32.totalorder %s75_s26, %s6150_s27  ;;  %p6156_p8 = scmp.lt.s32.totalorder %s6150_s27, %s6150_s27 }
  0x31   :  { %p6157_p9 = por %p6156_p8, %p6155_p7 }
  0x33   :  { %p6158_p10 = pnand %p6157_p9, %p6151_p6 }
  0x35   :  { %6161 = shalt.err (!%p6158_p10)
}
  0x36   :  { %80 = dma.hbm_to_vmem [thread:$0]  %s7510_s6, 1536, %s75_s26, [#allocation9], %s6192_s10, %s6192_s10, %s6193_s11  }
  0x37   :  { %6182 = dma.done.wait [#allocation3], 1024  }
  0x38   :  { %6183 = vsyncadd [#allocation3], 4294966272 }
  0x39   :  { %6184 = dma.done.wait [#allocation6], 3072  }
  0x3a   :  { %6185 = vsyncadd [#allocation6], 4294964224 }
  0x3b   :  { %6186 = dma.done.wait [#allocation9], 3072  }
  0x3c   :  { %6187 = vsyncadd [#allocation9], 4294964224  ;;  %v6197_v0 = vmov 0   ;;  %v110_v1 = vld [vmem:[#allocation5 + $0x18] sm:$0xff]  ;;  %v109_v3 = vld [vmem:[#allocation5 + $0x10] sm:$0xff]  ;;  %vm118_vm0 = vcmask 261120  }
  0x3d   :  { %5872 = vset.pattern.permute.xlu0 %v6197_v0  ;;  %5873 = vset.pattern.permute.xlu1 %v6197_v0  ;;  %v252_v2 = vld [vmem:[#allocation5 + $0x38] sm:$0xff]  ;;  %v251_v4 = vld [vmem:[#allocation5 + $0x30] sm:$0xff]  ;;  %v108_v5 = vld [vmem:[#allocation5 + $0x8] sm:$0xff]  ;;  %v7513_v35 = vmov 0.0   ;;  %vm6199_vm1 = vmmov 0   ;;  %s6200_s5 = smov 32  }
  0x3e   :  { %5212 = vmatprep.subr.mxu0 %v110_v1  ;;  %5232 = vmatprep.subr.mxu1 %v252_v2  ;;  %v250_v6 = vld [vmem:[#allocation5 + $0x28] sm:$0xff]  ;;  %v107_v7 = vld [vmem:[#allocation5] sm:$0xff]  ;;  %v370_v11 = vld [vmem:[#allocation5 + $0x58] sm:$0xff] }
  0x3f   :  { %5213 = vmatpush3.msra.mxu0 %v110_v1  ;;  %5233 = vmatpush3.msra.mxu1 %v252_v2  ;;  %v249_v8 = vld [vmem:[#allocation5 + $0x20] sm:$0xff]  ;;  %v6281_v10 = vld [vmem:[#allocation2 + $0x8] sm:$0xff]  ;;  %v487_v12 = vld [vmem:[#allocation8 + $0x18] sm:$0xff] }
  0x40   :  { %5214 = vmatprep.subr.mxu0 %v109_v3  ;;  %5234 = vmatprep.subr.mxu1 %v251_v4  ;;  %v6279_v9 = vld [vmem:[#allocation2] sm:$0xff]  ;;  %v6291_v13 = vld [vmem:[#allocation2 + $0x10] sm:$0xff]  ;;  %v6293_v14 = vld [vmem:[#allocation2 + $0x18] sm:$0xff] }
  0x41   :  { %5215 = vmatpush3.msra.mxu0 %v109_v3  ;;  %5235 = vmatpush3.msra.mxu1 %v251_v4  ;;  %v369_v15 = vld [vmem:[#allocation5 + $0x50] sm:$0xff]  ;;  %v6303_v17 = vld [vmem:[#allocation2 + $0x20] sm:$0xff]  ;;  %v6305_v18 = vld [vmem:[#allocation2 + $0x28] sm:$0xff] }
  0x42   :  { %5216 = vmatprep.subr.mxu0 %v108_v5  ;;  %5236 = vmatprep.subr.mxu1 %v250_v6  ;;  %v486_v16 = vld [vmem:[#allocation8 + $0x10] sm:$0xff]  ;;  %v368_v19 = vld [vmem:[#allocation5 + $0x48] sm:$0xff]  ;;  %v6317_v22 = vld [vmem:[#allocation2 + $0x38] sm:$0xff] }
  0x43   :  { %5217 = vmatpush3.msra.mxu0 %v108_v5  ;;  %5237 = vmatpush3.msra.mxu1 %v250_v6  ;;  %v485_v20 = vld [vmem:[#allocation8 + $0x8] sm:$0xff]  ;;  %v6315_v21 = vld [vmem:[#allocation2 + $0x30] sm:$0xff]  ;;  %v367_v23 = vld [vmem:[#allocation5 + $0x40] sm:$0xff] }
  0x44   :  { %5218 = vmatprep.subr.mxu0 %v107_v7  ;;  %5238 = vmatprep.subr.mxu1 %v249_v8  ;;  %v484_v24 = vld [vmem:[#allocation8] sm:$0xff]  ;;  %v604_v25 = vld [vmem:[#allocation8 + $0x38] sm:$0xff]  ;;  %v603_v27 = vld [vmem:[#allocation8 + $0x30] sm:$0xff] }
  0x45   :  { %5219 = vmatpush3.msra.mxu0 %v107_v7  ;;  %5220 = vmatprep.mubr.msk.f32.mxu0 %vm118_vm0, %v6279_v9  ;;  %v722_v26 = vld [vmem:[#allocation8 + $0x58] sm:$0xff]  ;;  %v721_v28 = vld [vmem:[#allocation8 + $0x50] sm:$0xff]  ;;  %v602_v29 = vld [vmem:[#allocation8 + $0x28] sm:$0xff] }
  0x46   :  { %5239 = vmatpush3.msra.mxu1 %v249_v8  ;;  %5240 = vmatprep.mubr.msk.f32.mxu1 %vm118_vm0, %v6279_v9  ;;  %v720_v30 = vld [vmem:[#allocation8 + $0x48] sm:$0xff]  ;;  %v601_v31 = vld [vmem:[#allocation8 + $0x20] sm:$0xff]  ;;  %v6363_v33 = vld [vmem:[#allocation7 + $0x18] sm:$0xff] }
  0x47   :  { %5221 = vmatmul.mubr.msk.f32.vlgmr.msra.gmra.mxu0 %vm118_vm0, %v6281_v10  ;;  %5241 = vmatmul.mubr.msk.f32.vlgmr.msra.gmra.mxu1 %vm118_vm0, %v6281_v10  ;;  %v719_v32 = vld [vmem:[#allocation8 + $0x40] sm:$0xff]  ;;  %v6365_v34 = vld [vmem:[#allocation7 + $0x38] sm:$0xff]  ;;  %v6379_v36 = vld [vmem:[#allocation7 + $0x10] sm:$0xff] }
  0x48   :  { %5252 = vmatprep.subr.mxu0 %v370_v11  ;;  %5272 = vmatprep.subr.mxu1 %v487_v12  ;;  %v6381_v37 = vld [vmem:[#allocation7 + $0x30] sm:$0xff]  ;;  %v6395_v38 = vld [vmem:[#allocation7 + $0x8] sm:$0xff]  ;;  %v6411_v40 = vld [vmem:[#allocation7] sm:$0xff] }
  0x49   :  { %5253 = vmatpush3.msra.mxu0 %v370_v11  ;;  %5273 = vmatpush3.msra.mxu1 %v487_v12  ;;  %v6397_v39 = vld [vmem:[#allocation7 + $0x28] sm:$0xff]  ;;  %v6413_v41 = vld [vmem:[#allocation7 + $0x20] sm:$0xff]  ;;  %v6427_v42 = vld [vmem:[#allocation7 + $0x58] sm:$0xff] }
  0x4a   :  { %5223 = vmatprep.mubr.msk.f32.mxu0 %vm118_vm0, %v6291_v13  ;;  %5243 = vmatprep.mubr.msk.f32.mxu1 %vm118_vm0, %v6291_v13  ;;  %v6429_v43 = vld [vmem:[#allocation10 + $0x18] sm:$0xff]  ;;  %v6435_v44 = vld [vmem:[#allocation7 + $0x50] sm:$0xff]  ;;  %v6443_v46 = vld [vmem:[#allocation7 + $0x48] sm:$0xff] }
  0x4b   :  { %5224 = vmatmul.mubr.msk.f32.gmra.mxu0 %vm118_vm0, %v6293_v14  ;;  %5244 = vmatmul.mubr.msk.f32.gmra.mxu1 %vm118_vm0, %v6293_v14  ;;  %v6437_v45 = vld [vmem:[#allocation10 + $0x10] sm:$0xff]  ;;  %v6445_v47 = vld [vmem:[#allocation10 + $0x8] sm:$0xff]  ;;  %v6451_v48 = vld [vmem:[#allocation7 + $0x40] sm:$0xff] }
  0x4c   :  { %5254 = vmatprep.subr.mxu0 %v369_v15  ;;  %5274 = vmatprep.subr.mxu1 %v486_v16  ;;  %v6453_v49 = vld [vmem:[#allocation10] sm:$0xff]  ;;  %v6465_v50 = vld [vmem:[#allocation10 + $0x38] sm:$0xff]  ;;  %v6472_v52 = vld [vmem:[#allocation10 + $0x30] sm:$0xff] }
  0x4d   :  { %5255 = vmatpush3.msra.mxu0 %v369_v15  ;;  %5275 = vmatpush3.msra.mxu1 %v486_v16  ;;  %v6469_v51 = vld [vmem:[#allocation10 + $0x58] sm:$0xff]  ;;  %v6478_v53 = vld [vmem:[%s7505_s1] sm:$0xff]  ;;  %v6483_v54 = vld [vmem:[#allocation10 + $0x50] sm:$0xff] }
  0x4e   :  { %5226 = vmatprep.mubr.msk.f32.mxu0 %vm118_vm0, %v6303_v17  ;;  %5246 = vmatprep.mubr.msk.f32.mxu1 %vm118_vm0, %v6303_v17  ;;  %v6486_v55 = vld [vmem:[#allocation10 + $0x28] sm:$0xff]  ;;  %vm880_vm2 = vcmp.gt.s32.totalorder %v6478_v53, 0  ;;  %v6495_v57 = vld [vmem:[#allocation10 + $0x20] sm:$0xff]  ;;  %vm881_vm3 = vcmp.gt.s32.totalorder %v6478_v53, 7  ;;  %vm1843_vm4 = vcmp.gt.s32.totalorder %v6478_v53, 2  ;;  %vm2327_vm5 = vcmp.gt.s32.totalorder %v6478_v53, 3 }
  0x4f   :  { %5227 = vmatmul.mubr.msk.f32.gmra.mxu0 %vm118_vm0, %v6305_v18  ;;  %5247 = vmatmul.mubr.msk.f32.gmra.mxu1 %vm118_vm0, %v6305_v18  ;;  %v6491_v56 = vld [vmem:[#allocation10 + $0x48] sm:$0xff]  ;;  %v6500_v58 = vld [vmem:[#allocation10 + $0x40] sm:$0xff]  ;;  %v1347_v59 = vsel %vm880_vm2, 1, %v6197_v0  ;;  %v1353_v60 = vsel %vm881_vm3, 1, %v6197_v0  ;;  %v2313_v61 = vsel %vm1843_vm4, 1, %v6197_v0  ;;  %v2797_v62 = vsel %vm2327_vm5, 1, %v6197_v0 }
  0x50   :  { %5256 = vmatprep.subr.mxu0 %v368_v19  ;;  %5276 = vmatprep.subr.mxu1 %v485_v20  ;;  %v6543_v63 = vld [vmem:[%s7508_s4] ss:$0 sm:$0xff]  ;;  %v6548_v1 = vld [vmem:[%s7508_s4 + $0x1] ss:$0 sm:$0xff]  ;;  %vm1359_vm6 = vcmp.gt.s32.totalorder %v6478_v53, 1  ;;  %vm1360_vm7 = vcmp.gt.s32.totalorder %v6478_v53, 6 }
  0x51   :  { %5257 = vmatpush3.msra.mxu0 %v368_v19  ;;  %5277 = vmatpush3.msra.mxu1 %v485_v20  ;;  %v1829_v2 = vsel %vm1359_vm6, 1, %v6197_v0  ;;  %v1835_v7 = vsel %vm1360_vm7, 1, %v6197_v0  ;;  %vm1844_vm8 = vcmp.gt.s32.totalorder %v6478_v53, 5  ;;  %vm2328_vm9 = vcmp.gt.s32.totalorder %v6478_v53, 4 }
  0x52   :  { %5229 = vmatprep.mubr.msk.f32.mxu0 %vm118_vm0, %v6315_v21  ;;  %5249 = vmatprep.mubr.msk.f32.mxu1 %vm118_vm0, %v6315_v21  ;;  %vm4736_vm4 = vcmask 523264  }
  0x53   :  { %5230 = vmatmul.mubr.msk.f32.gmra.mxu0 %vm118_vm0, %v6317_v22  ;;  %5250 = vmatmul.mubr.msk.f32.gmra.mxu1 %vm118_vm0, %v6317_v22 }
  0x54   :  { %5258 = vmatprep.subr.mxu0 %v367_v23  ;;  %5278 = vmatprep.subr.mxu1 %v484_v24 }
  0x55   :  { %5259 = vmatpush3.msra.mxu0 %v367_v23  ;;  %5279 = vmatpush3.msra.mxu1 %v484_v24  ;;  %v2803_v23 = vsel %vm2328_vm9, 1, %v6197_v0 }
  0x56   :  { %5260 = vmatprep.mubr.msk.f32.mxu0 %vm118_vm0, %v6279_v9  ;;  %5280 = vmatprep.mubr.msk.f32.mxu1 %vm118_vm0, %v6279_v9 }
  0x57   :  { %5261 = vmatmul.mubr.msk.f32.vlgmr.msra.gmra.mxu0 %vm118_vm0, %v6281_v10  ;;  %5281 = vmatmul.mubr.msk.f32.vlgmr.msra.gmra.mxu1 %vm118_vm0, %v6281_v10 }
  0x58   :  { %5292 = vmatprep.subr.mxu0 %v604_v25  ;;  %5312 = vmatprep.subr.mxu1 %v722_v26 }
  0x59   :  { %5293 = vmatpush3.msra.mxu0 %v604_v25  ;;  %5313 = vmatpush3.msra.mxu1 %v722_v26 }
  0x5a   :  { %5263 = vmatprep.mubr.msk.f32.mxu0 %vm118_vm0, %v6291_v13  ;;  %5283 = vmatprep.mubr.msk.f32.mxu1 %vm118_vm0, %v6291_v13 }
  0x5b   :  { %5264 = vmatmul.mubr.msk.f32.gmra.mxu0 %vm118_vm0, %v6293_v14  ;;  %5284 = vmatmul.mubr.msk.f32.gmra.mxu1 %vm118_vm0, %v6293_v14 }
  0x5c   :  { %5294 = vmatprep.subr.mxu0 %v603_v27  ;;  %5314 = vmatprep.subr.mxu1 %v721_v28 }
  0x5d   :  { %5295 = vmatpush3.msra.mxu0 %v603_v27  ;;  %5315 = vmatpush3.msra.mxu1 %v721_v28 }
  0x5e   :  { %5266 = vmatprep.mubr.msk.f32.mxu0 %vm118_vm0, %v6303_v17  ;;  %5286 = vmatprep.mubr.msk.f32.mxu1 %vm118_vm0, %v6303_v17 }
  0x5f   :  { %5267 = vmatmul.mubr.msk.f32.gmra.mxu0 %vm118_vm0, %v6305_v18  ;;  %5287 = vmatmul.mubr.msk.f32.gmra.mxu1 %vm118_vm0, %v6305_v18 }
  0x60   :  { %5296 = vmatprep.subr.mxu0 %v602_v29  ;;  %5316 = vmatprep.subr.mxu1 %v720_v30 }
  0x61   :  { %5297 = vmatpush3.msra.mxu0 %v602_v29  ;;  %5317 = vmatpush3.msra.mxu1 %v720_v30 }
  0x62   :  { %5269 = vmatprep.mubr.msk.f32.mxu0 %vm118_vm0, %v6315_v21  ;;  %5289 = vmatprep.mubr.msk.f32.mxu1 %vm118_vm0, %v6315_v21 }
  0x63   :  { %5270 = vmatmul.mubr.msk.f32.gmra.mxu0 %vm118_vm0, %v6317_v22  ;;  %5290 = vmatmul.mubr.msk.f32.gmra.mxu1 %vm118_vm0, %v6317_v22 }
  0x64   :  { %5298 = vmatprep.subr.mxu0 %v601_v31  ;;  %5318 = vmatprep.subr.mxu1 %v719_v32 }
  0x65   :  { %5299 = vmatpush3.msra.mxu0 %v601_v31  ;;  %5319 = vmatpush3.msra.mxu1 %v719_v32 }
  0x66   :  { %5300 = vmatprep.mubr.msk.f32.mxu0 %vm118_vm0, %v6279_v9  ;;  %5320 = vmatprep.mubr.msk.f32.mxu1 %vm118_vm0, %v6279_v9 }
  0x67   :  { %5301 = vmatmul.mubr.msk.f32.vlgmr.msra.gmra.mxu0 %vm118_vm0, %v6281_v10  ;;  %5321 = vmatmul.mubr.msk.f32.vlgmr.msra.gmra.mxu1 %vm118_vm0, %v6281_v10 }
  0x68   :  { %5332 = vmatprep.subr.mxu0 %v7513_v35  ;;  %5343 = vmatprep.subr.mxu1 %v7513_v35 }
  0x69   :  { %5333 = vmatpush3.msra.mxu0 %v6363_v33  ;;  %5344 = vmatpush3.msra.mxu1 %v6365_v34 }
  0x6a   :  { %5303 = vmatprep.mubr.msk.f32.mxu0 %vm118_vm0, %v6291_v13  ;;  %5323 = vmatprep.mubr.msk.f32.mxu1 %vm118_vm0, %v6291_v13 }
  0x6b   :  { %5304 = vmatmul.mubr.msk.f32.gmra.mxu0 %vm118_vm0, %v6293_v14  ;;  %5324 = vmatmul.mubr.msk.f32.gmra.mxu1 %vm118_vm0, %v6293_v14  ;;  %v2319_v14 = vsel %vm1844_vm8, 1, %v6197_v0  ;;  %v6601_v0 = vld [vmem:[%s7508_s4 + $0x2] ss:$0 sm:$0xff] }
  0x6c   :  { %5334 = vmatprep.subr.mxu0 %v7513_v35  ;;  %5345 = vmatprep.subr.mxu1 %v7513_v35 }
  0x6d   :  { %5335 = vmatpush3.msra.mxu0 %v6379_v36  ;;  %5346 = vmatpush3.msra.mxu1 %v6381_v37 }
  0x6e   :  { %5306 = vmatprep.mubr.msk.f32.mxu0 %vm118_vm0, %v6303_v17  ;;  %5326 = vmatprep.mubr.msk.f32.mxu1 %vm118_vm0, %v6303_v17 }
  0x6f   :  { %5307 = vmatmul.mubr.msk.f32.gmra.mxu0 %vm118_vm0, %v6305_v18  ;;  %5327 = vmatmul.mubr.msk.f32.gmra.mxu1 %vm118_vm0, %v6305_v18 }
  0x70   :  { %5336 = vmatprep.subr.mxu0 %v7513_v35  ;;  %5347 = vmatprep.subr.mxu1 %v7513_v35 }
  0x71   :  { %5337 = vmatpush3.msra.mxu0 %v6395_v38  ;;  %5348 = vmatpush3.msra.mxu1 %v6397_v39 }
  0x72   :  { %5309 = vmatprep.mubr.msk.f32.mxu0 %vm118_vm0, %v6315_v21  ;;  %5329 = vmatprep.mubr.msk.f32.mxu1 %vm118_vm0, %v6315_v21 }
  0x73   :  { %5310 = vmatmul.mubr.msk.f32.gmra.mxu0 %vm118_vm0, %v6317_v22  ;;  %5330 = vmatmul.mubr.msk.f32.gmra.mxu1 %vm118_vm0, %v6317_v22 }
  0x74   :  { %5338 = vmatprep.subr.mxu0 %v7513_v35  ;;  %5349 = vmatprep.subr.mxu1 %v7513_v35 }
  0x75   :  { %5339 = vmatpush3.msra.mxu0 %v6411_v40  ;;  %5350 = vmatpush3.msra.mxu1 %v6413_v41 }
  0x76   :  { %5340 = vmatprep.mubr.msk.f32.mxu0 %vm6199_vm1, %v7513_v35  ;;  %5351 = vmatprep.mubr.msk.f32.mxu1 %vm6199_vm1, %v7513_v35 }
  0x77   :  { %5354 = vmatprep.subr.mxu0 %v7513_v35  ;;  %5365 = vmatprep.subr.mxu1 %v7513_v35 }
  0x78   :  { %5341 = vmatmul.mubr.f32.vlgmr.msra.gmra.mxu0 %v7513_v35  ;;  %5352 = vmatmul.mubr.f32.vlgmr.msra.gmra.mxu1 %v7513_v35 }
  0x79   :  { %5355 = vmatpush3.msra.mxu0 %v6427_v42  ;;  %5366 = vmatpush3.msra.mxu1 %v6429_v43 }
  0x7a   :  { %5356 = vmatprep.subr.mxu0 %v7513_v35  ;;  %5367 = vmatprep.subr.mxu1 %v7513_v35 }
  0x7b   :  { %5357 = vmatpush3.msra.mxu0 %v6435_v44  ;;  %5368 = vmatpush3.msra.mxu1 %v6437_v45 }
  0x7c   :  { %5358 = vmatprep.subr.mxu0 %v7513_v35  ;;  %5369 = vmatprep.subr.mxu1 %v7513_v35 }
  0x7d   :  { %5359 = vmatpush3.msra.mxu0 %v6443_v46  ;;  %5370 = vmatpush3.msra.mxu1 %v6445_v47 }
  0x7e   :  { %5360 = vmatprep.subr.mxu0 %v7513_v35  ;;  %5371 = vmatprep.subr.mxu1 %v7513_v35 }
  0x7f   :  { %5361 = vmatpush3.msra.mxu0 %v6451_v48  ;;  %5372 = vmatpush3.msra.mxu1 %v6453_v49 }
  0x80   :  { %5373 = vmatprep.mubr.msk.f32.mxu1 %vm6199_vm1, %v7513_v35  ;;  %5362 = vmatprep.mubr.msk.f32.mxu0 %vm6199_vm1, %v7513_v35 }
  0x81   :  { %5374 = vmatmul.mubr.f32.vlgmr.msra.gmra.mxu1 %v7513_v35  ;;  %5376 = vmatprep.subr.mxu0 %v7513_v35 }
  0x82   :  { %5363 = vmatmul.mubr.f32.vlgmr.msra.gmra.mxu0 %v7513_v35  ;;  %5387 = vmatprep.subr.mxu1 %v7513_v35 }
  0x83   :  { %5377 = vmatpush3.msra.mxu0 %v6465_v50  ;;  %5384 = vmatprep.mubr.msk.f32.mxu0 %vm6199_vm1, %v7513_v35 }
  0x84   :  { %5378 = vmatprep.subr.mxu0 %v7513_v35  ;;  %5388 = vmatpush3.msra.mxu1 %v6469_v51 }
  0x85   :  { %5379 = vmatpush3.msra.mxu0 %v6472_v52  ;;  %5389 = vmatprep.subr.mxu1 %v7513_v35 }
  0x86   :  { %5380 = vmatprep.subr.mxu0 %v7513_v35  ;;  %5390 = vmatpush3.msra.mxu1 %v6483_v54 }
  0x87   :  { %5381 = vmatpush3.msra.mxu0 %v6486_v55  ;;  %5391 = vmatprep.subr.mxu1 %v7513_v35 }
  0x88   :  { %5382 = vmatprep.subr.mxu0 %v7513_v35  ;;  %5392 = vmatpush3.msra.mxu1 %v6491_v56 }
  0x89   :  { %5383 = vmatpush3.msra.mxu0 %v6495_v57  ;;  %5393 = vmatprep.subr.mxu1 %v7513_v35 }
  0x8a   :  { %5385 = vmatmul.mubr.f32.vlgmr.msra.gmra.mxu0 %v7513_v35  ;;  %5394 = vmatpush3.msra.mxu1 %v6500_v58 }
  0x8b   :  { %5395 = vmatprep.mubr.msk.f32.mxu1 %vm6199_vm1, %v7513_v35  ;;  %1349 = vperm.xlu0 %5872, %v1347_v59   ;;  %v6606_v59 = vld [vmem:[%s7511_s7] ss:$0 sm:$0xff] }
  0x8c   :  { %5396 = vmatmul.mubr.f32.vlgmr.msra.gmra.mxu1 %v7513_v35  ;;  %5398 = vmatprep.subr.mxu0 %v7513_v35 }
  0x8d   :  { %5409 = vmatprep.subr.mxu1 %v7513_v35  ;;  %5399 = vmatpush3.msra.mxu0 %v6363_v33 }
  0x8e   :  { %5410 = vmatpush3.msra.mxu1 %v6365_v34  ;;  %5400 = vmatprep.subr.mxu0 %v7513_v35 }
  0x8f   :  { %1355 = vperm.xlu0 %5872, %v1353_v60   ;;  %5411 = vmatprep.subr.mxu1 %v7513_v35 }
  0x90   :  { %5401 = vmatpush3.msra.mxu0 %v6379_v36  ;;  %5412 = vmatpush3.msra.mxu1 %v6381_v37 }
  0x91   :  { %5402 = vmatprep.subr.mxu0 %v7513_v35  ;;  %5413 = vmatprep.subr.mxu1 %v7513_v35 }
  0x92   :  { %5403 = vmatpush3.msra.mxu0 %v6395_v38  ;;  %5414 = vmatpush3.msra.mxu1 %v6397_v39 }
  0x93   :  { %2315 = vperm.xlu0 %5872, %v2313_v61   ;;  %5404 = vmatprep.subr.mxu0 %v7513_v35 }
  0x94   :  { %5415 = vmatprep.subr.mxu1 %v7513_v35  ;;  %5405 = vmatpush3.msra.mxu0 %v6411_v40 }
  0x95   :  { %5416 = vmatpush3.msra.mxu1 %v6413_v41  ;;  %5406 = vmatprep.mubr.msk.f32.mxu0 %vm6199_vm1, %v7513_v35 }
  0x96   :  { %5417 = vmatprep.mubr.msk.f32.mxu1 %vm6199_vm1, %v7513_v35  ;;  %5420 = vmatprep.subr.mxu0 %v7513_v35 }
  0x97   :  { %2799 = vperm.xlu0 %5872, %v2797_v62   ;;  %5431 = vmatprep.subr.mxu1 %v7513_v35 }
  0x98   :  { %1831 = vperm.xlu1 %5873, %v1829_v2  }
  0x9c   :  { %1837 = vperm.xlu1 %5873, %v1835_v7  }
  0xa0   :  { %2321 = vperm.xlu1 %5873, %v2319_v14  }
  0xa4   :  { %2805 = vperm.xlu1 %5873, %v2803_v23  }
 0x107   :  { %v5222_v3 = vpop.f32.mrf.mxu0  ;;  %v5242_v4 = vpop.f32.mrf.mxu1 }
 0x108   :  { %v6554_v5 = vadd.f32 %v5222_v3, %v6543_v63  ;;  %v6557_v6 = vadd.f32 %v5242_v4, %v6548_v1 }
 0x109   :  { %v6560_v8 = vpop.f32.mrf.mxu0  ;;  %v6562_v9 = vpop.f32.mrf.mxu1 }
 0x10b   :  { %v5225_v10 = vpop.f32.mrf.mxu0  ;;  %v5245_v11 = vpop.f32.mrf.mxu1 }
 0x10c   :  { %v6566_v12 = vadd.f32 %v5225_v10, %v6543_v63  ;;  %v6569_v13 = vadd.f32 %v5245_v11, %v6548_v1 }
 0x10d   :  { %v219_v15 = vpop.f32.mrf.mxu0  ;;  %v337_v16 = vpop.f32.mrf.mxu1 }
 0x10e   :  { %7515 = vst [vmem:[#allocation16_spill] sm:$0xff] %v6566_v12  ;;  %7516 = vst [vmem:[#allocation17_spill] sm:$0xff] %v6569_v13  ;;  %v6574_v17 = vadd.f32 %v6543_v63, %v219_v15  ;;  %v6577_v18 = vadd.f32 %v6548_v1, %v337_v16 }
 0x10f   :  { %v5228_v19 = vpop.f32.mrf.mxu0  ;;  %v5248_v20 = vpop.f32.mrf.mxu1 }
 0x110   :  { %v6580_v21 = vadd.f32 %v5228_v19, %v6543_v63  ;;  %v6583_v22 = vadd.f32 %v5248_v20, %v6548_v1 }
 0x111   :  { %v229_v24 = vpop.f32.mrf.mxu0  ;;  %v347_v25 = vpop.f32.mrf.mxu1 }
 0x112   :  { %7517 = vst [vmem:[#allocation18_spill] sm:$0xff] %v6580_v21  ;;  %7518 = vst [vmem:[#allocation19_spill] sm:$0xff] %v6583_v22  ;;  %v6587_v26 = vadd.f32 %v6543_v63, %v229_v24  ;;  %v6590_v27 = vadd.f32 %v6548_v1, %v347_v25 }
 0x113   :  { %v5231_v28 = vpop.f32.mrf.mxu0  ;;  %v5251_v29 = vpop.f32.mrf.mxu1 }
 0x114   :  { %7519 = vst [vmem:[#allocation20_spill] sm:$0xff] %v6587_v26  ;;  %7520 = vst [vmem:[#allocation21_spill] sm:$0xff] %v6590_v27  ;;  %v6593_v30 = vadd.f32 %v5231_v28, %v6543_v63  ;;  %v6596_v31 = vadd.f32 %v5251_v29, %v6548_v1 }
 0x115   :  { %v239_v32 = vpop.f32.mrf.mxu0  ;;  %v357_v53 = vpop.f32.mrf.mxu1 }
 0x116   :  { %7521 = vst [vmem:[#allocation22_spill] sm:$0xff] %v6593_v30  ;;  %7522 = vst [vmem:[#allocation23_spill] sm:$0xff] %v6596_v31  ;;  %v6609_v60 = vadd.f32 %v6543_v63, %v239_v32  ;;  %v6612_v61 = vadd.f32 %v6548_v1, %v357_v53 }
 0x117   :  { %v5262_v62 = vpop.f32.mrf.mxu0  ;;  %v5282_v2 = vpop.f32.mrf.mxu1 }
 0x118   :  { %7523 = vst [vmem:[#allocation24_spill] sm:$0xff] %v6609_v60  ;;  %7524 = vst [vmem:[#allocation25_spill] sm:$0xff] %v6612_v61  ;;  %v6615_v3 = vadd.f32 %v5262_v62, %v6601_v0  ;;  %v6618_v4 = vadd.f32 %v5282_v2, %v6606_v59 }
 0x119   :  { %v6620_v7 = vpop.f32.mrf.mxu0  ;;  %v561_v10 = vpop.f32.mrf.mxu1 }
 0x11a   :  { %7525 = vst [vmem:[#allocation26_spill] sm:$0xff] %v6618_v4  ;;  %v6623_v11 = vadd.f32 %v6606_v59, %v561_v10 }
 0x11b   :  { %v5265_v14 = vpop.f32.mrf.mxu0  ;;  %v5285_v15 = vpop.f32.mrf.mxu1 }
 0x11c   :  { %7526 = vst [vmem:[#allocation27_spill] sm:$0xff] %v6623_v11  ;;  %v6626_v16 = vadd.f32 %v5265_v14, %v6601_v0  ;;  %v6629_v19 = vadd.f32 %v5285_v15, %v6606_v59 }
 0x11d   :  { %v455_v20 = vpop.f32.mrf.mxu0  ;;  %v571_v23 = vpop.f32.mrf.mxu1 }
 0x11e   :  { %7527 = vst [vmem:[#allocation28_spill] sm:$0xff] %v6626_v16  ;;  %7528 = vst [vmem:[#allocation29_spill] sm:$0xff] %v6629_v19  ;;  %v6632_v24 = vadd.f32 %v6601_v0, %v455_v20  ;;  %v6635_v25 = vadd.f32 %v6606_v59, %v571_v23 }
 0x11f   :  { %v5268_v28 = vpop.f32.mrf.mxu0  ;;  %v5288_v29 = vpop.f32.mrf.mxu1 }
 0x120   :  { %7529 = vst [vmem:[#allocation30_spill] sm:$0xff] %v6635_v25  ;;  %v6638_v32 = vadd.f32 %v5268_v28, %v6601_v0  ;;  %v6641_v53 = vadd.f32 %v5288_v29, %v6606_v59  ;;  %v4803_v28 = vld [vmem:[%s7511_s7 + $0x1] ss:$0 sm:$0xff]  ;;  %v6658_v29 = vld [vmem:[%s7511_s7 + $0x2] ss:$0 sm:$0xff] }
 0x121   :  { %v465_v62 = vpop.f32.mrf.mxu0  ;;  %v581_v2 = vpop.f32.mrf.mxu1 }
 0x122   :  { %7530 = vst [vmem:[#allocation31_spill] sm:$0xff] %v6638_v32  ;;  %v6644_v10 = vadd.f32 %v6601_v0, %v465_v62  ;;  %v6647_v14 = vadd.f32 %v6606_v59, %v581_v2 }
 0x123   :  { %v5271_v15 = vpop.f32.mrf.mxu0  ;;  %v5291_v20 = vpop.f32.mrf.mxu1 }
 0x124   :  { %7531 = vst [vmem:[#allocation32_spill] sm:$0xff] %v6644_v10  ;;  %7532 = vst [vmem:[#allocation33_spill] sm:$0xff] %v6647_v14  ;;  %v6650_v23 = vadd.f32 %v5271_v15, %v6601_v0 }
 0x125   :  { %v475_v35 = vpop.f32.mrf.mxu0  ;;  %v591_v11 = vpop.f32.mrf.mxu1 }
 0x126   :  { %7533 = vst [vmem:[#allocation34_spill] sm:$0xff] %v6650_v23  ;;  %v6661_v62 = vadd.f32 %v6601_v0, %v475_v35  ;;  %v6664_v2 = vadd.f32 %v6606_v59, %v591_v11 }
 0x127   :  { %v5302_v31 = vpop.f32.mrf.mxu0  ;;  %v5322_v15 = vpop.f32.mrf.mxu1 }
 0x128   :  { %7534 = vst [vmem:[#allocation35_spill] sm:$0xff] %v6661_v62  ;;  %v6666_v23 = vadd.f32 %v5302_v31, %v4803_v28  ;;  %v6669_v30 = vadd.f32 %v5322_v15, %v6658_v29 }
 0x129   :  { %v679_v4 = vpop.f32.mrf.mxu0  ;;  %v797_v61 = vpop.f32.mrf.mxu1 }
 0x12a   :  { %7535 = vst [vmem:[#allocation36_spill] sm:$0xff] %v6666_v23  ;;  %7536 = vst [vmem:[#allocation37_spill] sm:$0xff] %v6669_v30  ;;  %v6671_v60 = vadd.f32 %v4803_v28, %v679_v4  ;;  %v6674_v32 = vadd.f32 %v6658_v29, %v797_v61 }
 0x12b   :  { %v5305_v25 = vpop.f32.mrf.mxu0  ;;  %v5325_v35 = vpop.f32.mrf.mxu1 }
 0x12c   :  { %7537 = vst [vmem:[#allocation38_spill] sm:$0xff] %v6671_v60  ;;  %7538 = vst [vmem:[#allocation39_spill] sm:$0xff] %v6674_v32  ;;  %v6676_v62 = vadd.f32 %v5305_v25, %v4803_v28  ;;  %v6679_v11 = vadd.f32 %v5325_v35, %v6658_v29 }
 0x12d   :  { %v689_v22 = vpop.f32.mrf.mxu0  ;;  %v807_v31 = vpop.f32.mrf.mxu1 }
 0x12e   :  { %7539 = vst [vmem:[#allocation40_spill] sm:$0xff] %v6676_v62  ;;  %7540 = vst [vmem:[#allocation41_spill] sm:$0xff] %v6679_v11  ;;  %v6681_v23 = vadd.f32 %v4803_v28, %v689_v22  ;;  %v6684_v15 = vadd.f32 %v6658_v29, %v807_v31 }
 0x12f   :  { %v5308_v30 = vpop.f32.mrf.mxu0  ;;  %v5328_v4 = vpop.f32.mrf.mxu1 }
 0x130   :  { %7541 = vst [vmem:[#allocation42_spill] sm:$0xff] %v6681_v23  ;;  %7542 = vst [vmem:[#allocation43_spill] sm:$0xff] %v6684_v15  ;;  %v6686_v60 = vadd.f32 %v5308_v30, %v4803_v28  ;;  %v6689_v61 = vadd.f32 %v5328_v4, %v6658_v29  ;;  %v210_v30 = vadd.f32 %v6543_v63, %v6560_v8 }
 0x131   :  { %v699_v32 = vpop.f32.mrf.mxu0  ;;  %v817_v25 = vpop.f32.mrf.mxu1 }
 0x132   :  { %v6691_v21 = vadd.f32 %v4803_v28, %v699_v32  ;;  %v6694_v35 = vadd.f32 %v6658_v29, %v817_v25  ;;  %v328_v25 = vadd.f32 %v6548_v1, %v6562_v9 }
 0x133   :  { %v5311_v11 = vpop.f32.mrf.mxu0  ;;  %v5331_v22 = vpop.f32.mrf.mxu1 }
 0x134   :  { %7543 = vst [vmem:[#allocation44_spill] sm:$0xff] %v6691_v21  ;;  %7544 = vst [vmem:[#allocation45_spill] sm:$0xff] %v6694_v35  ;;  %v715_v8 = vadd.f32 %v5311_v11, %v4803_v28 }
 0x135   :  { %v709_v23 = vpop.f32.mrf.mxu0  ;;  %v827_v10 = vpop.f32.mrf.mxu1 }
 0x136   :  { %v6696_v31 = vadd.f32 %v4803_v28, %v709_v23  ;;  %v6699_v15 = vadd.f32 %v6658_v29, %v827_v10  ;;  %v597_v23 = vadd.f32 %v5291_v20, %v6606_v59  ;;  %v446_v28 = vadd.f32 %v6601_v0, %v6620_v7 }
 0x138   :  { %v951_v4 = vpop.f32.mrf.mxu0  ;;  %v1028_v62 = vpop.f32.mrf.mxu1 }
 0x139   :  { %v955_v19 = vadd.f32 %v951_v4, %v210_v30  ;;  %v1032_v35 = vadd.f32 %v1028_v62, %v328_v25  ;;  %v6717_v25 = vld [vmem:[%s7511_s7 + $0x3] ss:$0 sm:$0xff] }
 0x13a   :  { %v5342_v32 = vpop.f32.mrf.mxu0  ;;  %v5353_v27 = vpop.f32.mrf.mxu1 }
 0x13b   :  { %v4826_v26 = vmul.f32 -1.442695, %v955_v19  ;;  %v4827_v14 = vmul.f32 -1.442695, %v1032_v35 }
 0x13d   :  { %5874 = vpow2.f32 %v4826_v26 }
 0x141   :  { %v1182_v16 = vpop.f32.mrf.mxu1 }
 0x142   :  { %v1186_v21 = vadd.f32 %v1182_v16, %v597_v23  ;;  %v1105_v10 = vpop.f32.mrf.mxu0 }
 0x143   :  { %v5375_v13 = vpop.f32.mrf.mxu1 }
 0x144   :  { %v4828_v12 = vmul.f32 -1.442695, %v1186_v21  ;;  %v5364_v63 = vpop.f32.mrf.mxu0 }
 0x146   :  { %5876 = vpow2.f32 %v4828_v12  ;;  %v6709_v12 = vld [vmem:[%s7508_s4 + $0x3] ss:$0 sm:$0xff] }
 0x147   :  { %5878 = vpow2.f32 %v4827_v14  ;;  %v1106_v21 = vadd.f32 %v6709_v12, %v1105_v10  ;;  %v833_v10 = vadd.f32 %v5331_v22, %v6658_v29  ;;  %v7545_v22 = vmov 0.0  }
 0x14a   :  { %v5875_v30 = vpop.eup %5874  ;;  %v1259_v27 = vpop.f32.mrf.mxu0 }
 0x14b   :  { %v959_v19 = vadd.f32 1.0, %v5875_v30  ;;  %v1263_v4 = vadd.f32 %v1259_v27, %v715_v8 }
 0x14c   :  { %v5386_v32 = vpop.f32.mrf.mxu0  ;;  %v1336_v1 = vpop.f32.mrf.mxu1 }
 0x14d   :  { %5880 = vrcp.f32 %v959_v19  ;;  %v4829_v9 = vmul.f32 -1.442695, %v1263_v4  ;;  %v1337_v63 = vadd.f32 %v6717_v25, %v1336_v1 }
 0x14e   :  { %v5397_v26 = vpop.f32.mrf.mxu1 }
 0x14f   :  { %5882 = vpow2.f32 %v4829_v9  ;;  %v6721_v9 = vpop.permute.xlu0 %1349 }
 0x150   :  { %vm1351_vm10 = vcmp.eq.s32.totalorder %v6721_v9, 1 }
 0x153   :  { %v5877_v59 = vpop.eup %5876 }
 0x154   :  { %v5879_v16 = vpop.eup %5878  ;;  %v1190_v20 = vadd.f32 1.0, %v5877_v59 }
 0x155   :  { %v1036_v13 = vadd.f32 1.0, %v5879_v16 }
 0x156   :  { %5884 = vrcp.f32 %v1190_v20 }
 0x157   :  { %5886 = vrcp.f32 %v1036_v13 }
 0x15a   :  { %v5881_v14 = vpop.eup %5880 }
 0x15b   :  { %v1109_v62 = vmul.f32 %v5881_v14, %v1106_v21  ;;  %v6742_v14 = vpop.permute.xlu0 %1355 }
 0x15c   :  { %v5883_v11 = vpop.eup %5882  ;;  %vm1357_vm11 = vcmp.eq.s32.totalorder %v6742_v14, 1 }
 0x15d   :  { %v1110_v35 = vadd.f32 %v1109_v62, %v446_v28  ;;  %v1267_v23 = vadd.f32 1.0, %v5883_v11 }
 0x15f   :  { %5888 = vtanh.f32 %v1110_v35 }
 0x160   :  { %5890 = vrcp.f32 %v1267_v23 }
 0x163   :  { %v5885_v8 = vpop.eup %5884 }
 0x164   :  { %v1340_v30 = vmul.f32 %v5885_v8, %v1337_v63  ;;  %v5887_v0 = vpop.eup %5886 }
 0x165   :  { %v1112_v7 = vsub.f32 1.0, %v5887_v0  ;;  %v1114_v32 = vmul.f32 0.0, %v5887_v0 }
 0x166   :  { %v1341_v27 = vadd.f32 %v1340_v30, %v833_v10 }
 0x168   :  { %5892 = vtanh.f32 %v1341_v27 }
 0x16c   :  { %v5889_v19 = vpop.eup %5888 }
 0x16d   :  { %v1113_v4 = vmul.f32 %v5889_v19, %v1112_v7  ;;  %v5891_v59 = vpop.eup %5890 }
 0x16e   :  { %v1343_v29 = vsub.f32 1.0, %v5891_v59  ;;  %v1345_v13 = vmul.f32 0.0, %v5891_v59 }
 0x16f   :  { %v1115_v26 = vadd.f32 %v1114_v32, %v1113_v4 }
 0x171   :  { %v6726_v1 = vsel %vm1351_vm10, %v1115_v26, 0.0 }
 0x172   :  { %5407 = vmatmul.mubr.msk.f32.vlgmr.msra.gmra.mxu0 %vm118_vm0, %v6726_v1  ;;  %5418 = vmatmul.mubr.msk.f32.vlgmr.msra.gmra.mxu1 %vm118_vm0, %v6726_v1 }
 0x173   :  { %5421 = vmatpush3.msra.mxu0 %v6427_v42  ;;  %5432 = vmatpush3.msra.mxu1 %v6429_v43 }
 0x174   :  { %5422 = vmatprep.subr.mxu0 %v7545_v22  ;;  %5433 = vmatprep.subr.mxu1 %v7545_v22 }
 0x175   :  { %v5893_v16 = vpop.eup %5892  ;;  %5423 = vmatpush3.msra.mxu0 %v6435_v44  ;;  %5434 = vmatpush3.msra.mxu1 %v6437_v45 }
 0x176   :  { %v1344_v20 = vmul.f32 %v5893_v16, %v1343_v29  ;;  %5424 = vmatprep.subr.mxu0 %v7545_v22  ;;  %5435 = vmatprep.subr.mxu1 %v7545_v22 }
 0x177   :  { %5425 = vmatpush3.msra.mxu0 %v6443_v46  ;;  %5436 = vmatpush3.msra.mxu1 %v6445_v47 }
 0x178   :  { %v1346_v21 = vadd.f32 %v1345_v13, %v1344_v20  ;;  %5426 = vmatprep.subr.mxu0 %v7545_v22  ;;  %5437 = vmatprep.subr.mxu1 %v7545_v22 }
 0x179   :  { %5427 = vmatpush3.msra.mxu0 %v6451_v48  ;;  %5428 = vmatprep.mubr.msk.f32.mxu0 %vm6199_vm1, %v7545_v22 }
 0x17a   :  { %v6752_v28 = vsel %vm1357_vm11, %v1346_v21, 0.0  ;;  %5438 = vmatpush3.msra.mxu1 %v6453_v49  ;;  %5439 = vmatprep.mubr.msk.f32.mxu1 %vm6199_vm1, %v7545_v22 }
 0x17b   :  { %5429 = vmatmul.mubr.msk.f32.vlgmr.msra.gmra.mxu0 %vm118_vm0, %v6726_v1  ;;  %5440 = vmatmul.mubr.msk.f32.vlgmr.msra.gmra.mxu1 %vm118_vm0, %v6752_v28 }
 0x17c   :  { %5442 = vmatprep.subr.mxu0 %v7545_v22  ;;  %5453 = vmatprep.subr.mxu1 %v7545_v22 }
 0x17d   :  { %5443 = vmatpush3.msra.mxu0 %v6465_v50  ;;  %5454 = vmatpush3.msra.mxu1 %v6469_v51 }
 0x17e   :  { %5444 = vmatprep.subr.mxu0 %v7545_v22  ;;  %5455 = vmatprep.subr.mxu1 %v7545_v22 }
 0x17f   :  { %5445 = vmatpush3.msra.mxu0 %v6472_v52  ;;  %5456 = vmatpush3.msra.mxu1 %v6483_v54 }
 0x180   :  { %5446 = vmatprep.subr.mxu0 %v7545_v22  ;;  %5457 = vmatprep.subr.mxu1 %v7545_v22 }
 0x181   :  { %5447 = vmatpush3.msra.mxu0 %v6486_v55  ;;  %5458 = vmatpush3.msra.mxu1 %v6491_v56 }
 0x182   :  { %5448 = vmatprep.subr.mxu0 %v7545_v22  ;;  %5459 = vmatprep.subr.mxu1 %v7545_v22 }
 0x183   :  { %5449 = vmatpush3.msra.mxu0 %v6495_v57  ;;  %5450 = vmatprep.mubr.msk.f32.mxu0 %vm6199_vm1, %v7545_v22 }
 0x184   :  { %5460 = vmatpush3.msra.mxu1 %v6500_v58  ;;  %5461 = vmatprep.mubr.msk.f32.mxu1 %vm6199_vm1, %v7545_v22 }
 0x185   :  { %5451 = vmatmul.mubr.msk.f32.vlgmr.msra.gmra.mxu0 %vm118_vm0, %v6752_v28  ;;  %5462 = vmatmul.mubr.msk.f32.vlgmr.msra.gmra.mxu1 %vm118_vm0, %v6752_v28 }
 0x186   :  { %5464 = vmatprep.subr.mxu0 %v7545_v22  ;;  %5475 = vmatprep.subr.mxu1 %v7545_v22 }
 0x187   :  { %5465 = vmatpush3.msra.mxu0 %v6363_v33  ;;  %5476 = vmatpush3.msra.mxu1 %v6365_v34 }
 0x188   :  { %5466 = vmatprep.subr.mxu0 %v7545_v22  ;;  %5477 = vmatprep.subr.mxu1 %v7545_v22 }
 0x189   :  { %5467 = vmatpush3.msra.mxu0 %v6379_v36  ;;  %5478 = vmatpush3.msra.mxu1 %v6381_v37 }
 0x18a   :  { %5468 = vmatprep.subr.mxu0 %v7545_v22  ;;  %5479 = vmatprep.subr.mxu1 %v7545_v22 }
 0x18b   :  { %5469 = vmatpush3.msra.mxu0 %v6395_v38  ;;  %5480 = vmatpush3.msra.mxu1 %v6397_v39 }
 0x18c   :  { %5470 = vmatprep.subr.mxu0 %v7545_v22  ;;  %5481 = vmatprep.subr.mxu1 %v7545_v22 }
 0x18d   :  { %5471 = vmatpush3.msra.mxu0 %v6411_v40  ;;  %5482 = vmatpush3.msra.mxu1 %v6413_v41 }
 0x18e   :  { %5472 = vmatprep.mubr.msk.f32.mxu0 %vm6199_vm1, %v7545_v22  ;;  %5483 = vmatprep.mubr.msk.f32.mxu1 %vm6199_vm1, %v7545_v22 }
 0x18f   :  { %5486 = vmatprep.subr.mxu0 %v7545_v22  ;;  %5497 = vmatprep.subr.mxu1 %v7545_v22 }
 0x232   :  { %v1430_v62 = vpop.f32.mrf.mxu0  ;;  %v1507_v11 = vpop.f32.mrf.mxu1 }
 0x233   :  { %v1434_v35 = vadd.f32 %v1430_v62, %v6554_v5  ;;  %v1511_v10 = vadd.f32 %v1507_v11, %v6557_v6 }
 0x234   :  { %v5408_v23 = vpop.f32.mrf.mxu0  ;;  %v5419_v63 = vpop.f32.mrf.mxu1 }
 0x235   :  { %v4831_v8 = vmul.f32 -1.442695, %v1434_v35  ;;  %v4833_v7 = vmul.f32 -1.442695, %v1511_v10 }
 0x237   :  { %5894 = vpow2.f32 %v4831_v8 }
 0x23b   :  { %v1584_v30 = vpop.f32.mrf.mxu0  ;;  %v1664_v27 = vpop.f32.mrf.mxu1 }
 0x23c   :  { %v1668_v0 = vadd.f32 %v1664_v27, %v6664_v2  ;;  %v1585_v35 = vadd.f32 %v6709_v12, %v1584_v30  ;;  %v6815_v30 = vpop.permute.xlu1 %1831 }
 0x23d   :  { %v5430_v19 = vpop.f32.mrf.mxu0  ;;  %v5441_v4 = vpop.f32.mrf.mxu1  ;;  %vm1833_vm12 = vcmp.eq.s32.totalorder %v6815_v30, 1 }
 0x23e   :  { %v4836_v32 = vmul.f32 -1.442695, %v1668_v0 }
 0x240   :  { %5896 = vpow2.f32 %v4836_v32 }
 0x241   :  { %5898 = vpow2.f32 %v4833_v7 }
 0x244   :  { %v5895_v26 = vpop.eup %5894 }
 0x245   :  { %v1438_v59 = vadd.f32 1.0, %v5895_v26  ;;  %v1741_v29 = vpop.f32.mrf.mxu0  ;;  %v1818_v5 = vpop.f32.mrf.mxu1 }
 0x246   :  { %v1745_v16 = vadd.f32 %v1741_v29, %v6696_v31  ;;  %v1819_v27 = vadd.f32 %v6717_v25, %v1818_v5 }
 0x247   :  { %5900 = vrcp.f32 %v1438_v59  ;;  %v5452_v20 = vpop.f32.mrf.mxu0  ;;  %v5463_v13 = vpop.f32.mrf.mxu1 }
 0x248   :  { %v4838_v6 = vmul.f32 -1.442695, %v1745_v16 }
 0x24a   :  { %5902 = vpow2.f32 %v4838_v6 }
 0x24d   :  { %v5897_v21 = vpop.eup %5896 }
 0x24e   :  { %v5899_v62 = vpop.eup %5898  ;;  %v1672_v2 = vadd.f32 1.0, %v5897_v21 }
 0x24f   :  { %v1515_v11 = vadd.f32 1.0, %v5899_v62 }
 0x250   :  { %5904 = vrcp.f32 %v1672_v2 }
 0x251   :  { %5906 = vrcp.f32 %v1515_v11 }
 0x254   :  { %v5901_v23 = vpop.eup %5900 }
 0x255   :  { %v1588_v63 = vmul.f32 %v5901_v23, %v1585_v35 }
 0x257   :  { %v5903_v8 = vpop.eup %5902  ;;  %v1589_v10 = vadd.f32 %v1588_v63, %v6615_v3 }
 0x258   :  { %v1749_v31 = vadd.f32 1.0, %v5903_v8 }
 0x259   :  { %5908 = vtanh.f32 %v1589_v10 }
 0x25a   :  { %5910 = vrcp.f32 %v1749_v31 }
 0x25d   :  { %v5905_v0 = vpop.eup %5904 }
 0x25e   :  { %v1822_v7 = vmul.f32 %v5905_v0, %v1819_v27  ;;  %v5907_v4 = vpop.eup %5906 }
 0x25f   :  { %v1591_v32 = vsub.f32 1.0, %v5907_v4  ;;  %v1593_v29 = vmul.f32 %v5907_v4, %v6726_v1 }
 0x260   :  { %v1823_v19 = vadd.f32 %v1822_v7, %v6699_v15 }
 0x262   :  { %5912 = vtanh.f32 %v1823_v19 }
 0x266   :  { %v5909_v26 = vpop.eup %5908 }
 0x267   :  { %v1592_v59 = vmul.f32 %v5909_v26, %v1591_v32  ;;  %v5911_v16 = vpop.eup %5910 }
 0x268   :  { %v1825_v15 = vsub.f32 1.0, %v5911_v16  ;;  %v1827_v6 = vmul.f32 %v5911_v16, %v6752_v28 }
 0x269   :  { %v6819_v3 = vadd.f32 %v1593_v29, %v1592_v59 }
 0x26b   :  { %v6825_v5 = vsel %vm1833_vm12, %v6819_v3, %v6726_v1 }
 0x26c   :  { %5473 = vmatmul.mubr.msk.f32.vlgmr.msra.gmra.mxu0 %vm118_vm0, %v6825_v5  ;;  %5484 = vmatmul.mubr.msk.f32.vlgmr.msra.gmra.mxu1 %vm118_vm0, %v6825_v5 }
 0x26d   :  { %5487 = vmatpush3.msra.mxu0 %v6427_v42  ;;  %5498 = vmatpush3.msra.mxu1 %v6429_v43  ;;  %v6842_v42 = vpop.permute.xlu1 %1837 }
 0x26e   :  { %5488 = vmatprep.subr.mxu0 %v7545_v22  ;;  %5499 = vmatprep.subr.mxu1 %v7545_v22  ;;  %vm1839_vm13 = vcmp.eq.s32.totalorder %v6842_v42, 1 }
 0x26f   :  { %v5913_v20 = vpop.eup %5912  ;;  %5489 = vmatpush3.msra.mxu0 %v6435_v44  ;;  %5500 = vmatpush3.msra.mxu1 %v6437_v45 }
 0x270   :  { %v1826_v13 = vmul.f32 %v5913_v20, %v1825_v15  ;;  %5490 = vmatprep.subr.mxu0 %v7545_v22  ;;  %5501 = vmatprep.subr.mxu1 %v7545_v22  ;;  %v6920_v15 = vpop.permute.xlu0 %2315 }
 0x271   :  { %5491 = vmatpush3.msra.mxu0 %v6443_v46  ;;  %5502 = vmatpush3.msra.mxu1 %v6445_v47  ;;  %vm2317_vm14 = vcmp.eq.s32.totalorder %v6920_v15, 1 }
 0x272   :  { %v6844_v43 = vadd.f32 %v1827_v6, %v1826_v13  ;;  %5492 = vmatprep.subr.mxu0 %v7545_v22  ;;  %5503 = vmatprep.subr.mxu1 %v7545_v22  ;;  %v6938_v6 = vld [vmem:[#allocation10 + $0x18] sm:$0xff] }
 0x273   :  { %5493 = vmatpush3.msra.mxu0 %v6451_v48  ;;  %5494 = vmatprep.mubr.msk.f32.mxu0 %vm6199_vm1, %v7545_v22 }
 0x274   :  { %v6856_v44 = vsel %vm1839_vm13, %v6844_v43, %v6752_v28  ;;  %5504 = vmatpush3.msra.mxu1 %v6453_v49  ;;  %5505 = vmatprep.mubr.msk.f32.mxu1 %vm6199_vm1, %v7545_v22  ;;  %v1842_v14 = vsel %vm1839_vm13, %v6844_v43, 0.0 }
 0x275   :  { %5495 = vmatmul.mubr.msk.f32.vlgmr.msra.gmra.mxu0 %vm118_vm0, %v6825_v5  ;;  %5506 = vmatmul.mubr.msk.f32.vlgmr.msra.gmra.mxu1 %vm118_vm0, %v6856_v44 }
 0x276   :  { %5508 = vmatprep.subr.mxu0 %v7545_v22  ;;  %5519 = vmatprep.subr.mxu1 %v7545_v22 }
 0x277   :  { %5509 = vmatpush3.msra.mxu0 %v6465_v50  ;;  %5520 = vmatpush3.msra.mxu1 %v6469_v51 }
 0x278   :  { %5510 = vmatprep.subr.mxu0 %v7545_v22  ;;  %5521 = vmatprep.subr.mxu1 %v7545_v22 }
 0x279   :  { %5511 = vmatpush3.msra.mxu0 %v6472_v52  ;;  %5522 = vmatpush3.msra.mxu1 %v6483_v54 }
 0x27a   :  { %5512 = vmatprep.subr.mxu0 %v7545_v22  ;;  %5523 = vmatprep.subr.mxu1 %v7545_v22 }
 0x27b   :  { %5513 = vmatpush3.msra.mxu0 %v6486_v55  ;;  %5524 = vmatpush3.msra.mxu1 %v6491_v56 }
 0x27c   :  { %5514 = vmatprep.subr.mxu0 %v7545_v22  ;;  %5525 = vmatprep.subr.mxu1 %v7545_v22 }
 0x27d   :  { %5515 = vmatpush3.msra.mxu0 %v6495_v57  ;;  %5516 = vmatprep.mubr.msk.f32.mxu0 %vm6199_vm1, %v7545_v22 }
 0x27e   :  { %5526 = vmatpush3.msra.mxu1 %v6500_v58  ;;  %5527 = vmatprep.mubr.msk.f32.mxu1 %vm6199_vm1, %v7545_v22 }
 0x27f   :  { %5517 = vmatmul.mubr.msk.f32.vlgmr.msra.gmra.mxu0 %vm118_vm0, %v6856_v44  ;;  %5528 = vmatmul.mubr.msk.f32.vlgmr.msra.gmra.mxu1 %vm118_vm0, %v6856_v44 }
 0x280   :  { %5530 = vmatprep.subr.mxu0 %v7545_v22  ;;  %5541 = vmatprep.subr.mxu1 %v7545_v22 }
 0x281   :  { %5531 = vmatpush3.msra.mxu0 %v6363_v33  ;;  %5542 = vmatpush3.msra.mxu1 %v6365_v34 }
 0x282   :  { %5532 = vmatprep.subr.mxu0 %v7545_v22  ;;  %5543 = vmatprep.subr.mxu1 %v7545_v22 }
 0x283   :  { %5533 = vmatpush3.msra.mxu0 %v6379_v36  ;;  %5544 = vmatpush3.msra.mxu1 %v6381_v37 }
 0x284   :  { %5534 = vmatprep.subr.mxu0 %v7545_v22  ;;  %5545 = vmatprep.subr.mxu1 %v7545_v22 }
 0x285   :  { %5535 = vmatpush3.msra.mxu0 %v6395_v38  ;;  %5546 = vmatpush3.msra.mxu1 %v6397_v39 }
 0x286   :  { %5536 = vmatprep.subr.mxu0 %v7545_v22  ;;  %5547 = vmatprep.subr.mxu1 %v7545_v22 }
 0x287   :  { %5537 = vmatpush3.msra.mxu0 %v6411_v40  ;;  %5548 = vmatpush3.msra.mxu1 %v6413_v41 }
 0x288   :  { %5538 = vmatprep.mubr.msk.f32.mxu0 %vm6199_vm1, %v7545_v22  ;;  %5549 = vmatprep.mubr.msk.f32.mxu1 %vm6199_vm1, %v7545_v22 }
 0x289   :  { %5552 = vmatprep.subr.mxu0 %v7545_v22  ;;  %5563 = vmatprep.subr.mxu1 %v7545_v22 }
 0x32c   :  { %v1914_v33 = vpop.f32.mrf.mxu0  ;;  %v1991_v34 = vpop.f32.mrf.mxu1 }
 0x32d   :  { %v1918_v36 = vadd.f32 %v1914_v33, %v6574_v17  ;;  %v1995_v40 = vadd.f32 %v1991_v34, %v6577_v18  ;;  %v6943_v34 = vld [vmem:[#allocation7 + $0x50] sm:$0xff] }
 0x32e   :  { %v5474_v37 = vpop.f32.mrf.mxu0  ;;  %v5485_v38 = vpop.f32.mrf.mxu1 }
 0x32f   :  { %v4841_v39 = vmul.f32 -1.442695, %v1918_v36  ;;  %v4843_v47 = vmul.f32 -1.442695, %v1995_v40  ;;  %v6946_v36 = vld [vmem:[#allocation10 + $0x10] sm:$0xff]  ;;  %v6955_v40 = vld [vmem:[#allocation10 + $0x8] sm:$0xff] }
 0x331   :  { %5914 = vpow2.f32 %v4841_v39  ;;  %v6952_v39 = vld [vmem:[#allocation7 + $0x48] sm:$0xff] }
 0x335   :  { %v2068_v41 = vpop.f32.mrf.mxu0  ;;  %v2148_v45 = vpop.f32.mrf.mxu1 }
 0x336   :  { %v2152_v46 = vadd.f32 %v2148_v45, %v6641_v53  ;;  %v2069_v63 = vadd.f32 %v6709_v12, %v2068_v41  ;;  %v6958_v41 = vpop.permute.xlu1 %2321 }
 0x337   :  { %v5496_v48 = vpop.f32.mrf.mxu0  ;;  %v5507_v49 = vpop.f32.mrf.mxu1  ;;  %vm2323_vm15 = vcmp.eq.s32.totalorder %v6958_v41, 1 }
 0x338   :  { %v4846_v50 = vmul.f32 -1.442695, %v2152_v46  ;;  %v6963_v46 = vld [vmem:[#allocation7 + $0x40] sm:$0xff] }
 0x33a   :  { %5916 = vpow2.f32 %v4846_v50  ;;  %v6987_v50 = vld [vmem:[#allocation10 + $0x38] sm:$0xff] }
 0x33b   :  { %5918 = vpow2.f32 %v4843_v47  ;;  %v6968_v47 = vld [vmem:[#allocation10] sm:$0xff] }
 0x33e   :  { %v5915_v51 = vpop.eup %5914 }
 0x33f   :  { %v1922_v52 = vadd.f32 1.0, %v5915_v51  ;;  %v2225_v55 = vpop.f32.mrf.mxu0  ;;  %v2302_v17 = vpop.f32.mrf.mxu1  ;;  %v6990_v51 = vld [vmem:[#allocation10 + $0x58] sm:$0xff] }
 0x340   :  { %v2229_v21 = vadd.f32 %v2225_v55, %v6686_v60  ;;  %v2303_v0 = vadd.f32 %v6717_v25, %v2302_v17  ;;  %v7035_v55 = vld [vmem:[#allocation7 + $0x8] sm:$0xff] }
 0x341   :  { %5920 = vrcp.f32 %v1922_v52  ;;  %v5518_v62 = vpop.f32.mrf.mxu0  ;;  %v5529_v2 = vpop.f32.mrf.mxu1  ;;  %v7001_v52 = vld [vmem:[#allocation10 + $0x28] sm:$0xff] }
 0x342   :  { %v4848_v18 = vmul.f32 -1.442695, %v2229_v21  ;;  %v7038_v17 = vld [vmem:[#allocation7 + $0x28] sm:$0xff]  ;;  %v7043_v21 = vld [vmem:[#allocation7] sm:$0xff] }
 0x343   :  { %v7046_v62 = vld [vmem:[#allocation7 + $0x20] sm:$0xff] }
 0x344   :  { %5922 = vpow2.f32 %v4848_v18 }
 0x347   :  { %v5917_v11 = vpop.eup %5916 }
 0x348   :  { %v5919_v35 = vpop.eup %5918  ;;  %v2156_v53 = vadd.f32 1.0, %v5917_v11  ;;  %v7546_v11 = vld [vmem:[#allocation16_spill] sm:$0xff] }
 0x349   :  { %v1999_v23 = vadd.f32 1.0, %v5919_v35 }
 0x34a   :  { %5924 = vrcp.f32 %v2156_v53 }
 0x34b   :  { %5926 = vrcp.f32 %v1999_v23 }
 0x34e   :  { %v5921_v8 = vpop.eup %5920 }
 0x34f   :  { %v2072_v10 = vmul.f32 %v5921_v8, %v2069_v63  ;;  %v7547_v8 = vld [vmem:[#allocation17_spill] sm:$0xff] }
 0x351   :  { %v5923_v31 = vpop.eup %5922  ;;  %v2073_v27 = vadd.f32 %v2072_v10, %v6632_v24 }
 0x352   :  { %v2233_v60 = vadd.f32 1.0, %v5923_v31 }
 0x353   :  { %5928 = vtanh.f32 %v2073_v27 }
 0x354   :  { %5930 = vrcp.f32 %v2233_v60 }
 0x357   :  { %v5925_v7 = vpop.eup %5924 }
 0x358   :  { %v2306_v19 = vmul.f32 %v5925_v7, %v2303_v0  ;;  %v5927_v32 = vpop.eup %5926  ;;  %v7548_v0 = vld [vmem:[#allocation33_spill] sm:$0xff] }
 0x359   :  { %v2075_v26 = vsub.f32 1.0, %v5927_v32  ;;  %v2077_v16 = vmul.f32 %v5927_v32, %v6825_v5 }
 0x35a   :  { %v2307_v4 = vadd.f32 %v2306_v19, %v6689_v61  ;;  %v6935_v61 = vld [vmem:[#allocation7 + $0x58] sm:$0xff] }
 0x35c   :  { %5932 = vtanh.f32 %v2307_v4 }
 0x360   :  { %v5929_v59 = vpop.eup %5928 }
 0x361   :  { %v2076_v29 = vmul.f32 %v5929_v59, %v2075_v26  ;;  %v5931_v24 = vpop.eup %5930 }
 0x362   :  { %v2311_v38 = vmul.f32 %v5931_v24, %v6856_v44 }
 0x363   :  { %v6922_v20 = vadd.f32 %v2077_v16, %v2076_v29  ;;  %v7549_v16 = vld [vmem:[#allocation44_spill] sm:$0xff] }
 0x365   :  { %v6929_v13 = vsel %vm2317_vm14, %v6922_v20, %v6825_v5  ;;  %v2309_v5 = vsub.f32 1.0, %v5931_v24 }
 0x366   :  { %5539 = vmatmul.mubr.msk.f32.vlgmr.msra.gmra.mxu0 %vm118_vm0, %v6929_v13  ;;  %5550 = vmatmul.mubr.msk.f32.vlgmr.msra.gmra.mxu1 %vm118_vm0, %v6929_v13 }
 0x367   :  { %5553 = vmatpush3.msra.mxu0 %v6935_v61  ;;  %5564 = vmatpush3.msra.mxu1 %v6938_v6 }
 0x368   :  { %5554 = vmatprep.subr.mxu0 %v7545_v22  ;;  %5565 = vmatprep.subr.mxu1 %v7545_v22 }
 0x369   :  { %v5933_v33 = vpop.eup %5932  ;;  %5555 = vmatpush3.msra.mxu0 %v6943_v34  ;;  %5566 = vmatpush3.msra.mxu1 %v6946_v36 }
 0x36a   :  { %5556 = vmatprep.subr.mxu0 %v7545_v22  ;;  %5567 = vmatprep.subr.mxu1 %v7545_v22  ;;  %v2310_v37 = vmul.f32 %v5933_v33, %v2309_v5 }
 0x36b   :  { %5557 = vmatpush3.msra.mxu0 %v6952_v39  ;;  %5568 = vmatpush3.msra.mxu1 %v6955_v40 }
 0x36c   :  { %5558 = vmatprep.subr.mxu0 %v7545_v22  ;;  %5569 = vmatprep.subr.mxu1 %v7545_v22  ;;  %v2312_v45 = vadd.f32 %v2311_v38, %v2310_v37 }
 0x36d   :  { %5559 = vmatpush3.msra.mxu0 %v6963_v46  ;;  %5560 = vmatprep.mubr.msk.f32.mxu0 %vm6199_vm1, %v7545_v22 }
 0x36e   :  { %5570 = vmatpush3.msra.mxu1 %v6968_v47  ;;  %5571 = vmatprep.mubr.msk.f32.mxu1 %vm6199_vm1, %v7545_v22  ;;  %v2326_v48 = vsel %vm2323_vm15, %v2312_v45, 0.0  ;;  %v6978_v49 = vsel %vm2323_vm15, %v2312_v45, %v6856_v44  ;;  %v6995_v44 = vld [vmem:[#allocation10 + $0x30] sm:$0xff] }
 0x36f   :  { %4714 = vrot.lane.b32.xlu1 %v2326_v48, %s6200_s5  ;;  %5561 = vmatmul.mubr.msk.f32.vlgmr.msra.gmra.mxu0 %vm118_vm0, %v6929_v13 }
 0x370   :  { %5572 = vmatmul.mubr.msk.f32.vlgmr.msra.gmra.mxu1 %vm118_vm0, %v6978_v49  ;;  %5574 = vmatprep.subr.mxu0 %v7545_v22 }
 0x371   :  { %5585 = vmatprep.subr.mxu1 %v7545_v22  ;;  %5575 = vmatpush3.msra.mxu0 %v6987_v50 }
 0x372   :  { %5586 = vmatpush3.msra.mxu1 %v6990_v51  ;;  %5576 = vmatprep.subr.mxu0 %v7545_v22 }
 0x373   :  { %5587 = vmatprep.subr.mxu1 %v7545_v22  ;;  %5577 = vmatpush3.msra.mxu0 %v6995_v44 }
 0x374   :  { %5588 = vmatpush3.msra.mxu1 %v6483_v54  ;;  %5578 = vmatprep.subr.mxu0 %v7545_v22  ;;  %v7019_v54 = vld [vmem:[#allocation7 + $0x18] sm:$0xff] }
 0x375   :  { %5589 = vmatprep.subr.mxu1 %v7545_v22  ;;  %5579 = vmatpush3.msra.mxu0 %v7001_v52 }
 0x376   :  { %5590 = vmatpush3.msra.mxu1 %v6491_v56  ;;  %5580 = vmatprep.subr.mxu0 %v7545_v22  ;;  %v7022_v56 = vld [vmem:[#allocation7 + $0x38] sm:$0xff] }
 0x377   :  { %5591 = vmatprep.subr.mxu1 %v7545_v22  ;;  %5581 = vmatpush3.msra.mxu0 %v6495_v57  ;;  %v7027_v57 = vld [vmem:[#allocation7 + $0x10] sm:$0xff] }
 0x378   :  { %5582 = vmatprep.mubr.msk.f32.mxu0 %vm6199_vm1, %v7545_v22  ;;  %5592 = vmatpush3.msra.mxu1 %v6500_v58  ;;  %v7030_v58 = vld [vmem:[#allocation7 + $0x30] sm:$0xff] }
 0x379   :  { %5593 = vmatprep.mubr.msk.f32.mxu1 %vm6199_vm1, %v7545_v22  ;;  %5583 = vmatmul.mubr.msk.f32.vlgmr.msra.gmra.mxu0 %vm118_vm0, %v6978_v49 }
 0x37a   :  { %5594 = vmatmul.mubr.msk.f32.vlgmr.msra.gmra.mxu1 %vm118_vm0, %v6978_v49  ;;  %5596 = vmatprep.subr.mxu0 %v7545_v22 }
 0x37b   :  { %5607 = vmatprep.subr.mxu1 %v7545_v22  ;;  %5597 = vmatpush3.msra.mxu0 %v7019_v54 }
 0x37c   :  { %5608 = vmatpush3.msra.mxu1 %v7022_v56  ;;  %5598 = vmatprep.subr.mxu0 %v7545_v22 }
 0x37d   :  { %5609 = vmatprep.subr.mxu1 %v7545_v22  ;;  %5599 = vmatpush3.msra.mxu0 %v7027_v57 }
 0x37e   :  { %5610 = vmatpush3.msra.mxu1 %v7030_v58  ;;  %5600 = vmatprep.subr.mxu0 %v7545_v22 }
 0x37f   :  { %5611 = vmatprep.subr.mxu1 %v7545_v22  ;;  %5601 = vmatpush3.msra.mxu0 %v7035_v55 }
 0x380   :  { %5612 = vmatpush3.msra.mxu1 %v7038_v17  ;;  %5602 = vmatprep.subr.mxu0 %v7545_v22 }
 0x381   :  { %5613 = vmatprep.subr.mxu1 %v7545_v22  ;;  %5603 = vmatpush3.msra.mxu0 %v7043_v21 }
 0x382   :  { %5614 = vmatpush3.msra.mxu1 %v7046_v62  ;;  %5604 = vmatprep.mubr.msk.f32.mxu0 %vm6199_vm1, %v7545_v22 }
 0x383   :  { %5615 = vmatprep.mubr.msk.f32.mxu1 %vm6199_vm1, %v7545_v22  ;;  %5618 = vmatprep.subr.mxu0 %v7545_v22 }
 0x384   :  { %5629 = vmatprep.subr.mxu1 %v7545_v22 }
 0x426   :  { %v2398_v2 = vpop.f32.mrf.mxu0  ;;  %v2475_v18 = vpop.f32.mrf.mxu1 }
 0x427   :  { %v2402_v35 = vadd.f32 %v2398_v2, %v7546_v11  ;;  %v2479_v10 = vadd.f32 %v2475_v18, %v7547_v8 }
 0x428   :  { %v5540_v53 = vpop.f32.mrf.mxu0  ;;  %v5551_v23 = vpop.f32.mrf.mxu1 }
 0x429   :  { %v4851_v63 = vmul.f32 -1.442695, %v2402_v35  ;;  %v4853_v27 = vmul.f32 -1.442695, %v2479_v10  ;;  %v7550_v23 = vld [vmem:[#allocation28_spill] sm:$0xff] }
 0x42b   :  { %5934 = vpow2.f32 %v4851_v63 }
 0x42c   :  { %5936 = vpow2.f32 %v4853_v27 }
 0x42f   :  { %v2552_v31 = vpop.f32.mrf.mxu0 }
 0x430   :  { %v2632_v60 = vpop.f32.mrf.mxu1  ;;  %v2553_v11 = vadd.f32 %v6709_v12, %v2552_v31  ;;  %v7063_v31 = vpop.permute.xlu0 %2799 }
 0x431   :  { %v2636_v7 = vadd.f32 %v2632_v60, %v7548_v0  ;;  %v5562_v19 = vpop.f32.mrf.mxu0  ;;  %vm2801_vm2 = vcmp.eq.s32.totalorder %v7063_v31, 1 }
 0x432   :  { %v5573_v4 = vpop.f32.mrf.mxu1 }
 0x433   :  { %v4856_v32 = vmul.f32 -1.442695, %v2636_v7  ;;  %v7551_v7 = vld [vmem:[#allocation45_spill] sm:$0xff] }
 0x435   :  { %5938 = vpow2.f32 %v4856_v32 }
 0x438   :  { %v5935_v26 = vpop.eup %5934 }
 0x439   :  { %v2406_v59 = vadd.f32 1.0, %v5935_v26  ;;  %v2709_v29 = vpop.f32.mrf.mxu0  ;;  %v5937_v45 = vpop.eup %5936 }
 0x43a   :  { %v2713_v24 = vadd.f32 %v2709_v29, %v7549_v16  ;;  %v2786_v5 = vpop.f32.mrf.mxu1  ;;  %v2483_v18 = vadd.f32 1.0, %v5937_v45 }
 0x43b   :  { %5940 = vrcp.f32 %v2406_v59  ;;  %v5584_v33 = vpop.f32.mrf.mxu0  ;;  %v2787_v27 = vadd.f32 %v6717_v25, %v2786_v5 }
 0x43c   :  { %v4858_v37 = vmul.f32 -1.442695, %v2713_v24  ;;  %v5595_v38 = vpop.f32.mrf.mxu1 }
 0x43e   :  { %5942 = vpow2.f32 %v4858_v37  ;;  %v7087_v37 = vpop.permute.xlu1 %2805 }
 0x43f   :  { %vm2807_vm3 = vcmp.eq.s32.totalorder %v7087_v37, 1 }
 0x442   :  { %v5939_v48 = vpop.eup %5938 }
 0x443   :  { %v2640_v2 = vadd.f32 1.0, %v5939_v48 }
 0x445   :  { %5944 = vrcp.f32 %v2640_v2 }
 0x446   :  { %5946 = vrcp.f32 %v2483_v18 }
 0x448   :  { %v5941_v35 = vpop.eup %5940 }
 0x449   :  { %v2556_v53 = vmul.f32 %v5941_v35, %v2553_v11  ;;  %v7126_v11 = vld [vmem:[#allocation10 + $0x48] sm:$0xff]  ;;  %v7131_v35 = vld [vmem:[#allocation10 + $0x20] sm:$0xff] }
 0x44b   :  { %v2557_v63 = vadd.f32 %v2556_v53, %v7550_v23  ;;  %v5943_v8 = vpop.eup %5942  ;;  %v7136_v53 = vld [vmem:[#allocation10 + $0x40] sm:$0xff] }
 0x44c   :  { %v2717_v10 = vadd.f32 1.0, %v5943_v8  ;;  %v7552_v8 = vld [vmem:[#allocation20_spill] sm:$0xff] }
 0x44d   :  { %5948 = vtanh.f32 %v2557_v63 }
 0x44e   :  { %5950 = vrcp.f32 %v2717_v10 }
 0x452   :  { %v5945_v60 = vpop.eup %5944 }
 0x453   :  { %v2790_v0 = vmul.f32 %v5945_v60, %v2787_v27  ;;  %v5947_v4 = vpop.eup %5946 }
 0x454   :  { %v2559_v32 = vsub.f32 1.0, %v5947_v4  ;;  %v2561_v29 = vmul.f32 %v5947_v4, %v6929_v13 }
 0x455   :  { %v2791_v19 = vadd.f32 %v2790_v0, %v7551_v7  ;;  %v7553_v7 = vld [vmem:[#allocation21_spill] sm:$0xff] }
 0x457   :  { %5952 = vtanh.f32 %v2791_v19 }
 0x45a   :  { %v5949_v26 = vpop.eup %5948 }
 0x45b   :  { %v2560_v59 = vmul.f32 %v5949_v26, %v2559_v32  ;;  %v5951_v5 = vpop.eup %5950 }
 0x45c   :  { %v2795_v45 = vmul.f32 %v5951_v5, %v6978_v49 }
 0x45d   :  { %v7066_v16 = vadd.f32 %v2561_v29, %v2560_v59  ;;  %v7554_v59 = vld [vmem:[#allocation29_spill] sm:$0xff] }
 0x45f   :  { %v7073_v24 = vsel %vm2801_vm2, %v7066_v16, %v6929_v13  ;;  %v2793_v13 = vsub.f32 1.0, %v5951_v5 }
 0x460   :  { %5605 = vmatmul.mubr.msk.f32.vlgmr.msra.gmra.mxu0 %vm118_vm0, %v7073_v24  ;;  %5616 = vmatmul.mubr.msk.f32.vlgmr.msra.gmra.mxu1 %vm118_vm0, %v7073_v24 }
 0x461   :  { %5619 = vmatpush3.msra.mxu0 %v6935_v61  ;;  %5630 = vmatpush3.msra.mxu1 %v6938_v6 }
 0x462   :  { %5620 = vmatprep.subr.mxu0 %v7545_v22  ;;  %5631 = vmatprep.subr.mxu1 %v7545_v22 }
 0x463   :  { %5621 = vmatpush3.msra.mxu0 %v6943_v34  ;;  %5632 = vmatpush3.msra.mxu1 %v6946_v36 }
 0x464   :  { %v5953_v33 = vpop.eup %5952  ;;  %5622 = vmatprep.subr.mxu0 %v7545_v22  ;;  %5633 = vmatprep.subr.mxu1 %v7545_v22 }
 0x465   :  { %5623 = vmatpush3.msra.mxu0 %v6952_v39  ;;  %5634 = vmatpush3.msra.mxu1 %v6955_v40  ;;  %v2794_v38 = vmul.f32 %v5953_v33, %v2793_v13 }
 0x466   :  { %5624 = vmatprep.subr.mxu0 %v7545_v22  ;;  %5635 = vmatprep.subr.mxu1 %v7545_v22 }
 0x467   :  { %5625 = vmatpush3.msra.mxu0 %v6963_v46  ;;  %5626 = vmatprep.mubr.msk.f32.mxu0 %vm6199_vm1, %v7545_v22  ;;  %v2796_v48 = vadd.f32 %v2795_v45, %v2794_v38 }
 0x468   :  { %5636 = vmatpush3.msra.mxu1 %v6968_v47  ;;  %5637 = vmatprep.mubr.msk.f32.mxu1 %vm6199_vm1, %v7545_v22 }
 0x469   :  { %v2810_v2 = vsel %vm2807_vm3, %v2796_v48, 0.0  ;;  %5627 = vmatmul.mubr.msk.f32.vlgmr.msra.gmra.mxu0 %vm118_vm0, %v7073_v24  ;;  %v7108_v18 = vsel %vm2807_vm3, %v2796_v48, %v6978_v49  ;;  %5640 = vmatprep.subr.mxu0 %v7545_v22  ;;  %v7120_v49 = vld [vmem:[#allocation10 + $0x50] sm:$0xff] }
 0x46a   :  { %4712 = vrot.lane.b32.xlu0 %v2810_v2, %s6200_s5  ;;  %5638 = vmatmul.mubr.msk.f32.vlgmr.msra.gmra.mxu1 %vm118_vm0, %v7108_v18  ;;  %v7555_v2 = vld [vmem:[#allocation40_spill] sm:$0xff] }
 0x46b   :  { %5651 = vmatprep.subr.mxu1 %v7545_v22  ;;  %5641 = vmatpush3.msra.mxu0 %v6987_v50 }
 0x46c   :  { %5652 = vmatpush3.msra.mxu1 %v6990_v51  ;;  %5642 = vmatprep.subr.mxu0 %v7545_v22 }
 0x46d   :  { %5653 = vmatprep.subr.mxu1 %v7545_v22  ;;  %5643 = vmatpush3.msra.mxu0 %v6995_v44 }
 0x46e   :  { %5654 = vmatpush3.msra.mxu1 %v7120_v49  ;;  %5644 = vmatprep.subr.mxu0 %v7545_v22 }
 0x46f   :  { %5655 = vmatprep.subr.mxu1 %v7545_v22  ;;  %5645 = vmatpush3.msra.mxu0 %v7001_v52 }
 0x470   :  { %5656 = vmatpush3.msra.mxu1 %v7126_v11  ;;  %5646 = vmatprep.subr.mxu0 %v7545_v22 }
 0x471   :  { %5657 = vmatprep.subr.mxu1 %v7545_v22  ;;  %5647 = vmatpush3.msra.mxu0 %v7131_v35 }
 0x472   :  { %5648 = vmatprep.mubr.msk.f32.mxu0 %vm6199_vm1, %v7545_v22  ;;  %5658 = vmatpush3.msra.mxu1 %v7136_v53 }
 0x473   :  { %5659 = vmatprep.mubr.msk.f32.mxu1 %vm6199_vm1, %v7545_v22  ;;  %5649 = vmatmul.mubr.msk.f32.vlgmr.msra.gmra.mxu0 %vm118_vm0, %v7108_v18 }
 0x474   :  { %5660 = vmatmul.mubr.msk.f32.vlgmr.msra.gmra.mxu1 %vm118_vm0, %v7108_v18  ;;  %5662 = vmatprep.subr.mxu0 %v7545_v22 }
 0x475   :  { %5673 = vmatprep.subr.mxu1 %v7545_v22  ;;  %5663 = vmatpush3.msra.mxu0 %v7019_v54 }
 0x476   :  { %5674 = vmatpush3.msra.mxu1 %v7022_v56  ;;  %5664 = vmatprep.subr.mxu0 %v7545_v22 }
 0x477   :  { %5675 = vmatprep.subr.mxu1 %v7545_v22  ;;  %5665 = vmatpush3.msra.mxu0 %v7027_v57 }
 0x478   :  { %5676 = vmatpush3.msra.mxu1 %v7030_v58  ;;  %5666 = vmatprep.subr.mxu0 %v7545_v22 }
 0x479   :  { %5677 = vmatprep.subr.mxu1 %v7545_v22  ;;  %5667 = vmatpush3.msra.mxu0 %v7035_v55 }
 0x47a   :  { %5678 = vmatpush3.msra.mxu1 %v7038_v17  ;;  %5668 = vmatprep.subr.mxu0 %v7545_v22 }
 0x47b   :  { %5679 = vmatprep.subr.mxu1 %v7545_v22  ;;  %5669 = vmatpush3.msra.mxu0 %v7043_v21 }
 0x47c   :  { %5680 = vmatpush3.msra.mxu1 %v7046_v62  ;;  %5670 = vmatprep.mubr.msk.f32.mxu0 %vm6199_vm1, %v7545_v22 }
 0x47d   :  { %5681 = vmatprep.mubr.msk.f32.mxu1 %vm6199_vm1, %v7545_v22  ;;  %5684 = vmatprep.subr.mxu0 %v7545_v22 }
 0x47e   :  { %5695 = vmatprep.subr.mxu1 %v7545_v22 }
 0x520   :  { %v2880_v23 = vpop.f32.mrf.mxu0  ;;  %v2957_v63 = vpop.f32.mrf.mxu1 }
 0x521   :  { %v2884_v10 = vadd.f32 %v2880_v23, %v7552_v8  ;;  %v2961_v19 = vadd.f32 %v2957_v63, %v7553_v7 }
 0x522   :  { %v5606_v27 = vpop.f32.mrf.mxu0  ;;  %v5617_v60 = vpop.f32.mrf.mxu1 }
 0x523   :  { %v4861_v0 = vmul.f32 -1.442695, %v2884_v10  ;;  %v4863_v32 = vmul.f32 -1.442695, %v2961_v19 }
 0x525   :  { %5954 = vpow2.f32 %v4861_v0 }
 0x526   :  { %5956 = vpow2.f32 %v4863_v32 }
 0x529   :  { %v3034_v4 = vpop.f32.mrf.mxu0 }
 0x52a   :  { %v3114_v26 = vpop.f32.mrf.mxu1 }
 0x52b   :  { %v3118_v29 = vadd.f32 %v3114_v26, %v7554_v59  ;;  %v5628_v5 = vpop.f32.mrf.mxu0  ;;  %v3035_v26 = vadd.f32 %v6709_v12, %v3034_v4 }
 0x52c   :  { %v5639_v13 = vpop.f32.mrf.mxu1 }
 0x52d   :  { %v4866_v33 = vmul.f32 -1.442695, %v3118_v29  ;;  %v7556_v29 = vld [vmem:[#allocation32_spill] sm:$0xff] }
 0x52f   :  { %5958 = vpow2.f32 %v4866_v33 }
 0x532   :  { %v5955_v38 = vpop.eup %5954 }
 0x533   :  { %v2888_v45 = vadd.f32 1.0, %v5955_v38  ;;  %v3191_v48 = vpop.f32.mrf.mxu0  ;;  %v5957_v60 = vpop.eup %5956 }
 0x534   :  { %v3195_v23 = vadd.f32 %v3191_v48, %v7555_v2  ;;  %v3268_v8 = vpop.f32.mrf.mxu1  ;;  %v2965_v19 = vadd.f32 1.0, %v5957_v60  ;;  %v7557_v2 = vld [vmem:[#allocation41_spill] sm:$0xff] }
 0x535   :  { %5960 = vrcp.f32 %v2888_v45  ;;  %v5650_v10 = vpop.f32.mrf.mxu0  ;;  %v3269_v38 = vadd.f32 %v6717_v25, %v3268_v8 }
 0x536   :  { %v4868_v27 = vmul.f32 -1.442695, %v3195_v23  ;;  %v5661_v63 = vpop.f32.mrf.mxu1 }
 0x538   :  { %5962 = vpow2.f32 %v4868_v27 }
 0x53c   :  { %v5959_v0 = vpop.eup %5958 }
 0x53d   :  { %v3122_v7 = vadd.f32 1.0, %v5959_v0  ;;  %v4713_v0 = vpop.permute.xlu0 %4712 }
 0x53f   :  { %5964 = vrcp.f32 %v3122_v7 }
 0x540   :  { %5966 = vrcp.f32 %v2965_v19 }
 0x542   :  { %v5961_v32 = vpop.eup %5960 }
 0x543   :  { %v3038_v59 = vmul.f32 %v5961_v32, %v3035_v26 }
 0x545   :  { %v3039_v5 = vadd.f32 %v3038_v59, %v7556_v29  ;;  %v5963_v13 = vpop.eup %5962 }
 0x546   :  { %v3199_v33 = vadd.f32 1.0, %v5963_v13  ;;  %v2809_v13 = vsel %vm2801_vm2, %v7066_v16, 0.0  ;;  %v7560_v16 = vld [vmem:[#allocation30_spill] sm:$0xff] }
 0x547   :  { %5968 = vtanh.f32 %v3039_v5 }
 0x548   :  { %5970 = vrcp.f32 %v3199_v33 }
 0x54c   :  { %v5965_v45 = vpop.eup %5964 }
 0x54d   :  { %v3272_v48 = vmul.f32 %v5965_v45, %v3269_v38  ;;  %v5967_v10 = vpop.eup %5966 }
 0x54e   :  { %v3041_v27 = vsub.f32 1.0, %v5967_v10  ;;  %v3043_v4 = vmul.f32 %v5967_v10, %v7073_v24 }
 0x54f   :  { %v3273_v23 = vadd.f32 %v3272_v48, %v7557_v2  ;;  %v7558_v2 = vld [vmem:[#allocation18_spill] sm:$0xff] }
 0x551   :  { %5972 = vtanh.f32 %v3273_v23 }
 0x554   :  { %v5969_v63 = vpop.eup %5968 }
 0x555   :  { %v3042_v12 = vmul.f32 %v5969_v63, %v3041_v27  ;;  %v5971_v8 = vpop.eup %5970 }
 0x556   :  { %v3277_v32 = vmul.f32 %v5971_v8, %v7108_v18 }
 0x557   :  { %v3044_v60 = vadd.f32 %v3043_v4, %v3042_v12  ;;  %v7559_v12 = vld [vmem:[#allocation19_spill] sm:$0xff] }
 0x559   :  { %v7179_v7 = vsel %vm2807_vm3, %v3044_v60, %v7073_v24  ;;  %v3281_v25 = vsel %vm2807_vm3, %v3044_v60, 0.0  ;;  %v3275_v24 = vsub.f32 1.0, %v5971_v8 }
 0x55a   :  { %5671 = vmatmul.mubr.msk.f32.vlgmr.msra.gmra.mxu0 %vm118_vm0, %v7179_v7  ;;  %v4732_v19 = vsel %vm118_vm0, %v3281_v25, %v4713_v0  ;;  %5682 = vmatmul.mubr.msk.f32.vlgmr.msra.gmra.mxu1 %vm118_vm0, %v7179_v7 }
 0x55b   :  { %4741 = vst.msk [vmem:[#allocation11 + $0x20] sm:$0xff] %vm4736_vm4, %v4732_v19  ;;  %5685 = vmatpush3.msra.mxu0 %v6935_v61  ;;  %5696 = vmatpush3.msra.mxu1 %v6938_v6 }
 0x55c   :  { %5686 = vmatprep.subr.mxu0 %v7545_v22  ;;  %5697 = vmatprep.subr.mxu1 %v7545_v22 }
 0x55d   :  { %5687 = vmatpush3.msra.mxu0 %v6943_v34  ;;  %5698 = vmatpush3.msra.mxu1 %v6946_v36 }
 0x55e   :  { %v5973_v37 = vpop.eup %5972  ;;  %5688 = vmatprep.subr.mxu0 %v7545_v22  ;;  %5699 = vmatprep.subr.mxu1 %v7545_v22 }
 0x55f   :  { %5689 = vmatpush3.msra.mxu0 %v6952_v39  ;;  %5700 = vmatpush3.msra.mxu1 %v6955_v40  ;;  %v3276_v26 = vmul.f32 %v5973_v37, %v3275_v24 }
 0x560   :  { %5690 = vmatprep.subr.mxu0 %v7545_v22  ;;  %5701 = vmatprep.subr.mxu1 %v7545_v22 }
 0x561   :  { %5691 = vmatpush3.msra.mxu0 %v6963_v46  ;;  %5692 = vmatprep.mubr.msk.f32.mxu0 %vm6199_vm1, %v7545_v22  ;;  %v3278_v59 = vadd.f32 %v3277_v32, %v3276_v26 }
 0x562   :  { %5702 = vmatpush3.msra.mxu1 %v6968_v47  ;;  %5703 = vmatprep.mubr.msk.f32.mxu1 %vm6199_vm1, %v7545_v22 }
 0x563   :  { %5693 = vmatmul.mubr.msk.f32.vlgmr.msra.gmra.mxu0 %vm118_vm0, %v7179_v7  ;;  %5706 = vmatprep.subr.mxu0 %v7545_v22  ;;  %v3282_v29 = vsel %vm2801_vm2, %v3278_v59, 0.0  ;;  %v7216_v5 = vsel %vm2801_vm2, %v3278_v59, %v7108_v18  ;;  %v7266_v18 = vpop.permute.xlu1 %4714  ;;  %v7561_v59 = vld [vmem:[#allocation42_spill] sm:$0xff] }
 0x564   :  { %5717 = vmatprep.subr.mxu1 %v7545_v22  ;;  %4710 = vrot.lane.b32.xlu1 %v3282_v29, %s6200_s5 }
 0x565   :  { %5704 = vmatmul.mubr.msk.f32.vlgmr.msra.gmra.mxu1 %vm118_vm0, %v7216_v5  ;;  %5707 = vmatpush3.msra.mxu0 %v6987_v50 }
 0x566   :  { %5718 = vmatpush3.msra.mxu1 %v6990_v51  ;;  %5708 = vmatprep.subr.mxu0 %v7545_v22 }
 0x567   :  { %5719 = vmatprep.subr.mxu1 %v7545_v22  ;;  %5709 = vmatpush3.msra.mxu0 %v6995_v44 }
 0x568   :  { %5720 = vmatpush3.msra.mxu1 %v7120_v49  ;;  %5710 = vmatprep.subr.mxu0 %v7545_v22 }
 0x569   :  { %5721 = vmatprep.subr.mxu1 %v7545_v22  ;;  %5711 = vmatpush3.msra.mxu0 %v7001_v52 }
 0x56a   :  { %5722 = vmatpush3.msra.mxu1 %v7126_v11  ;;  %5712 = vmatprep.subr.mxu0 %v7545_v22 }
 0x56b   :  { %5723 = vmatprep.subr.mxu1 %v7545_v22  ;;  %5713 = vmatpush3.msra.mxu0 %v7131_v35 }
 0x56c   :  { %5714 = vmatprep.mubr.msk.f32.mxu0 %vm6199_vm1, %v7545_v22  ;;  %5724 = vmatpush3.msra.mxu1 %v7136_v53 }
 0x56d   :  { %5725 = vmatprep.mubr.msk.f32.mxu1 %vm6199_vm1, %v7545_v22  ;;  %5715 = vmatmul.mubr.msk.f32.vlgmr.msra.gmra.mxu0 %vm118_vm0, %v7216_v5 }
 0x56e   :  { %5726 = vmatmul.mubr.msk.f32.vlgmr.msra.gmra.mxu1 %vm118_vm0, %v7216_v5  ;;  %5728 = vmatprep.subr.mxu0 %v7545_v22 }
 0x56f   :  { %5739 = vmatprep.subr.mxu1 %v7545_v22  ;;  %5729 = vmatpush3.msra.mxu0 %v7019_v54 }
 0x570   :  { %5740 = vmatpush3.msra.mxu1 %v7022_v56  ;;  %5730 = vmatprep.subr.mxu0 %v7545_v22 }
 0x571   :  { %5741 = vmatprep.subr.mxu1 %v7545_v22  ;;  %5731 = vmatpush3.msra.mxu0 %v7027_v57 }
 0x572   :  { %5742 = vmatpush3.msra.mxu1 %v7030_v58  ;;  %5732 = vmatprep.subr.mxu0 %v7545_v22 }
 0x573   :  { %5743 = vmatprep.subr.mxu1 %v7545_v22  ;;  %5733 = vmatpush3.msra.mxu0 %v7035_v55 }
 0x574   :  { %5744 = vmatpush3.msra.mxu1 %v7038_v17  ;;  %5734 = vmatprep.subr.mxu0 %v7545_v22 }
 0x575   :  { %5745 = vmatprep.subr.mxu1 %v7545_v22  ;;  %5735 = vmatpush3.msra.mxu0 %v7043_v21 }
 0x576   :  { %5746 = vmatpush3.msra.mxu1 %v7046_v62  ;;  %5736 = vmatprep.mubr.msk.f32.mxu0 %vm6199_vm1, %v7545_v22 }
 0x577   :  { %5747 = vmatprep.mubr.msk.f32.mxu1 %vm6199_vm1, %v7545_v22  ;;  %5750 = vmatprep.subr.mxu0 %v7545_v22 }
 0x578   :  { %5761 = vmatprep.subr.mxu1 %v7545_v22 }
 0x5d6   :  { %v4711_v33 = vpop.permute.xlu1 %4710 }
 0x5d7   :  { %v4731_v38 = vsel %vm118_vm0, %v2809_v13, %v4711_v33 }
 0x5d8   :  { %4740 = vst.msk [vmem:[#allocation11 + $0x18] sm:$0xff] %vm4736_vm4, %v4731_v38 }
 0x61a   :  { %v3352_v45 = vpop.f32.mrf.mxu0  ;;  %v3429_v48 = vpop.f32.mrf.mxu1 }
 0x61b   :  { %v3356_v23 = vadd.f32 %v3352_v45, %v7558_v2  ;;  %v3433_v4 = vadd.f32 %v3429_v48, %v7559_v12 }
 0x61c   :  { %v5672_v10 = vpop.f32.mrf.mxu0  ;;  %v5683_v27 = vpop.f32.mrf.mxu1 }
 0x61d   :  { %v4871_v63 = vmul.f32 -1.442695, %v3356_v23  ;;  %v4873_v0 = vmul.f32 -1.442695, %v3433_v4  ;;  %v7280_v27 = vld [vmem:[%s7508_s4 + $0x3] ss:$0 sm:$0xff] }
 0x61e   :  { %s6201_s4 = smov [#allocation11]  }
 0x61f   :  { %5974 = vpow2.f32 %v4871_v63 }
 0x620   :  { %5976 = vpow2.f32 %v4873_v0  ;;  %v7562_v0 = vld [vmem:[#allocation31_spill] sm:$0xff] }
 0x623   :  { %v3506_v60 = vpop.f32.mrf.mxu0 }
 0x624   :  { %v3507_v63 = vadd.f32 %v7280_v27, %v3506_v60  ;;  %v7563_v60 = vld [vmem:[#allocation43_spill] sm:$0xff] }
 0x625   :  { %v3586_v25 = vpop.f32.mrf.mxu1  ;;  %v5694_v31 = vpop.f32.mrf.mxu0 }
 0x626   :  { %v3590_v8 = vadd.f32 %v3586_v25, %v7560_v16 }
 0x627   :  { %v5705_v19 = vpop.f32.mrf.mxu1 }
 0x628   :  { %v4876_v24 = vmul.f32 -1.442695, %v3590_v8  ;;  %v7287_v8 = vld [vmem:[%s7511_s7 + $0x3] ss:$0 sm:$0xff]  ;;  %s4750_s7 = sshll.u32 %s6201_s4, 4  ;;  %s4751_s7 = int_to_ptr.vmem [resolvable:$true] %s4750_s7 }
 0x629   :  { %s6162_s27 = scalar_lea.vmem %s4751_s7, 1024  ;;  %p6167_p12 = scmp.lt.s32.totalorder %s4751_s7, %s4751_s7 }
 0x62a   :  { %5978 = vpow2.f32 %v4876_v24  ;;  %p6163_p11 = scmp.ne.s32.totalorder %s4751_s7, %s6162_s27  ;;  %p6168_p13 = scmp.lt.s32.totalorder %s6162_s27, %s6162_s27 }
 0x62c   :  { %v5975_v37 = vpop.eup %5974  ;;  %p6169_p0 = por %p6168_p13, %p6167_p12 }
 0x62d   :  { %v3360_v26 = vadd.f32 1.0, %v5975_v37  ;;  %v3663_v32 = vpop.f32.mrf.mxu0  ;;  %v5977_v48 = vpop.eup %5976 }
 0x62e   :  { %v3667_v29 = vadd.f32 %v3663_v32, %v7561_v59  ;;  %v3740_v13 = vpop.f32.mrf.mxu1  ;;  %v3437_v10 = vadd.f32 1.0, %v5977_v48  ;;  %p6170_p1 = pnand %p6169_p0, %p6163_p11 }
 0x62f   :  { %5980 = vrcp.f32 %v3360_v26  ;;  %v5716_v33 = vpop.f32.mrf.mxu0  ;;  %v3741_v19 = vadd.f32 %v7287_v8, %v3740_v13 }
 0x630   :  { %v4878_v38 = vmul.f32 -1.442695, %v3667_v29  ;;  %v5727_v45 = vpop.f32.mrf.mxu1 }
 0x632   :  { %5982 = vpow2.f32 %v4878_v38 }
 0x637   :  { %v5979_v2 = vpop.eup %5978 }
 0x638   :  { %v3594_v23 = vadd.f32 1.0, %v5979_v2 }
 0x63a   :  { %5984 = vrcp.f32 %v3594_v23 }
 0x63b   :  { %5986 = vrcp.f32 %v3437_v10 }
 0x63c   :  { %v5981_v12 = vpop.eup %5980 }
 0x63d   :  { %v3510_v4 = vmul.f32 %v5981_v12, %v3507_v63 }
 0x63f   :  { %v3511_v25 = vadd.f32 %v3510_v4, %v7562_v0  ;;  %v5983_v31 = vpop.eup %5982  ;;  %v7565_v4 = vld [vmem:[#allocation25_spill] sm:$0xff] }
 0x640   :  { %v3671_v16 = vadd.f32 1.0, %v5983_v31 }
 0x641   :  { %5988 = vtanh.f32 %v3511_v25 }
 0x642   :  { %5990 = vrcp.f32 %v3671_v16 }
 0x647   :  { %v5985_v24 = vpop.eup %5984 }
 0x648   :  { %v3744_v37 = vmul.f32 %v5985_v24, %v3741_v19  ;;  %v5987_v26 = vpop.eup %5986 }
 0x649   :  { %v3513_v59 = vsub.f32 1.0, %v5987_v26  ;;  %v3515_v38 = vmul.f32 %v5987_v26, %v7179_v7 }
 0x64a   :  { %v3745_v32 = vadd.f32 %v3744_v37, %v7563_v60 }
 0x64c   :  { %5992 = vtanh.f32 %v3745_v32 }
 0x64e   :  { %v5989_v29 = vpop.eup %5988 }
 0x64f   :  { %v3514_v33 = vmul.f32 %v5989_v29, %v3513_v59  ;;  %v5991_v23 = vpop.eup %5990  ;;  %v7567_v59 = vld [vmem:[#allocation36_spill] sm:$0xff] }
 0x650   :  { %v3747_v41 = vsub.f32 1.0, %v5991_v23 }
 0x651   :  { %v3516_v45 = vadd.f32 %v3515_v38, %v3514_v33 }
 0x653   :  { %v7295_v48 = vsel %vm2323_vm15, %v3516_v45, %v7179_v7  ;;  %v3753_v13 = vsel %vm2323_vm15, %v3516_v45, 0.0 }
 0x654   :  { %5737 = vmatmul.mubr.msk.f32.vlgmr.msra.gmra.mxu0 %vm118_vm0, %v7295_v48  ;;  %v4733_v2 = vsel %vm118_vm0, %v3753_v13, %v7266_v18  ;;  %5748 = vmatmul.mubr.msk.f32.vlgmr.msra.gmra.mxu1 %vm118_vm0, %v7295_v48 }
 0x655   :  { %4742 = vst.msk [vmem:[#allocation11 + $0x28] sm:$0xff] %vm4736_vm4, %v4733_v2  ;;  %5751 = vmatpush3.msra.mxu0 %v6935_v61  ;;  %5762 = vmatpush3.msra.mxu1 %v6938_v6  ;;  %v3749_v6 = vmul.f32 %v5991_v23, %v7216_v5 }
 0x656   :  { %5752 = vmatprep.subr.mxu0 %v7545_v22  ;;  %5763 = vmatprep.subr.mxu1 %v7545_v22 }
 0x657   :  { %5753 = vmatpush3.msra.mxu0 %v6943_v34  ;;  %5764 = vmatpush3.msra.mxu1 %v6946_v36 }
 0x658   :  { %5754 = vmatprep.subr.mxu0 %v7545_v22  ;;  %5765 = vmatprep.subr.mxu1 %v7545_v22 }
 0x659   :  { %v5993_v7 = vpop.eup %5992  ;;  %5755 = vmatpush3.msra.mxu0 %v6952_v39  ;;  %5766 = vmatpush3.msra.mxu1 %v6955_v40 }
 0x65a   :  { %5756 = vmatprep.subr.mxu0 %v7545_v22  ;;  %5767 = vmatprep.subr.mxu1 %v7545_v22  ;;  %v3748_v61 = vmul.f32 %v5993_v7, %v3747_v41 }
 0x65b   :  { %5757 = vmatpush3.msra.mxu0 %v6963_v46  ;;  %5758 = vmatprep.mubr.msk.f32.mxu0 %vm6199_vm1, %v7545_v22 }
 0x65c   :  { %5768 = vmatpush3.msra.mxu1 %v6968_v47  ;;  %5769 = vmatprep.mubr.msk.f32.mxu1 %vm6199_vm1, %v7545_v22  ;;  %v3750_v18 = vadd.f32 %v3749_v6, %v3748_v61 }
 0x65d   :  { %5759 = vmatmul.mubr.msk.f32.vlgmr.msra.gmra.mxu0 %vm118_vm0, %v7295_v48  ;;  %5772 = vmatprep.subr.mxu0 %v7545_v22 }
 0x65e   :  { %5783 = vmatprep.subr.mxu1 %v7545_v22  ;;  %v3754_v10 = vsel %vm2317_vm14, %v3750_v18, 0.0  ;;  %v7334_v63 = vsel %vm2317_vm14, %v3750_v18, %v7216_v5  ;;  %5773 = vmatpush3.msra.mxu0 %v6987_v50 }
 0x65f   :  { %4708 = vrot.lane.b32.xlu0 %v3754_v10, %s6200_s5  ;;  %5770 = vmatmul.mubr.msk.f32.vlgmr.msra.gmra.mxu1 %vm118_vm0, %v7334_v63  ;;  %v7568_v10 = vld [vmem:[#allocation35_spill] sm:$0xff] }
 0x660   :  { %5784 = vmatpush3.msra.mxu1 %v6990_v51  ;;  %5774 = vmatprep.subr.mxu0 %v7545_v22 }
 0x661   :  { %5785 = vmatprep.subr.mxu1 %v7545_v22  ;;  %5775 = vmatpush3.msra.mxu0 %v6995_v44 }
 0x662   :  { %5786 = vmatpush3.msra.mxu1 %v7120_v49  ;;  %5776 = vmatprep.subr.mxu0 %v7545_v22 }
 0x663   :  { %5787 = vmatprep.subr.mxu1 %v7545_v22  ;;  %5777 = vmatpush3.msra.mxu0 %v7001_v52 }
 0x664   :  { %5788 = vmatpush3.msra.mxu1 %v7126_v11  ;;  %5778 = vmatprep.subr.mxu0 %v7545_v22 }
 0x665   :  { %5789 = vmatprep.subr.mxu1 %v7545_v22  ;;  %5779 = vmatpush3.msra.mxu0 %v7131_v35 }
 0x666   :  { %5780 = vmatprep.mubr.msk.f32.mxu0 %vm6199_vm1, %v7545_v22  ;;  %5790 = vmatpush3.msra.mxu1 %v7136_v53 }
 0x667   :  { %5791 = vmatprep.mubr.msk.f32.mxu1 %vm6199_vm1, %v7545_v22  ;;  %5781 = vmatmul.mubr.msk.f32.vlgmr.msra.gmra.mxu0 %vm118_vm0, %v7334_v63 }
 0x668   :  { %5792 = vmatmul.mubr.msk.f32.vlgmr.msra.gmra.mxu1 %vm118_vm0, %v7334_v63  ;;  %5794 = vmatprep.subr.mxu0 %v7545_v22 }
 0x669   :  { %5805 = vmatprep.subr.mxu1 %v7545_v22  ;;  %5795 = vmatpush3.msra.mxu0 %v7019_v54  ;;  %v2325_v54 = vsel %vm2317_vm14, %v6922_v20, 0.0  ;;  %v7566_v20 = vld [vmem:[#allocation26_spill] sm:$0xff] }
 0x66a   :  { %5806 = vmatpush3.msra.mxu1 %v7022_v56  ;;  %5796 = vmatprep.subr.mxu0 %v7545_v22 }
 0x66b   :  { %5807 = vmatprep.subr.mxu1 %v7545_v22  ;;  %5797 = vmatpush3.msra.mxu0 %v7027_v57 }
 0x66c   :  { %5808 = vmatpush3.msra.mxu1 %v7030_v58  ;;  %5798 = vmatprep.subr.mxu0 %v7545_v22 }
 0x66d   :  { %5809 = vmatprep.subr.mxu1 %v7545_v22  ;;  %5799 = vmatpush3.msra.mxu0 %v7035_v55 }
 0x66e   :  { %5810 = vmatpush3.msra.mxu1 %v7038_v17  ;;  %5800 = vmatprep.subr.mxu0 %v7545_v22  ;;  %v7564_v17 = vld [vmem:[#allocation24_spill] sm:$0xff] }
 0x66f   :  { %5811 = vmatprep.subr.mxu1 %v7545_v22  ;;  %5801 = vmatpush3.msra.mxu0 %v7043_v21 }
 0x670   :  { %5812 = vmatpush3.msra.mxu1 %v7046_v62  ;;  %5802 = vmatprep.mubr.msk.f32.mxu0 %vm6199_vm1, %v7545_v22 }
 0x671   :  { %5813 = vmatprep.mubr.msk.f32.mxu1 %vm6199_vm1, %v7545_v22  ;;  %5816 = vmatprep.subr.mxu0 %v7545_v22 }
 0x672   :  { %5827 = vmatprep.subr.mxu1 %v7545_v22 }
 0x6d1   :  { %v4709_v56 = vpop.permute.xlu0 %4708 }
 0x6d2   :  { %v4730_v57 = vsel %vm118_vm0, %v2325_v54, %v4709_v56 }
 0x6d3   :  { %4739 = vst.msk [vmem:[#allocation11 + $0x10] sm:$0xff] %vm4736_vm4, %v4730_v57 }
 0x714   :  { %v3824_v58 = vpop.f32.mrf.mxu0  ;;  %v3901_v55 = vpop.f32.mrf.mxu1 }
 0x715   :  { %v3828_v21 = vadd.f32 %v3824_v58, %v7564_v17  ;;  %v3905_v0 = vadd.f32 %v3901_v55, %v7565_v4 }
 0x716   :  { %v5738_v62 = vpop.f32.mrf.mxu0  ;;  %v5749_v5 = vpop.f32.mrf.mxu1 }
 0x717   :  { %v4881_v12 = vmul.f32 -1.442695, %v3828_v21  ;;  %v4883_v31 = vmul.f32 -1.442695, %v3905_v0  ;;  %v7569_v62 = vld [vmem:[#allocation37_spill] sm:$0xff] }
 0x719   :  { %5994 = vpow2.f32 %v4881_v12 }
 0x71a   :  { %5996 = vpow2.f32 %v4883_v31 }
 0x71d   :  { %v3978_v25 = vpop.f32.mrf.mxu0 }
 0x71e   :  { %v3979_v61 = vadd.f32 %v7280_v27, %v3978_v25 }
 0x71f   :  { %v4058_v16 = vpop.f32.mrf.mxu1  ;;  %v5760_v15 = vpop.f32.mrf.mxu0 }
 0x720   :  { %v4062_v19 = vadd.f32 %v4058_v16, %v7566_v20  ;;  %v6060_v20 = vld [vmem:[#allocation7 + $0x58] sm:$0xff] }
 0x721   :  { %v5771_v24 = vpop.f32.mrf.mxu1 }
 0x722   :  { %v4886_v37 = vmul.f32 -1.442695, %v4062_v19  ;;  %v6061_v19 = vld [vmem:[#allocation10 + $0x18] sm:$0xff] }
 0x724   :  { %5998 = vpow2.f32 %v4886_v37 }
 0x726   :  { %v5995_v26 = vpop.eup %5994 }
 0x727   :  { %v3832_v60 = vadd.f32 1.0, %v5995_v26  ;;  %v4135_v32 = vpop.f32.mrf.mxu0  ;;  %v5997_v2 = vpop.eup %5996 }
 0x728   :  { %v4139_v29 = vadd.f32 %v4135_v32, %v7567_v59  ;;  %v4212_v33 = vpop.f32.mrf.mxu1  ;;  %v3909_v7 = vadd.f32 1.0, %v5997_v2  ;;  %v7573_v2 = vld [vmem:[#allocation38_spill] sm:$0xff] }
 0x729   :  { %6000 = vrcp.f32 %v3832_v60  ;;  %v5782_v38 = vpop.f32.mrf.mxu0  ;;  %v4213_v58 = vadd.f32 %v7287_v8, %v4212_v33 }
 0x72a   :  { %v4888_v45 = vmul.f32 -1.442695, %v4139_v29  ;;  %v5793_v13 = vpop.f32.mrf.mxu1 }
 0x72c   :  { %6002 = vpow2.f32 %v4888_v45 }
 0x731   :  { %v5999_v23 = vpop.eup %5998 }
 0x732   :  { %v4066_v41 = vadd.f32 1.0, %v5999_v23 }
 0x734   :  { %6004 = vrcp.f32 %v4066_v41 }
 0x735   :  { %6006 = vrcp.f32 %v3909_v7 }
 0x736   :  { %v6001_v6 = vpop.eup %6000 }
 0x737   :  { %v3982_v18 = vmul.f32 %v6001_v6, %v3979_v61 }
 0x739   :  { %v3983_v54 = vadd.f32 %v3982_v18, %v7568_v10  ;;  %v6003_v56 = vpop.eup %6002 }
 0x73a   :  { %v4143_v57 = vadd.f32 1.0, %v6003_v56 }
 0x73b   :  { %6008 = vtanh.f32 %v3983_v54 }
 0x73c   :  { %6010 = vrcp.f32 %v4143_v57 }
 0x741   :  { %v6005_v55 = vpop.eup %6004 }
 0x742   :  { %v4216_v17 = vmul.f32 %v6005_v55, %v4213_v58  ;;  %v6007_v21 = vpop.eup %6006  ;;  %v7574_v55 = vld [vmem:[#allocation34_spill] sm:$0xff] }
 0x743   :  { %v3985_v12 = vsub.f32 1.0, %v6007_v21  ;;  %v3987_v25 = vmul.f32 %v6007_v21, %v7295_v48 }
 0x744   :  { %v4217_v5 = vadd.f32 %v4216_v17, %v7569_v62 }
 0x746   :  { %6012 = vtanh.f32 %v4217_v5 }
 0x748   :  { %v6009_v4 = vpop.eup %6008 }
 0x749   :  { %v3986_v0 = vmul.f32 %v6009_v4, %v3985_v12  ;;  %v6011_v15 = vpop.eup %6010 }
 0x74a   :  { %v4221_v26 = vmul.f32 %v6011_v15, %v7334_v63 }
 0x74b   :  { %v7397_v31 = vadd.f32 %v3987_v25, %v3986_v0  ;;  %v7575_v25 = vld [vmem:[#allocation39_spill] sm:$0xff] }
 0x74d   :  { %v7403_v16 = vsel %vm1839_vm13, %v7397_v31, %v7295_v48  ;;  %v4219_v48 = vsub.f32 1.0, %v6011_v15  ;;  %v4225_v9 = vsel %vm1839_vm13, %v7397_v31, 0.0 }
 0x74e   :  { %5803 = vmatmul.mubr.msk.f32.vlgmr.msra.gmra.mxu0 %vm118_vm0, %v7403_v16  ;;  %5814 = vmatmul.mubr.msk.f32.vlgmr.msra.gmra.mxu1 %vm118_vm0, %v7403_v16 }
 0x74f   :  { %5817 = vmatpush3.msra.mxu0 %v6060_v20  ;;  %5828 = vmatpush3.msra.mxu1 %v6061_v19 }
 0x750   :  { %5818 = vmatprep.subr.mxu0 %v7545_v22  ;;  %5829 = vmatprep.subr.mxu1 %v7545_v22 }
 0x751   :  { %5819 = vmatpush3.msra.mxu0 %v6943_v34  ;;  %5830 = vmatpush3.msra.mxu1 %v6946_v36 }
 0x752   :  { %5820 = vmatprep.subr.mxu0 %v7545_v22  ;;  %5831 = vmatprep.subr.mxu1 %v7545_v22 }
 0x753   :  { %v6013_v24 = vpop.eup %6012  ;;  %5821 = vmatpush3.msra.mxu0 %v6952_v39  ;;  %5832 = vmatpush3.msra.mxu1 %v6955_v40 }
 0x754   :  { %5822 = vmatprep.subr.mxu0 %v7545_v22  ;;  %5833 = vmatprep.subr.mxu1 %v7545_v22  ;;  %v4220_v37 = vmul.f32 %v6013_v24, %v4219_v48 }
 0x755   :  { %5823 = vmatpush3.msra.mxu0 %v6963_v46  ;;  %5824 = vmatprep.mubr.msk.f32.mxu0 %vm6199_vm1, %v7545_v22 }
 0x756   :  { %5834 = vmatpush3.msra.mxu1 %v6968_v47  ;;  %5835 = vmatprep.mubr.msk.f32.mxu1 %vm6199_vm1, %v7545_v22  ;;  %v4222_v34 = vadd.f32 %v4221_v26, %v4220_v37 }
 0x757   :  { %5825 = vmatmul.mubr.msk.f32.vlgmr.msra.gmra.mxu0 %vm118_vm0, %v7403_v16  ;;  %5838 = vmatprep.subr.mxu0 %v7545_v22 }
 0x758   :  { %5849 = vmatprep.subr.mxu1 %v7545_v22  ;;  %v4226_v36 = vsel %vm1833_vm12, %v4222_v34, 0.0  ;;  %v7435_v39 = vsel %vm1833_vm12, %v4222_v34, %v7334_v63  ;;  %5839 = vmatpush3.msra.mxu0 %v6987_v50 }
 0x759   :  { %4706 = vrot.lane.b32.xlu1 %v4226_v36, %s6200_s5  ;;  %5836 = vmatmul.mubr.msk.f32.vlgmr.msra.gmra.mxu1 %vm118_vm0, %v7435_v39 }
 0x75a   :  { %5850 = vmatpush3.msra.mxu1 %v6990_v51  ;;  %5840 = vmatprep.subr.mxu0 %v7545_v22  ;;  %v7570_v51 = vld [vmem:[#allocation22_spill] sm:$0xff] }
 0x75b   :  { %5851 = vmatprep.subr.mxu1 %v7545_v22  ;;  %5841 = vmatpush3.msra.mxu0 %v6995_v44 }
 0x75c   :  { %5852 = vmatpush3.msra.mxu1 %v7120_v49  ;;  %5842 = vmatprep.subr.mxu0 %v7545_v22 }
 0x75d   :  { %4718 = vrot.lane.b32.xlu1 %v6752_v28, %s6200_s5  ;;  %5853 = vmatprep.subr.mxu1 %v7545_v22  ;;  %v1841_v28 = vsel %vm1833_vm12, %v6819_v3, 0.0  ;;  %v7572_v3 = vld [vmem:[#allocation27_spill] sm:$0xff] }
 0x75e   :  { %5843 = vmatpush3.msra.mxu0 %v7001_v52  ;;  %5854 = vmatpush3.msra.mxu1 %v7126_v11  ;;  %v7571_v11 = vld [vmem:[#allocation23_spill] sm:$0xff] }
 0x75f   :  { %5844 = vmatprep.subr.mxu0 %v7545_v22  ;;  %5855 = vmatprep.subr.mxu1 %v7545_v22 }
 0x760   :  { %5845 = vmatpush3.msra.mxu0 %v7131_v35  ;;  %5846 = vmatprep.mubr.msk.f32.mxu0 %vm6199_vm1, %v7545_v22 }
 0x761   :  { %5856 = vmatpush3.msra.mxu1 %v7136_v53  ;;  %5857 = vmatprep.mubr.msk.f32.mxu1 %vm6199_vm1, %v7545_v22 }
 0x762   :  { %5847 = vmatmul.mubr.msk.f32.vlgmr.msra.gmra.mxu0 %vm118_vm0, %v7435_v39  ;;  %5858 = vmatmul.mubr.msk.f32.vlgmr.msra.gmra.mxu1 %vm118_vm0, %v7435_v39 }
 0x7cb   :  { %v4707_v40 = vpop.permute.xlu1 %4706 }
 0x7cc   :  { %v4729_v46 = vsel %vm118_vm0, %v1841_v28, %v4707_v40 }
 0x7cd   :  { %4738 = vst.msk [vmem:[#allocation11 + $0x8] sm:$0xff] %vm4736_vm4, %v4729_v46 }
 0x7cf   :  { %v4719_v37 = vpop.permute.xlu1 %4718 }
 0x80e   :  { %v4296_v47 = vpop.f32.mrf.mxu0  ;;  %v4373_v50 = vpop.f32.mrf.mxu1 }
 0x80f   :  { %v4300_v44 = vadd.f32 %v4296_v47, %v7570_v51  ;;  %v4377_v35 = vadd.f32 %v4373_v50, %v7571_v11 }
 0x810   :  { %v5804_v22 = vpop.f32.mrf.mxu0  ;;  %v5815_v52 = vpop.f32.mrf.mxu1 }
 0x811   :  { %v4891_v49 = vmul.f32 -1.442695, %v4300_v44  ;;  %v4893_v63 = vmul.f32 -1.442695, %v4377_v35 }
 0x813   :  { %6014 = vpow2.f32 %v4891_v49 }
 0x814   :  { %6016 = vpow2.f32 %v4893_v63 }
 0x817   :  { %v4450_v53 = vpop.f32.mrf.mxu0 }
 0x818   :  { %v4451_v56 = vadd.f32 %v7280_v27, %v4450_v53 }
 0x819   :  { %v4530_v60 = vpop.f32.mrf.mxu1  ;;  %v5826_v30 = vpop.f32.mrf.mxu0 }
 0x81a   :  { %v4534_v32 = vadd.f32 %v4530_v60, %v7572_v3 }
 0x81b   :  { %v5837_v59 = vpop.f32.mrf.mxu1 }
 0x81c   :  { %v4896_v29 = vmul.f32 -1.442695, %v4534_v32 }
 0x81e   :  { %6018 = vpow2.f32 %v4896_v29 }
 0x820   :  { %v6015_v33 = vpop.eup %6014 }
 0x821   :  { %v4304_v38 = vadd.f32 1.0, %v6015_v33  ;;  %v6017_v6 = vpop.eup %6016 }
 0x822   :  { %v4607_v45 = vpop.f32.mrf.mxu0  ;;  %v4684_v13 = vpop.f32.mrf.mxu1  ;;  %v4381_v54 = vadd.f32 1.0, %v6017_v6 }
 0x823   :  { %6020 = vrcp.f32 %v4304_v38  ;;  %v4611_v23 = vadd.f32 %v4607_v45, %v7573_v2  ;;  %v4685_v5 = vadd.f32 %v7287_v8, %v4684_v13 }
 0x824   :  { %v5848_v41 = vpop.f32.mrf.mxu0  ;;  %v5859_v7 = vpop.f32.mrf.mxu1 }
 0x825   :  { %v4898_v61 = vmul.f32 -1.442695, %v4611_v23 }
 0x827   :  { %6022 = vpow2.f32 %v4898_v61 }
 0x82b   :  { %v6019_v18 = vpop.eup %6018 }
 0x82c   :  { %v4538_v10 = vadd.f32 1.0, %v6019_v18 }
 0x82e   :  { %6024 = vrcp.f32 %v4538_v10 }
 0x82f   :  { %6026 = vrcp.f32 %v4381_v54 }
 0x830   :  { %v6021_v57 = vpop.eup %6020 }
 0x831   :  { %v4454_v58 = vmul.f32 %v6021_v57, %v4451_v56 }
 0x833   :  { %v4455_v17 = vadd.f32 %v4454_v58, %v7574_v55 }
 0x834   :  { %v6023_v21 = vpop.eup %6022 }
 0x835   :  { %6028 = vtanh.f32 %v4455_v17  ;;  %v4615_v62 = vadd.f32 1.0, %v6023_v21 }
 0x837   :  { %6030 = vrcp.f32 %v4615_v62 }
 0x83b   :  { %v6025_v12 = vpop.eup %6024 }
 0x83c   :  { %v4688_v4 = vmul.f32 %v6025_v12, %v4685_v5  ;;  %v6027_v0 = vpop.eup %6026 }
 0x83d   :  { %v4457_v20 = vsub.f32 1.0, %v6027_v0  ;;  %v4459_v27 = vmul.f32 %v6027_v0, %v7403_v16 }
 0x83e   :  { %v4689_v15 = vadd.f32 %v4688_v4, %v7575_v25 }
 0x840   :  { %6032 = vtanh.f32 %v4689_v15 }
 0x842   :  { %v6029_v19 = vpop.eup %6028 }
 0x843   :  { %v4458_v48 = vmul.f32 %v6029_v19, %v4457_v20 }
 0x844   :  { %v6031_v8 = vpop.eup %6030 }
 0x845   :  { %v4460_v24 = vadd.f32 %v4459_v27, %v4458_v48  ;;  %v4691_v36 = vsub.f32 1.0, %v6031_v8  ;;  %v4693_v46 = vmul.f32 %v6031_v8, %v7435_v39 }
 0x847   :  { %v4695_v26 = vsel %vm1357_vm11, %v4460_v24, 0.0 }
 0x848   :  { %v4735_v34 = vsel %vm118_vm0, %v4695_v26, %v4719_v37 }
 0x849   :  { %4744 = vst.msk [vmem:[#allocation11 + $0x38] sm:$0xff] %vm4736_vm4, %v4735_v34 }
 0x84d   :  { %v6033_v28 = vpop.eup %6032 }
 0x84e   :  { %v4692_v40 = vmul.f32 %v6033_v28, %v4691_v36 }
 0x850   :  { %v4694_v47 = vadd.f32 %v4693_v46, %v4692_v40 }
 0x852   :  { %v4696_v16 = vsel %vm1351_vm10, %v4694_v47, 0.0 }
 0x853   :  { %4704 = vrot.lane.b32.xlu0 %v4696_v16, %s6200_s5 }
 0x857   :  { %4716 = vrot.lane.b32.xlu0 %v1842_v14, %s6200_s5 }
 0x8c5   :  { %v4705_v50 = vpop.permute.xlu0 %4704 }
 0x8c6   :  { %v4728_v51 = vsel %vm118_vm0, %v6726_v1, %v4705_v50 }
 0x8c7   :  { %4737 = vst.msk [vmem:[#allocation11] sm:$0xff] %vm4736_vm4, %v4728_v51 }
 0x8c9   :  { %v4717_v39 = vpop.permute.xlu0 %4716 }
 0x8ca   :  { %v4734_v44 = vsel %vm118_vm0, %v4225_v9, %v4717_v39 }
 0x8cb   :  { %4743 = vst.msk [vmem:[#allocation11 + $0x30] sm:$0xff] %vm4736_vm4, %v4734_v44 }
 0x8cc   :  { %6173 = shalt.err (!%p6170_p1)
}
 0x8cd   :  { %4756 = dma.vmem_to_hbm [thread:$0]  %s4751_s7, 1024, %s7512_s8, [#allocation4], %s6192_s10, %s6192_s10, %s6193_s11  }
 0x8ce   :  { %6188 = dma.done.wait [#allocation4], 1024  }
 0x8cf   :  { %6189 = vsyncadd [#allocation4], 4294966272 }
 0x8d0   :  { %4760 = vsyncpa [#allocation3], 1 }
 0x8d1   :  { %4761 = vsyncpa [#allocation6], 1 }
 0x8d2   :  { %4762 = vsyncpa [#allocation9], 1 }
 0x8d3   :  { %4763 = vsyncpa [#allocation4], 1 }

</bundles_post_ra>
